<compile_context>
chip_gen: v5e
topology: v5e:2x2
jax: 0.10.0
libtpu: 0.0.40
codegen_flags: <defaults>
</compile_context>

<pallas_src>
import functools
import math

import numpy as np
import jax
import jax.numpy as jnp
from jax.experimental import pallas as pl
from jax.experimental.pallas import tpu as pltpu


# ----------------------------------------------------------------------------
# helpers
# ----------------------------------------------------------------------------
def _softplus(x):
    # PyTorch softplus (beta=1, threshold=20)
    return jnp.where(x > 20.0, x, jnp.log1p(jnp.exp(jnp.minimum(x, 20.0))))


def _round_up(n, m):
    return -(-n // m) * m


def _row_tile(n, cap):
    # multiple of 8 (sublane tiling), capped
    return min(_round_up(max(n, 1), 8), cap)


def _pad_rows(a, rows):
    n = a.shape[0]
    if rows == n:
        return a
    return jnp.pad(a, [(0, rows - n)] + [(0, 0)] * (a.ndim - 1))


_NODE_TILE = 256   # fused node linear
_TP_TILE = 512     # fused edge-MLP + tensor-product kernels (~0.5 MB dbl-buffered)
_HEAD_TILE = 512   # BN-normalize + linear head


# ----------------------------------------------------------------------------
# constant one-hot matrices for the vectorized TP contractions (built at init)
# ----------------------------------------------------------------------------
def _tp1_constants(ns, nv):
    """rexp (ns, wnum): lane-expand the ns input scalars to align with the flat
       per-edge weight layout [0e (ns,ns) | 1o (ns,nv) | 2e (ns,nv)], u-major.
       sexp (wnum, d1): sum over u and replicate each vector weight over its
       irrep components -> lane-contiguous (d1,) output slab."""
    wnum = ns * ns + 2 * ns * nv
    d1 = ns + 8 * nv
    off1, off2 = ns * ns, ns * ns + ns * nv
    rexp = np.zeros((ns, wnum), np.float32)
    sexp = np.zeros((wnum, d1), np.float32)
    for u in range(ns):
        rexp[u, u * ns:(u + 1) * ns] = 1.0
        rexp[u, off1 + u * nv: off1 + (u + 1) * nv] = 1.0
        rexp[u, off2 + u * nv: off2 + (u + 1) * nv] = 1.0
        for i in range(ns):
            sexp[u * ns + i, i] = 1.0
        for a in range(nv):
            sexp[off1 + u * nv + a, ns + 3 * a: ns + 3 * a + 3] = 1.0
            sexp[off2 + u * nv + a,
                 ns + 3 * nv + 5 * a: ns + 3 * nv + 5 * a + 5] = 1.0
    return jnp.asarray(rexp), jnp.asarray(sexp)


def _tp2_constants(ns, nv):
    """gr (d1, wnum): maps (x * sh_slab) to per-path effective scalars (with the
       e3nn 'element' path normalization and w3j(l,l,0)=I/sqrt(2l+1) factors
       folded in), lane-repeated over each path's ns weight lanes.
       ssum (wnum, ns): sums the per-path contributions into the ns x0e output."""
    wnum = ns * ns + 2 * nv * ns
    d1 = ns + 8 * nv
    npaths = ns + 2 * nv
    cbase = 1.0 / math.sqrt(ns + 2 * nv)
    c1, c2 = cbase / math.sqrt(3.0), cbase / math.sqrt(5.0)
    g = np.zeros((d1, npaths), np.float32)
    for u in range(ns):
        g[u, u] = cbase
    for a in range(nv):
        g[ns + 3 * a: ns + 3 * a + 3, ns + a] = c1
        g[ns + 3 * nv + 5 * a: ns + 3 * nv + 5 * a + 5, ns + nv + a] = c2
    rep = np.zeros((npaths, wnum), np.float32)
    ssum = np.zeros((wnum, ns), np.float32)
    for p in range(npaths):
        rep[p, p * ns:(p + 1) * ns] = 1.0
        for i in range(ns):
            ssum[p * ns + i, i] = 1.0
    return jnp.asarray(g @ rep), jnp.asarray(ssum)


# ----------------------------------------------------------------------------
# Pallas kernels
# ----------------------------------------------------------------------------
def linear_kernel(x_ref, w_ref, b_ref, o_ref):
    o_ref[...] = (jnp.dot(x_ref[...], w_ref[...], preferred_element_type=jnp.float32)
                  + b_ref[...]).astype(o_ref.dtype)


def pallas_linear(x, w, b):
    n, k = x.shape
    c = w.shape[1]
    t = _row_tile(n, _NODE_TILE)
    npad = _round_up(n, t)
    xp = _pad_rows(x, npad)
    out = pl.pallas_call(
        linear_kernel,
        out_shape=jax.ShapeDtypeStruct((npad, c), jnp.float32),
        grid=(npad // t,),
        in_specs=[
            pl.BlockSpec((t, k), lambda i: (i, 0)),
            pl.BlockSpec((k, c), lambda i: (0, 0)),
            pl.BlockSpec((1, c), lambda i: (0, 0)),
        ],
        out_specs=pl.BlockSpec((t, c), lambda i: (i, 0)),
        compiler_params=pltpu.CompilerParams(dimension_semantics=("parallel",)),
    )(xp, w, b.reshape(1, c))
    return out[:n]


def _sh_slab(v, ns, nv):
    # e3nn o3.spherical_harmonics('1x0e+1x1o+1x2e', v, normalize=True, 'component')
    # laid out lane-contiguously as [ones(ns) | sh1 tiled nv | sh2 tiled nv].
    nrm = jnp.sqrt(jnp.sum(v * v, axis=-1, keepdims=True))
    vn = v / jnp.maximum(nrm, 1e-12)
    vx, vy, vz = vn[:, 0:1], vn[:, 1:2], vn[:, 2:3]
    s3, s5, s15 = math.sqrt(3.0), math.sqrt(5.0), math.sqrt(15.0)
    sh1 = s3 * vn                                            # (T, 3)
    sh2 = jnp.concatenate(
        [s15 * vx * vz,
         s15 * vx * vy,
         s5 * (vy * vy - 0.5 * (vx * vx + vz * vz)),
         s15 * vy * vz,
         0.5 * s15 * (vz * vz - vx * vx)], axis=-1)          # (T, 5)
    ones = jnp.ones((v.shape[0], ns), jnp.float32)
    return jnp.concatenate([ones] + [sh1] * nv + [sh2] * nv, axis=-1)   # (T, ns+8nv)


def tp1_kernel(xg_ref, ev_ref, ef_ref, w1_ref, b1_ref, w2_ref, b2_ref,
               rexp_ref, sexp_ref, o_ref, *, ns, nv):
    # FullyConnectedTensorProduct('ns x0e', '1x0e+1x1o+1x2e', 'ns x0e+nv x1o+nv x2e')
    # with the edge-MLP fused in (per-edge weights never leave VMEM).
    # e3nn 'component' + path_normalization='element' collapses to 1/sqrt(ns).
    h = _softplus(jnp.dot(ef_ref[...], w1_ref[...],
                          preferred_element_type=jnp.float32) + b1_ref[...])
    w = jnp.dot(h, w2_ref[...], preferred_element_type=jnp.float32) + b2_ref[...]   # (T, wnum)

    # lane-expand x (MXU) -> full-lane VPU multiply -> one-hot MXU reduce over u
    x_full = jnp.dot(xg_ref[...], rexp_ref[...], preferred_element_type=jnp.float32)  # (T, wnum)
    z_exp = jnp.dot(x_full * w, sexp_ref[...], preferred_element_type=jnp.float32)    # (T, d1)

    sh = _sh_slab(ev_ref[...], ns, nv)                                                # (T, d1)
    coef = 1.0 / math.sqrt(ns)
    o_ref[...] = (coef * z_exp * sh).astype(o_ref.dtype)       # one wide store


def tp2_kernel(xg_ref, ev_ref, ef_ref, w1_ref, b1_ref, w2_ref, b2_ref,
               gr_ref, ssum_ref, o_ref, *, ns, nv):
    # FullyConnectedTensorProduct('ns x0e+nv x1o+nv x2e', '1x0e+1x1o+1x2e', 'ns x0e')
    # with the edge-MLP fused in.  Path normalization is folded into gr_ref.
    h = _softplus(jnp.dot(ef_ref[...], w1_ref[...],
                          preferred_element_type=jnp.float32) + b1_ref[...])
    w = jnp.dot(h, w2_ref[...], preferred_element_type=jnp.float32) + b2_ref[...]   # (T, wnum)

    sh = _sh_slab(ev_ref[...], ns, nv)                                               # (T, d1)
    e_rep = jnp.dot(xg_ref[...] * sh, gr_ref[...],
                    preferred_element_type=jnp.float32)                              # (T, wnum)
    o_ref[...] = jnp.dot(e_rep * w, ssum_ref[...],
                         preferred_element_type=jnp.float32).astype(o_ref.dtype)


def _pallas_tp(kernel_fn, xg_p, ev_p, ef_p, fc1, fc2, cmat_a, cmat_b,
               d_out, ns, nv, tile):
    ep, d_in = xg_p.shape
    edge_dim = ef_p.shape[1]
    w1, b1 = fc1
    w2, b2 = fc2
    wnum = w2.shape[1]
    return pl.pallas_call(
        functools.partial(kernel_fn, ns=ns, nv=nv),
        out_shape=jax.ShapeDtypeStruct((ep, d_out), jnp.float32),
        grid=(ep // tile,),
        in_specs=[
            pl.BlockSpec((tile, d_in), lambda i: (i, 0)),
            pl.BlockSpec((tile, 3), lambda i: (i, 0)),
            pl.BlockSpec((tile, edge_dim), lambda i: (i, 0)),
            pl.BlockSpec((edge_dim, edge_dim), lambda i: (0, 0)),
            pl.BlockSpec((1, edge_dim), lambda i: (0, 0)),
            pl.BlockSpec((edge_dim, wnum), lambda i: (0, 0)),
            pl.BlockSpec((1, wnum), lambda i: (0, 0)),
            pl.BlockSpec(cmat_a.shape, lambda i: (0, 0)),
            pl.BlockSpec(cmat_b.shape, lambda i: (0, 0)),
        ],
        out_specs=pl.BlockSpec((tile, d_out), lambda i: (i, 0)),
        compiler_params=pltpu.CompilerParams(dimension_semantics=("parallel",)),
    )(xg_p, ev_p, ef_p, w1, b1.reshape(1, -1), w2, b2.reshape(1, -1), cmat_a, cmat_b)


def head_kernel(x_ref, mu_ref, inv_ref, g_ref, be_ref, w_ref, b_ref, skip_ref, o_ref):
    # softplus(node_linear_2(softplus(BatchNorm1d(x)))) + skip
    # Batch statistics (mu, 1/sqrt(var+eps)) are computed exactly outside and
    # broadcast in, so the kernel can be tiled over N (both TCs on v7x).
    xn = (x_ref[...] - mu_ref[...]) * inv_ref[...] * g_ref[...] + be_ref[...]
    h = _softplus(xn)
    y = _softplus(jnp.dot(h, w_ref[...], preferred_element_type=jnp.float32) + b_ref[...])
    o_ref[...] = (y + skip_ref[...]).astype(o_ref.dtype)


def pallas_head(x, gamma, beta, w, b, skip, eps=1e-5):
    n, ns = x.shape
    c = w.shape[1]
    # exact training-mode BatchNorm1d statistics (biased variance), one cheap XLA reduce
    mean = jnp.mean(x, axis=0, keepdims=True)
    var = jnp.mean((x - mean) ** 2, axis=0, keepdims=True)
    inv = jax.lax.rsqrt(var + eps)
    t = _row_tile(n, _HEAD_TILE)
    npad = _round_up(n, t)
    xp = _pad_rows(x, npad)
    skp = _pad_rows(skip, npad)
    out = pl.pallas_call(
        head_kernel,
        out_shape=jax.ShapeDtypeStruct((npad, c), jnp.float32),
        grid=(npad // t,),
        in_specs=[
            pl.BlockSpec((t, ns), lambda i: (i, 0)),
            pl.BlockSpec((1, ns), lambda i: (0, 0)),
            pl.BlockSpec((1, ns), lambda i: (0, 0)),
            pl.BlockSpec((1, ns), lambda i: (0, 0)),
            pl.BlockSpec((1, ns), lambda i: (0, 0)),
            pl.BlockSpec((ns, c), lambda i: (0, 0)),
            pl.BlockSpec((1, c), lambda i: (0, 0)),
            pl.BlockSpec((t, c), lambda i: (i, 0)),
        ],
        out_specs=pl.BlockSpec((t, c), lambda i: (i, 0)),
        compiler_params=pltpu.CompilerParams(dimension_semantics=("parallel",)),
    )(xp, mean, inv, gamma.reshape(1, ns), beta.reshape(1, ns), w, b.reshape(1, c), skp)
    return out[:n]


# ----------------------------------------------------------------------------
# parameters (deterministic init; PyTorch Linear-style uniform bounds)
# ----------------------------------------------------------------------------
def init_params(key, in_ch, out_ch, edge_dim, ns, nv):
    wnum1 = ns * ns + 2 * ns * nv   # tp weight_numel of nlayer_1
    wnum2 = ns * ns + 2 * nv * ns   # tp weight_numel of nlayer_2

    def lin(k, fin, fout):
        k1, k2 = jax.random.split(k)
        bound = 1.0 / math.sqrt(fin)
        w = jax.random.uniform(k1, (fin, fout), jnp.float32, -bound, bound)
        b = jax.random.uniform(k2, (fout,), jnp.float32, -bound, bound)
        return w, b

    keys = jax.random.split(key, 7)
    node_w, node_b = lin(keys[0], in_ch, ns)
    skip_w, skip_b = lin(keys[1], in_ch, out_ch)
    return {
        # node_linear + skip_linear pre-concatenated once (shared node DMA, one matmul)
        "cat_linear": (jnp.concatenate([node_w, skip_w], axis=1),
                       jnp.concatenate([node_b, skip_b])),
        "l1_fc1": lin(keys[2], edge_dim, edge_dim),
        "l1_fc2": lin(keys[3], edge_dim, wnum1),
        "l2_fc1": lin(keys[4], edge_dim, edge_dim),
        "l2_fc2": lin(keys[5], edge_dim, wnum2),
        "node_linear_2": lin(keys[6], ns, out_ch),
        "bn_gamma": jnp.ones((ns,), jnp.float32),
        "bn_beta": jnp.zeros((ns,), jnp.float32),
        # one-hot constants for the vectorized TP contractions (built once)
        "tp1_const": _tp1_constants(ns, nv),
        "tp2_const": _tp2_constants(ns, nv),
    }


# ----------------------------------------------------------------------------
# full forward pass (MatformerConvEqui.forward)
# ----------------------------------------------------------------------------
def matformer_conv_equi(params, node_feature, edge_index, edge_feature, edge_vec, ns, nv):
    n = node_feature.shape[0]
    e = edge_vec.shape[0]
    edge_src, edge_dst = edge_index[0], edge_index[1]
    d1 = ns + 8 * nv

    # ---- edge-row padding (once; padded rows are dropped before the scatters) ----
    te = _row_tile(e, _TP_TILE)
    ep = _round_up(e, te)
    ev_p = _pad_rows(edge_vec, ep)
    ef_p = _pad_rows(edge_feature, ep)
    dst_p = jnp.pad(edge_dst, (0, ep - e))

    # ---- node_linear + skip_linear fused into one matmul ----
    ncat = pallas_linear(node_feature, *params["cat_linear"])    # (N, ns + out_ch)
    h = ncat[:, :ns]
    skip = ncat[:, ns:]

    # ---- scatter-mean bookkeeping shared by both layers ----
    # TODO(synk): scatter-mean (data-dependent per-edge writes) stays in plain JAX.
    cnt = jnp.zeros((n,), jnp.float32).at[edge_src].add(1.0)
    inv_cnt = (1.0 / jnp.maximum(cnt, 1.0))[:, None]

    # ---------------- TensorProductConvLayer 1 (residual=True) ----------------
    # TODO(synk): for large E / small N the gather could be fused into the TP kernel
    # via PrefetchScalarGridSpec; kept as an XLA gather fallback here.
    xg_p = jnp.take(h, dst_p, axis=0)                            # (Ep, ns)
    tp1_p = _pallas_tp(tp1_kernel, xg_p, ev_p, ef_p,
                       params["l1_fc1"], params["l1_fc2"],
                       *params["tp1_const"], d1, ns, nv, te)     # (Ep, d1)
    h1 = jnp.zeros((n, d1), jnp.float32).at[edge_src].add(tp1_p[:e]) * inv_cnt
    h1 = h1 + jnp.pad(h, ((0, 0), (0, d1 - ns)))                 # residual (right zero pad)

    # ---------------- TensorProductConvLayer 2 (residual=False) ----------------
    xg1_p = jnp.take(h1, dst_p, axis=0)                          # (Ep, d1)
    tp2_p = _pallas_tp(tp2_kernel, xg1_p, ev_p, ef_p,
                       params["l2_fc1"], params["l2_fc2"],
                       *params["tp2_const"], ns, ns, nv, te)     # (Ep, ns)
    h2 = jnp.zeros((n, ns), jnp.float32).at[edge_src].add(tp2_p[:e]) * inv_cnt

    # ---------------- BN + softplus + linear + softplus + skip ----------------
    out = pallas_head(h2, params["bn_gamma"], params["bn_beta"],
                      *params["node_linear_2"], skip)            # (N, out_ch)
    return out


# ----------------------------------------------------------------------------
# main
# ----------------------------------------------------------------------------
if __name__ == "__main__":
    N, E = 12, 40
    IN_CH, OUT_CH, EDGE_DIM, NS, NV = 16, 32, 16, 16, 4

    key = jax.random.PRNGKey(0)
    k1, k2, k3, k4, k5, k6 = jax.random.split(key, 6)
    node_feature = jax.random.normal(k1, (N, IN_CH), jnp.float32)
    edge_vec = jax.random.normal(k2, (E, 3), jnp.float32)          # data.edge_attr
    edge_feature = jax.random.normal(k3, (E, EDGE_DIM), jnp.float32)
    edge_src = jax.random.randint(k4, (E,), 0, N)
    edge_dst = jax.random.randint(k5, (E,), 0, N)
    edge_index = jnp.stack([edge_src, edge_dst])

    params = init_params(k6, IN_CH, OUT_CH, EDGE_DIM, NS, NV)

    fwd = jax.jit(functools.partial(matformer_conv_equi, ns=NS, nv=NV))
    out = fwd(params, node_feature, edge_index, edge_feature, edge_vec)
    out = jax.block_until_ready(out)
    assert out.shape == (N, OUT_CH)
    assert bool(jnp.all(jnp.isfinite(out)))
    print("KERNEL_OK")
</pallas_src>

<mosaic_0001>
module attributes {stable_mosaic.version = 11 : i64} {
  func.func @linear_kernel(%arg0: i32, %arg1: memref<16x16xf32, #tpu.memory_space<vmem>>, %arg2: memref<16x48xf32, #tpu.memory_space<vmem>>, %arg3: memref<1x48xf32, #tpu.memory_space<vmem>>, %arg4: memref<16x48xf32, #tpu.memory_space<vmem>>) attributes {dimension_semantics = [#tpu.dimension_semantics<parallel>], iteration_bounds = array<i64: 1>, scalar_prefetch = 0 : i64, scratch_operands = 0 : i64, tpu.core_type = #tpu.core_type<tc>, window_params = [{transform_indices = @transform_0, window_bounds = array<i64: 16, 16>}, {pipeline_mode = #tpu.pipeline_mode<synchronous>, transform_indices = @transform_1, window_bounds = array<i64: 16, 48>}, {pipeline_mode = #tpu.pipeline_mode<synchronous>, transform_indices = @transform_2, window_bounds = array<i64: 1, 48>}, {transform_indices = @transform_3, window_bounds = array<i64: 16, 48>}]} {
    %c0 = arith.constant 0 : index
    %c0_0 = arith.constant 0 : index
    %0 = vector.load %arg1[%c0, %c0_0] : memref<16x16xf32, #tpu.memory_space<vmem>>, vector<16x16xf32>
    %c0_1 = arith.constant 0 : index
    %c0_2 = arith.constant 0 : index
    %1 = vector.load %arg2[%c0_1, %c0_2] : memref<16x48xf32, #tpu.memory_space<vmem>>, vector<16x48xf32>
    %cst = arith.constant dense<0.000000e+00> : vector<16x48xf32>
    %2 = tpu.matmul %0, %1, %cst {dimension_numbers = #tpu.dot_dimension_numbers<[1], [0], [0], [1], [0, 0, 1, 1], [], []>} : vector<16x16xf32>, vector<16x48xf32>, vector<16x48xf32> -> vector<16x48xf32>
    %c0_3 = arith.constant 0 : index
    %c0_4 = arith.constant 0 : index
    %3 = vector.load %arg3[%c0_3, %c0_4] : memref<1x48xf32, #tpu.memory_space<vmem>>, vector<1x48xf32>
    %4 = vector.broadcast %3 : vector<1x48xf32> to vector<16x48xf32>
    %5 = arith.addf %2, %4 : vector<16x48xf32>
    %c0_5 = arith.constant 0 : index
    %c0_6 = arith.constant 0 : index
    %6 = vector.load %arg4[%c0_5, %c0_6] : memref<16x48xf32, #tpu.memory_space<vmem>>, vector<16x48xf32>
    tpu.vector_store %arg4[%c0_5, %c0_6], %5 {strides = array<i32>} : memref<16x48xf32, #tpu.memory_space<vmem>>, vector<16x48xf32>,
    return
  }
  func.func @transform_0(%arg0: i32) -> (i32, i32) {
    %c0_i32 = arith.constant 0 : i32
    %c0_i32_0 = arith.constant 0 : i32
    return %arg0, %c0_i32 : i32, i32
  }
  func.func @transform_1(%arg0: i32) -> (i32, i32) {
    %c0_i32 = arith.constant 0 : i32
    %c0_i32_0 = arith.constant 0 : i32
    %c0_i32_1 = arith.constant 0 : i32
    return %c0_i32, %c0_i32_0 : i32, i32
  }
  func.func @transform_2(%arg0: i32) -> (i32, i32) {
    %c0_i32 = arith.constant 0 : i32
    %c0_i32_0 = arith.constant 0 : i32
    %c0_i32_1 = arith.constant 0 : i32
    return %c0_i32, %c0_i32_0 : i32, i32
  }
  func.func @transform_3(%arg0: i32) -> (i32, i32) {
    %c0_i32 = arith.constant 0 : i32
    %c0_i32_0 = arith.constant 0 : i32
    return %arg0, %c0_i32 : i32, i32
  }
}

module attributes {stable_mosaic.version = 11 : i64} {
  func.func @tp1_kernel(%arg0: i32, %arg1: memref<40x16xf32, #tpu.memory_space<vmem>>, %arg2: memref<40x3xf32, #tpu.memory_space<vmem>>, %arg3: memref<40x16xf32, #tpu.memory_space<vmem>>, %arg4: memref<16x16xf32, #tpu.memory_space<vmem>>, %arg5: memref<1x16xf32, #tpu.memory_space<vmem>>, %arg6: memref<16x384xf32, #tpu.memory_space<vmem>>, %arg7: memref<1x384xf32, #tpu.memory_space<vmem>>, %arg8: memref<16x384xf32, #tpu.memory_space<vmem>>, %arg9: memref<384x48xf32, #tpu.memory_space<vmem>>, %arg10: memref<40x48xf32, #tpu.memory_space<vmem>>) attributes {dimension_semantics = [#tpu.dimension_semantics<parallel>], iteration_bounds = array<i64: 1>, scalar_prefetch = 0 : i64, scratch_operands = 0 : i64, tpu.core_type = #tpu.core_type<tc>, window_params = [{transform_indices = @transform_0, window_bounds = array<i64: 40, 16>}, {transform_indices = @transform_1, window_bounds = array<i64: 40, 3>}, {transform_indices = @transform_2, window_bounds = array<i64: 40, 16>}, {pipeline_mode = #tpu.pipeline_mode<synchronous>, transform_indices = @transform_3, window_bounds = array<i64: 16, 16>}, {pipeline_mode = #tpu.pipeline_mode<synchronous>, transform_indices = @transform_4, window_bounds = array<i64: 1, 16>}, {pipeline_mode = #tpu.pipeline_mode<synchronous>, transform_indices = @transform_5, window_bounds = array<i64: 16, 384>}, {pipeline_mode = #tpu.pipeline_mode<synchronous>, transform_indices = @transform_6, window_bounds = array<i64: 1, 384>}, {pipeline_mode = #tpu.pipeline_mode<synchronous>, transform_indices = @transform_7, window_bounds = array<i64: 16, 384>}, {pipeline_mode = #tpu.pipeline_mode<synchronous>, transform_indices = @transform_8, window_bounds = array<i64: 384, 48>}, {transform_indices = @transform_9, window_bounds = array<i64: 40, 48>}]} {
    %c0 = arith.constant 0 : index
    %c0_0 = arith.constant 0 : index
    %0 = vector.load %arg3[%c0, %c0_0] : memref<40x16xf32, #tpu.memory_space<vmem>>, vector<40x16xf32>
    %c0_1 = arith.constant 0 : index
    %c0_2 = arith.constant 0 : index
    %1 = vector.load %arg4[%c0_1, %c0_2] : memref<16x16xf32, #tpu.memory_space<vmem>>, vector<16x16xf32>
    %cst = arith.constant dense<0.000000e+00> : vector<40x16xf32>
    %2 = tpu.matmul %0, %1, %cst {dimension_numbers = #tpu.dot_dimension_numbers<[1], [0], [0], [1], [0, 0, 1, 1], [], []>} : vector<40x16xf32>, vector<16x16xf32>, vector<40x16xf32> -> vector<40x16xf32>
    %c0_3 = arith.constant 0 : index
    %c0_4 = arith.constant 0 : index
    %3 = vector.load %arg5[%c0_3, %c0_4] : memref<1x16xf32, #tpu.memory_space<vmem>>, vector<1x16xf32>
    %4 = vector.broadcast %3 : vector<1x16xf32> to vector<40x16xf32>
    %5 = arith.addf %2, %4 : vector<40x16xf32>
    %cst_5 = arith.constant 2.000000e+01 : f32
    %6 = vector.broadcast %cst_5 : f32 to vector<40x16xf32>
    %7 = arith.cmpf ogt, %5, %6 : vector<40x16xf32>
    %cst_6 = arith.constant 2.000000e+01 : f32
    %8 = vector.broadcast %cst_6 : f32 to vector<40x16xf32>
    %9 = arith.minimumf %5, %8 : vector<40x16xf32>
    %10 = math.exp %9 : vector<40x16xf32>
    %11 = math.log1p %10 : vector<40x16xf32>
    %12 = arith.select %7, %5, %11 : vector<40x16xi1>, vector<40x16xf32>
    %c0_7 = arith.constant 0 : index
    %c0_8 = arith.constant 0 : index
    %13 = vector.load %arg6[%c0_7, %c0_8] : memref<16x384xf32, #tpu.memory_space<vmem>>, vector<16x384xf32>
    %cst_9 = arith.constant dense<0.000000e+00> : vector<40x384xf32>
    %14 = tpu.matmul %12, %13, %cst_9 {dimension_numbers = #tpu.dot_dimension_numbers<[1], [0], [0], [1], [0, 0, 1, 1], [], []>} : vector<40x16xf32>, vector<16x384xf32>, vector<40x384xf32> -> vector<40x384xf32>
    %c0_10 = arith.constant 0 : index
    %c0_11 = arith.constant 0 : index
    %15 = vector.load %arg7[%c0_10, %c0_11] : memref<1x384xf32, #tpu.memory_space<vmem>>, vector<1x384xf32>
    %16 = vector.broadcast %15 : vector<1x384xf32> to vector<40x384xf32>
    %17 = arith.addf %14, %16 : vector<40x384xf32>
    %c0_12 = arith.constant 0 : index
    %c0_13 = arith.constant 0 : index
    %18 = vector.load %arg1[%c0_12, %c0_13] : memref<40x16xf32, #tpu.memory_space<vmem>>, vector<40x16xf32>
    %c0_14 = arith.constant 0 : index
    %c0_15 = arith.constant 0 : index
    %19 = vector.load %arg8[%c0_14, %c0_15] : memref<16x384xf32, #tpu.memory_space<vmem>>, vector<16x384xf32>
    %cst_16 = arith.constant dense<0.000000e+00> : vector<40x384xf32>
    %20 = tpu.matmul %18, %19, %cst_16 {dimension_numbers = #tpu.dot_dimension_numbers<[1], [0], [0], [1], [0, 0, 1, 1], [], []>} : vector<40x16xf32>, vector<16x384xf32>, vector<40x384xf32> -> vector<40x384xf32>
    %21 = arith.mulf %20, %17 : vector<40x384xf32>
    %c0_17 = arith.constant 0 : index
    %c0_18 = arith.constant 0 : index
    %22 = vector.load %arg9[%c0_17, %c0_18] : memref<384x48xf32, #tpu.memory_space<vmem>>, vector<384x48xf32>
    %cst_19 = arith.constant dense<0.000000e+00> : vector<40x48xf32>
    %23 = tpu.matmul %21, %22, %cst_19 {dimension_numbers = #tpu.dot_dimension_numbers<[1], [0], [0], [1], [0, 0, 1, 1], [], []>} : vector<40x384xf32>, vector<384x48xf32>, vector<40x48xf32> -> vector<40x48xf32>
    %c0_20 = arith.constant 0 : index
    %c0_21 = arith.constant 0 : index
    %24 = vector.load %arg2[%c0_20, %c0_21] : memref<40x3xf32, #tpu.memory_space<vmem>>, vector<40x3xf32>
    %25 = arith.mulf %24, %24 : vector<40x3xf32>
    %cst_22 = arith.constant dense<0.000000e+00> : vector<40xf32>
    %26 = vector.multi_reduction <add>, %25, %cst_22 [1] : vector<40x3xf32> to vector<40xf32>
    %27 = vector.shape_cast %26 : vector<40xf32> to vector<40x1xf32>
    %28 = math.sqrt %27 : vector<40x1xf32>
    %cst_23 = arith.constant 9.99999996E-13 : f32
    %29 = vector.broadcast %cst_23 : f32 to vector<40x1xf32>
    %30 = arith.maximumf %28, %29 : vector<40x1xf32>
    %31 = vector.broadcast %30 : vector<40x1xf32> to vector<40x3xf32>
    %32 = arith.divf %24, %31 : vector<40x3xf32>
    %33 = vector.extract_strided_slice %32 {offsets = [0, 0], sizes = [40, 1], strides = [1, 1]} : vector<40x3xf32> to vector<40x1xf32>
    %34 = vector.extract_strided_slice %32 {offsets = [0, 1], sizes = [40, 1], strides = [1, 1]} : vector<40x3xf32> to vector<40x1xf32>
    %35 = vector.extract_strided_slice %32 {offsets = [0, 2], sizes = [40, 1], strides = [1, 1]} : vector<40x3xf32> to vector<40x1xf32>
    %cst_24 = arith.constant 1.73205078 : f32
    %36 = vector.broadcast %cst_24 : f32 to vector<40x3xf32>
    %37 = arith.mulf %36, %32 : vector<40x3xf32>
    %cst_25 = arith.constant 3.87298346 : f32
    %38 = vector.broadcast %cst_25 : f32 to vector<40x1xf32>
    %39 = arith.mulf %38, %33 : vector<40x1xf32>
    %40 = arith.mulf %39, %35 : vector<40x1xf32>
    %cst_26 = arith.constant 3.87298346 : f32
    %41 = vector.broadcast %cst_26 : f32 to vector<40x1xf32>
    %42 = arith.mulf %41, %33 : vector<40x1xf32>
    %43 = arith.mulf %42, %34 : vector<40x1xf32>
    %44 = arith.mulf %34, %34 : vector<40x1xf32>
    %45 = arith.mulf %33, %33 : vector<40x1xf32>
    %46 = arith.mulf %35, %35 : vector<40x1xf32>
    %47 = arith.addf %45, %46 : vector<40x1xf32>
    %cst_27 = arith.constant 5.000000e-01 : f32
    %48 = vector.broadcast %cst_27 : f32 to vector<40x1xf32>
    %49 = arith.mulf %48, %47 : vector<40x1xf32>
    %50 = arith.subf %44, %49 : vector<40x1xf32>
    %cst_28 = arith.constant 2.23606801 : f32
    %51 = vector.broadcast %cst_28 : f32 to vector<40x1xf32>
    %52 = arith.mulf %51, %50 : vector<40x1xf32>
    %cst_29 = arith.constant 3.87298346 : f32
    %53 = vector.broadcast %cst_29 : f32 to vector<40x1xf32>
    %54 = arith.mulf %53, %34 : vector<40x1xf32>
    %55 = arith.mulf %54, %35 : vector<40x1xf32>
    %56 = arith.mulf %35, %35 : vector<40x1xf32>
    %57 = arith.mulf %33, %33 : vector<40x1xf32>
    %58 = arith.subf %56, %57 : vector<40x1xf32>
    %cst_30 = arith.constant 1.93649173 : f32
    %59 = vector.broadcast %cst_30 : f32 to vector<40x1xf32>
    %60 = arith.mulf %59, %58 : vector<40x1xf32>
    %61 = tpu.concatenate %40, %43, %52, %55, %60 in 1 : vector<40x1xf32>, vector<40x1xf32>, vector<40x1xf32>, vector<40x1xf32>, vector<40x1xf32> -> vector<40x5xf32>
    %cst_31 = arith.constant 1.000000e+00 : f32
    %62 = vector.broadcast %cst_31 : f32 to vector<40x16xf32>
    %63 = tpu.concatenate %62, %37, %37, %37, %37, %61, %61, %61, %61 in 1 : vector<40x16xf32>, vector<40x3xf32>, vector<40x3xf32>, vector<40x3xf32>, vector<40x3xf32>, vector<40x5xf32>, vector<40x5xf32>, vector<40x5xf32>, vector<40x5xf32> -> vector<40x48xf32>
    %cst_32 = arith.constant 2.500000e-01 : f32
    %64 = vector.broadcast %cst_32 : f32 to vector<40x48xf32>
    %65 = arith.mulf %64, %23 : vector<40x48xf32>
    %66 = arith.mulf %65, %63 : vector<40x48xf32>
    %c0_33 = arith.constant 0 : index
    %c0_34 = arith.constant 0 : index
    %67 = vector.load %arg10[%c0_33, %c0_34] : memref<40x48xf32, #tpu.memory_space<vmem>>, vector<40x48xf32>
    tpu.vector_store %arg10[%c0_33, %c0_34], %66 {strides = array<i32>} : memref<40x48xf32, #tpu.memory_space<vmem>>, vector<40x48xf32>,
    return
  }
  func.func @transform_0(%arg0: i32) -> (i32, i32) {
    %c0_i32 = arith.constant 0 : i32
    %c0_i32_0 = arith.constant 0 : i32
    return %arg0, %c0_i32 : i32, i32
  }
  func.func @transform_1(%arg0: i32) -> (i32, i32) {
    %c0_i32 = arith.constant 0 : i32
    %c0_i32_0 = arith.constant 0 : i32
    return %arg0, %c0_i32 : i32, i32
  }
  func.func @transform_2(%arg0: i32) -> (i32, i32) {
    %c0_i32 = arith.constant 0 : i32
    %c0_i32_0 = arith.constant 0 : i32
    return %arg0, %c0_i32 : i32, i32
  }
  func.func @transform_3(%arg0: i32) -> (i32, i32) {
    %c0_i32 = arith.constant 0 : i32
    %c0_i32_0 = arith.constant 0 : i32
    %c0_i32_1 = arith.constant 0 : i32
    return %c0_i32, %c0_i32_0 : i32, i32
  }
  func.func @transform_4(%arg0: i32) -> (i32, i32) {
    %c0_i32 = arith.constant 0 : i32
    %c0_i32_0 = arith.constant 0 : i32
    %c0_i32_1 = arith.constant 0 : i32
    return %c0_i32, %c0_i32_0 : i32, i32
  }
  func.func @transform_5(%arg0: i32) -> (i32, i32) {
    %c0_i32 = arith.constant 0 : i32
    %c0_i32_0 = arith.constant 0 : i32
    %c0_i32_1 = arith.constant 0 : i32
    return %c0_i32, %c0_i32_0 : i32, i32
  }
  func.func @transform_6(%arg0: i32) -> (i32, i32) {
    %c0_i32 = arith.constant 0 : i32
    %c0_i32_0 = arith.constant 0 : i32
    %c0_i32_1 = arith.constant 0 : i32
    return %c0_i32, %c0_i32_0 : i32, i32
  }
  func.func @transform_7(%arg0: i32) -> (i32, i32) {
    %c0_i32 = arith.constant 0 : i32
    %c0_i32_0 = arith.constant 0 : i32
    %c0_i32_1 = arith.constant 0 : i32
    return %c0_i32, %c0_i32_0 : i32, i32
  }
  func.func @transform_8(%arg0: i32) -> (i32, i32) {
    %c0_i32 = arith.constant 0 : i32
    %c0_i32_0 = arith.constant 0 : i32
    %c0_i32_1 = arith.constant 0 : i32
    return %c0_i32, %c0_i32_0 : i32, i32
  }
  func.func @transform_9(%arg0: i32) -> (i32, i32) {
    %c0_i32 = arith.constant 0 : i32
    %c0_i32_0 = arith.constant 0 : i32
    return %arg0, %c0_i32 : i32, i32
  }
}

module attributes {stable_mosaic.version = 11 : i64} {
  func.func @tp2_kernel(%arg0: i32, %arg1: memref<40x48xf32, #tpu.memory_space<vmem>>, %arg2: memref<40x3xf32, #tpu.memory_space<vmem>>, %arg3: memref<40x16xf32, #tpu.memory_space<vmem>>, %arg4: memref<16x16xf32, #tpu.memory_space<vmem>>, %arg5: memref<1x16xf32, #tpu.memory_space<vmem>>, %arg6: memref<16x384xf32, #tpu.memory_space<vmem>>, %arg7: memref<1x384xf32, #tpu.memory_space<vmem>>, %arg8: memref<48x384xf32, #tpu.memory_space<vmem>>, %arg9: memref<384x16xf32, #tpu.memory_space<vmem>>, %arg10: memref<40x16xf32, #tpu.memory_space<vmem>>) attributes {dimension_semantics = [#tpu.dimension_semantics<parallel>], iteration_bounds = array<i64: 1>, scalar_prefetch = 0 : i64, scratch_operands = 0 : i64, tpu.core_type = #tpu.core_type<tc>, window_params = [{transform_indices = @transform_0, window_bounds = array<i64: 40, 48>}, {transform_indices = @transform_1, window_bounds = array<i64: 40, 3>}, {transform_indices = @transform_2, window_bounds = array<i64: 40, 16>}, {pipeline_mode = #tpu.pipeline_mode<synchronous>, transform_indices = @transform_3, window_bounds = array<i64: 16, 16>}, {pipeline_mode = #tpu.pipeline_mode<synchronous>, transform_indices = @transform_4, window_bounds = array<i64: 1, 16>}, {pipeline_mode = #tpu.pipeline_mode<synchronous>, transform_indices = @transform_5, window_bounds = array<i64: 16, 384>}, {pipeline_mode = #tpu.pipeline_mode<synchronous>, transform_indices = @transform_6, window_bounds = array<i64: 1, 384>}, {pipeline_mode = #tpu.pipeline_mode<synchronous>, transform_indices = @transform_7, window_bounds = array<i64: 48, 384>}, {pipeline_mode = #tpu.pipeline_mode<synchronous>, transform_indices = @transform_8, window_bounds = array<i64: 384, 16>}, {transform_indices = @transform_9, window_bounds = array<i64: 40, 16>}]} {
    %c0 = arith.constant 0 : index
    %c0_0 = arith.constant 0 : index
    %0 = vector.load %arg3[%c0, %c0_0] : memref<40x16xf32, #tpu.memory_space<vmem>>, vector<40x16xf32>
    %c0_1 = arith.constant 0 : index
    %c0_2 = arith.constant 0 : index
    %1 = vector.load %arg4[%c0_1, %c0_2] : memref<16x16xf32, #tpu.memory_space<vmem>>, vector<16x16xf32>
    %cst = arith.constant dense<0.000000e+00> : vector<40x16xf32>
    %2 = tpu.matmul %0, %1, %cst {dimension_numbers = #tpu.dot_dimension_numbers<[1], [0], [0], [1], [0, 0, 1, 1], [], []>} : vector<40x16xf32>, vector<16x16xf32>, vector<40x16xf32> -> vector<40x16xf32>
    %c0_3 = arith.constant 0 : index
    %c0_4 = arith.constant 0 : index
    %3 = vector.load %arg5[%c0_3, %c0_4] : memref<1x16xf32, #tpu.memory_space<vmem>>, vector<1x16xf32>
    %4 = vector.broadcast %3 : vector<1x16xf32> to vector<40x16xf32>
    %5 = arith.addf %2, %4 : vector<40x16xf32>
    %cst_5 = arith.constant 2.000000e+01 : f32
    %6 = vector.broadcast %cst_5 : f32 to vector<40x16xf32>
    %7 = arith.cmpf ogt, %5, %6 : vector<40x16xf32>
    %cst_6 = arith.constant 2.000000e+01 : f32
    %8 = vector.broadcast %cst_6 : f32 to vector<40x16xf32>
    %9 = arith.minimumf %5, %8 : vector<40x16xf32>
    %10 = math.exp %9 : vector<40x16xf32>
    %11 = math.log1p %10 : vector<40x16xf32>
    %12 = arith.select %7, %5, %11 : vector<40x16xi1>, vector<40x16xf32>
    %c0_7 = arith.constant 0 : index
    %c0_8 = arith.constant 0 : index
    %13 = vector.load %arg6[%c0_7, %c0_8] : memref<16x384xf32, #tpu.memory_space<vmem>>, vector<16x384xf32>
    %cst_9 = arith.constant dense<0.000000e+00> : vector<40x384xf32>
    %14 = tpu.matmul %12, %13, %cst_9 {dimension_numbers = #tpu.dot_dimension_numbers<[1], [0], [0], [1], [0, 0, 1, 1], [], []>} : vector<40x16xf32>, vector<16x384xf32>, vector<40x384xf32> -> vector<40x384xf32>
    %c0_10 = arith.constant 0 : index
    %c0_11 = arith.constant 0 : index
    %15 = vector.load %arg7[%c0_10, %c0_11] : memref<1x384xf32, #tpu.memory_space<vmem>>, vector<1x384xf32>
    %16 = vector.broadcast %15 : vector<1x384xf32> to vector<40x384xf32>
    %17 = arith.addf %14, %16 : vector<40x384xf32>
    %c0_12 = arith.constant 0 : index
    %c0_13 = arith.constant 0 : index
    %18 = vector.load %arg2[%c0_12, %c0_13] : memref<40x3xf32, #tpu.memory_space<vmem>>, vector<40x3xf32>
    %19 = arith.mulf %18, %18 : vector<40x3xf32>
    %cst_14 = arith.constant dense<0.000000e+00> : vector<40xf32>
    %20 = vector.multi_reduction <add>, %19, %cst_14 [1] : vector<40x3xf32> to vector<40xf32>
    %21 = vector.shape_cast %20 : vector<40xf32> to vector<40x1xf32>
    %22 = math.sqrt %21 : vector<40x1xf32>
    %cst_15 = arith.constant 9.99999996E-13 : f32
    %23 = vector.broadcast %cst_15 : f32 to vector<40x1xf32>
    %24 = arith.maximumf %22, %23 : vector<40x1xf32>
    %25 = vector.broadcast %24 : vector<40x1xf32> to vector<40x3xf32>
    %26 = arith.divf %18, %25 : vector<40x3xf32>
    %27 = vector.extract_strided_slice %26 {offsets = [0, 0], sizes = [40, 1], strides = [1, 1]} : vector<40x3xf32> to vector<40x1xf32>
    %28 = vector.extract_strided_slice %26 {offsets = [0, 1], sizes = [40, 1], strides = [1, 1]} : vector<40x3xf32> to vector<40x1xf32>
    %29 = vector.extract_strided_slice %26 {offsets = [0, 2], sizes = [40, 1], strides = [1, 1]} : vector<40x3xf32> to vector<40x1xf32>
    %cst_16 = arith.constant 1.73205078 : f32
    %30 = vector.broadcast %cst_16 : f32 to vector<40x3xf32>
    %31 = arith.mulf %30, %26 : vector<40x3xf32>
    %cst_17 = arith.constant 3.87298346 : f32
    %32 = vector.broadcast %cst_17 : f32 to vector<40x1xf32>
    %33 = arith.mulf %32, %27 : vector<40x1xf32>
    %34 = arith.mulf %33, %29 : vector<40x1xf32>
    %cst_18 = arith.constant 3.87298346 : f32
    %35 = vector.broadcast %cst_18 : f32 to vector<40x1xf32>
    %36 = arith.mulf %35, %27 : vector<40x1xf32>
    %37 = arith.mulf %36, %28 : vector<40x1xf32>
    %38 = arith.mulf %28, %28 : vector<40x1xf32>
    %39 = arith.mulf %27, %27 : vector<40x1xf32>
    %40 = arith.mulf %29, %29 : vector<40x1xf32>
    %41 = arith.addf %39, %40 : vector<40x1xf32>
    %cst_19 = arith.constant 5.000000e-01 : f32
    %42 = vector.broadcast %cst_19 : f32 to vector<40x1xf32>
    %43 = arith.mulf %42, %41 : vector<40x1xf32>
    %44 = arith.subf %38, %43 : vector<40x1xf32>
    %cst_20 = arith.constant 2.23606801 : f32
    %45 = vector.broadcast %cst_20 : f32 to vector<40x1xf32>
    %46 = arith.mulf %45, %44 : vector<40x1xf32>
    %cst_21 = arith.constant 3.87298346 : f32
    %47 = vector.broadcast %cst_21 : f32 to vector<40x1xf32>
    %48 = arith.mulf %47, %28 : vector<40x1xf32>
    %49 = arith.mulf %48, %29 : vector<40x1xf32>
    %50 = arith.mulf %29, %29 : vector<40x1xf32>
    %51 = arith.mulf %27, %27 : vector<40x1xf32>
    %52 = arith.subf %50, %51 : vector<40x1xf32>
    %cst_22 = arith.constant 1.93649173 : f32
    %53 = vector.broadcast %cst_22 : f32 to vector<40x1xf32>
    %54 = arith.mulf %53, %52 : vector<40x1xf32>
    %55 = tpu.concatenate %34, %37, %46, %49, %54 in 1 : vector<40x1xf32>, vector<40x1xf32>, vector<40x1xf32>, vector<40x1xf32>, vector<40x1xf32> -> vector<40x5xf32>
    %cst_23 = arith.constant 1.000000e+00 : f32
    %56 = vector.broadcast %cst_23 : f32 to vector<40x16xf32>
    %57 = tpu.concatenate %56, %31, %31, %31, %31, %55, %55, %55, %55 in 1 : vector<40x16xf32>, vector<40x3xf32>, vector<40x3xf32>, vector<40x3xf32>, vector<40x3xf32>, vector<40x5xf32>, vector<40x5xf32>, vector<40x5xf32>, vector<40x5xf32> -> vector<40x48xf32>
    %c0_24 = arith.constant 0 : index
    %c0_25 = arith.constant 0 : index
    %58 = vector.load %arg1[%c0_24, %c0_25] : memref<40x48xf32, #tpu.memory_space<vmem>>, vector<40x48xf32>
    %59 = arith.mulf %58, %57 : vector<40x48xf32>
    %c0_26 = arith.constant 0 : index
    %c0_27 = arith.constant 0 : index
    %60 = vector.load %arg8[%c0_26, %c0_27] : memref<48x384xf32, #tpu.memory_space<vmem>>, vector<48x384xf32>
    %cst_28 = arith.constant dense<0.000000e+00> : vector<40x384xf32>
    %61 = tpu.matmul %59, %60, %cst_28 {dimension_numbers = #tpu.dot_dimension_numbers<[1], [0], [0], [1], [0, 0, 1, 1], [], []>} : vector<40x48xf32>, vector<48x384xf32>, vector<40x384xf32> -> vector<40x384xf32>
    %62 = arith.mulf %61, %17 : vector<40x384xf32>
    %c0_29 = arith.constant 0 : index
    %c0_30 = arith.constant 0 : index
    %63 = vector.load %arg9[%c0_29, %c0_30] : memref<384x16xf32, #tpu.memory_space<vmem>>, vector<384x16xf32>
    %cst_31 = arith.constant dense<0.000000e+00> : vector<40x16xf32>
    %64 = tpu.matmul %62, %63, %cst_31 {dimension_numbers = #tpu.dot_dimension_numbers<[1], [0], [0], [1], [0, 0, 1, 1], [], []>} : vector<40x384xf32>, vector<384x16xf32>, vector<40x16xf32> -> vector<40x16xf32>
    %c0_32 = arith.constant 0 : index
    %c0_33 = arith.constant 0 : index
    %65 = vector.load %arg10[%c0_32, %c0_33] : memref<40x16xf32, #tpu.memory_space<vmem>>, vector<40x16xf32>
    tpu.vector_store %arg10[%c0_32, %c0_33], %64 {strides = array<i32>} : memref<40x16xf32, #tpu.memory_space<vmem>>, vector<40x16xf32>,
    return
  }
  func.func @transform_0(%arg0: i32) -> (i32, i32) {
    %c0_i32 = arith.constant 0 : i32
    %c0_i32_0 = arith.constant 0 : i32
    return %arg0, %c0_i32 : i32, i32
  }
  func.func @transform_1(%arg0: i32) -> (i32, i32) {
    %c0_i32 = arith.constant 0 : i32
    %c0_i32_0 = arith.constant 0 : i32
    return %arg0, %c0_i32 : i32, i32
  }
  func.func @transform_2(%arg0: i32) -> (i32, i32) {
    %c0_i32 = arith.constant 0 : i32
    %c0_i32_0 = arith.constant 0 : i32
    return %arg0, %c0_i32 : i32, i32
  }
  func.func @transform_3(%arg0: i32) -> (i32, i32) {
    %c0_i32 = arith.constant 0 : i32
    %c0_i32_0 = arith.constant 0 : i32
    %c0_i32_1 = arith.constant 0 : i32
    return %c0_i32, %c0_i32_0 : i32, i32
  }
  func.func @transform_4(%arg0: i32) -> (i32, i32) {
    %c0_i32 = arith.constant 0 : i32
    %c0_i32_0 = arith.constant 0 : i32
    %c0_i32_1 = arith.constant 0 : i32
    return %c0_i32, %c0_i32_0 : i32, i32
  }
  func.func @transform_5(%arg0: i32) -> (i32, i32) {
    %c0_i32 = arith.constant 0 : i32
    %c0_i32_0 = arith.constant 0 : i32
    %c0_i32_1 = arith.constant 0 : i32
    return %c0_i32, %c0_i32_0 : i32, i32
  }
  func.func @transform_6(%arg0: i32) -> (i32, i32) {
    %c0_i32 = arith.constant 0 : i32
    %c0_i32_0 = arith.constant 0 : i32
    %c0_i32_1 = arith.constant 0 : i32
    return %c0_i32, %c0_i32_0 : i32, i32
  }
  func.func @transform_7(%arg0: i32) -> (i32, i32) {
    %c0_i32 = arith.constant 0 : i32
    %c0_i32_0 = arith.constant 0 : i32
    %c0_i32_1 = arith.constant 0 : i32
    return %c0_i32, %c0_i32_0 : i32, i32
  }
  func.func @transform_8(%arg0: i32) -> (i32, i32) {
    %c0_i32 = arith.constant 0 : i32
    %c0_i32_0 = arith.constant 0 : i32
    %c0_i32_1 = arith.constant 0 : i32
    return %c0_i32, %c0_i32_0 : i32, i32
  }
  func.func @transform_9(%arg0: i32) -> (i32, i32) {
    %c0_i32 = arith.constant 0 : i32
    %c0_i32_0 = arith.constant 0 : i32
    return %arg0, %c0_i32 : i32, i32
  }
}

module attributes {stable_mosaic.version = 11 : i64} {
  func.func @head_kernel(%arg0: i32, %arg1: memref<16x16xf32, #tpu.memory_space<vmem>>, %arg2: memref<1x16xf32, #tpu.memory_space<vmem>>, %arg3: memref<1x16xf32, #tpu.memory_space<vmem>>, %arg4: memref<1x16xf32, #tpu.memory_space<vmem>>, %arg5: memref<1x16xf32, #tpu.memory_space<vmem>>, %arg6: memref<16x32xf32, #tpu.memory_space<vmem>>, %arg7: memref<1x32xf32, #tpu.memory_space<vmem>>, %arg8: memref<16x32xf32, #tpu.memory_space<vmem>>, %arg9: memref<16x32xf32, #tpu.memory_space<vmem>>) attributes {dimension_semantics = [#tpu.dimension_semantics<parallel>], iteration_bounds = array<i64: 1>, scalar_prefetch = 0 : i64, scratch_operands = 0 : i64, tpu.core_type = #tpu.core_type<tc>, window_params = [{transform_indices = @transform_0, window_bounds = array<i64: 16, 16>}, {pipeline_mode = #tpu.pipeline_mode<synchronous>, transform_indices = @transform_1, window_bounds = array<i64: 1, 16>}, {pipeline_mode = #tpu.pipeline_mode<synchronous>, transform_indices = @transform_2, window_bounds = array<i64: 1, 16>}, {pipeline_mode = #tpu.pipeline_mode<synchronous>, transform_indices = @transform_3, window_bounds = array<i64: 1, 16>}, {pipeline_mode = #tpu.pipeline_mode<synchronous>, transform_indices = @transform_4, window_bounds = array<i64: 1, 16>}, {pipeline_mode = #tpu.pipeline_mode<synchronous>, transform_indices = @transform_5, window_bounds = array<i64: 16, 32>}, {pipeline_mode = #tpu.pipeline_mode<synchronous>, transform_indices = @transform_6, window_bounds = array<i64: 1, 32>}, {transform_indices = @transform_7, window_bounds = array<i64: 16, 32>}, {transform_indices = @transform_8, window_bounds = array<i64: 16, 32>}]} {
    %c0 = arith.constant 0 : index
    %c0_0 = arith.constant 0 : index
    %0 = vector.load %arg1[%c0, %c0_0] : memref<16x16xf32, #tpu.memory_space<vmem>>, vector<16x16xf32>
    %c0_1 = arith.constant 0 : index
    %c0_2 = arith.constant 0 : index
    %1 = vector.load %arg2[%c0_1, %c0_2] : memref<1x16xf32, #tpu.memory_space<vmem>>, vector<1x16xf32>
    %2 = vector.broadcast %1 : vector<1x16xf32> to vector<16x16xf32>
    %3 = arith.subf %0, %2 : vector<16x16xf32>
    %c0_3 = arith.constant 0 : index
    %c0_4 = arith.constant 0 : index
    %4 = vector.load %arg3[%c0_3, %c0_4] : memref<1x16xf32, #tpu.memory_space<vmem>>, vector<1x16xf32>
    %5 = vector.broadcast %4 : vector<1x16xf32> to vector<16x16xf32>
    %6 = arith.mulf %3, %5 : vector<16x16xf32>
    %c0_5 = arith.constant 0 : index
    %c0_6 = arith.constant 0 : index
    %7 = vector.load %arg4[%c0_5, %c0_6] : memref<1x16xf32, #tpu.memory_space<vmem>>, vector<1x16xf32>
    %8 = vector.broadcast %7 : vector<1x16xf32> to vector<16x16xf32>
    %9 = arith.mulf %6, %8 : vector<16x16xf32>
    %c0_7 = arith.constant 0 : index
    %c0_8 = arith.constant 0 : index
    %10 = vector.load %arg5[%c0_7, %c0_8] : memref<1x16xf32, #tpu.memory_space<vmem>>, vector<1x16xf32>
    %11 = vector.broadcast %10 : vector<1x16xf32> to vector<16x16xf32>
    %12 = arith.addf %9, %11 : vector<16x16xf32>
    %cst = arith.constant 2.000000e+01 : f32
    %13 = vector.broadcast %cst : f32 to vector<16x16xf32>
    %14 = arith.cmpf ogt, %12, %13 : vector<16x16xf32>
    %cst_9 = arith.constant 2.000000e+01 : f32
    %15 = vector.broadcast %cst_9 : f32 to vector<16x16xf32>
    %16 = arith.minimumf %12, %15 : vector<16x16xf32>
    %17 = math.exp %16 : vector<16x16xf32>
    %18 = math.log1p %17 : vector<16x16xf32>
    %19 = arith.select %14, %12, %18 : vector<16x16xi1>, vector<16x16xf32>
    %c0_10 = arith.constant 0 : index
    %c0_11 = arith.constant 0 : index
    %20 = vector.load %arg6[%c0_10, %c0_11] : memref<16x32xf32, #tpu.memory_space<vmem>>, vector<16x32xf32>
    %cst_12 = arith.constant dense<0.000000e+00> : vector<16x32xf32>
    %21 = tpu.matmul %19, %20, %cst_12 {dimension_numbers = #tpu.dot_dimension_numbers<[1], [0], [0], [1], [0, 0, 1, 1], [], []>} : vector<16x16xf32>, vector<16x32xf32>, vector<16x32xf32> -> vector<16x32xf32>
    %c0_13 = arith.constant 0 : index
    %c0_14 = arith.constant 0 : index
    %22 = vector.load %arg7[%c0_13, %c0_14] : memref<1x32xf32, #tpu.memory_space<vmem>>, vector<1x32xf32>
    %23 = vector.broadcast %22 : vector<1x32xf32> to vector<16x32xf32>
    %24 = arith.addf %21, %23 : vector<16x32xf32>
    %cst_15 = arith.constant 2.000000e+01 : f32
    %25 = vector.broadcast %cst_15 : f32 to vector<16x32xf32>
    %26 = arith.cmpf ogt, %24, %25 : vector<16x32xf32>
    %cst_16 = arith.constant 2.000000e+01 : f32
    %27 = vector.broadcast %cst_16 : f32 to vector<16x32xf32>
    %28 = arith.minimumf %24, %27 : vector<16x32xf32>
    %29 = math.exp %28 : vector<16x32xf32>
    %30 = math.log1p %29 : vector<16x32xf32>
    %31 = arith.select %26, %24, %30 : vector<16x32xi1>, vector<16x32xf32>
    %c0_17 = arith.constant 0 : index
    %c0_18 = arith.constant 0 : index
    %32 = vector.load %arg8[%c0_17, %c0_18] : memref<16x32xf32, #tpu.memory_space<vmem>>, vector<16x32xf32>
    %33 = arith.addf %31, %32 : vector<16x32xf32>
    %c0_19 = arith.constant 0 : index
    %c0_20 = arith.constant 0 : index
    %34 = vector.load %arg9[%c0_19, %c0_20] : memref<16x32xf32, #tpu.memory_space<vmem>>, vector<16x32xf32>
    tpu.vector_store %arg9[%c0_19, %c0_20], %33 {strides = array<i32>} : memref<16x32xf32, #tpu.memory_space<vmem>>, vector<16x32xf32>,
    return
  }
  func.func @transform_0(%arg0: i32) -> (i32, i32) {
    %c0_i32 = arith.constant 0 : i32
    %c0_i32_0 = arith.constant 0 : i32
    return %arg0, %c0_i32 : i32, i32
  }
  func.func @transform_1(%arg0: i32) -> (i32, i32) {
    %c0_i32 = arith.constant 0 : i32
    %c0_i32_0 = arith.constant 0 : i32
    %c0_i32_1 = arith.constant 0 : i32
    return %c0_i32, %c0_i32_0 : i32, i32
  }
  func.func @transform_2(%arg0: i32) -> (i32, i32) {
    %c0_i32 = arith.constant 0 : i32
    %c0_i32_0 = arith.constant 0 : i32
    %c0_i32_1 = arith.constant 0 : i32
    return %c0_i32, %c0_i32_0 : i32, i32
  }
  func.func @transform_3(%arg0: i32) -> (i32, i32) {
    %c0_i32 = arith.constant 0 : i32
    %c0_i32_0 = arith.constant 0 : i32
    %c0_i32_1 = arith.constant 0 : i32
    return %c0_i32, %c0_i32_0 : i32, i32
  }
  func.func @transform_4(%arg0: i32) -> (i32, i32) {
    %c0_i32 = arith.constant 0 : i32
    %c0_i32_0 = arith.constant 0 : i32
    %c0_i32_1 = arith.constant 0 : i32
    return %c0_i32, %c0_i32_0 : i32, i32
  }
  func.func @transform_5(%arg0: i32) -> (i32, i32) {
    %c0_i32 = arith.constant 0 : i32
    %c0_i32_0 = arith.constant 0 : i32
    %c0_i32_1 = arith.constant 0 : i32
    return %c0_i32, %c0_i32_0 : i32, i32
  }
  func.func @transform_6(%arg0: i32) -> (i32, i32) {
    %c0_i32 = arith.constant 0 : i32
    %c0_i32_0 = arith.constant 0 : i32
    %c0_i32_1 = arith.constant 0 : i32
    return %c0_i32, %c0_i32_0 : i32, i32
  }
  func.func @transform_7(%arg0: i32) -> (i32, i32) {
    %c0_i32 = arith.constant 0 : i32
    %c0_i32_0 = arith.constant 0 : i32
    return %arg0, %c0_i32 : i32, i32
  }
  func.func @transform_8(%arg0: i32) -> (i32, i32) {
    %c0_i32 = arith.constant 0 : i32
    %c0_i32_0 = arith.constant 0 : i32
    return %arg0, %c0_i32 : i32, i32
  }
}

</mosaic_0001>

<bundles_post_ra>
// kernel: matformer_conv_equi.4
= control target key start
LH: loop header
LB: loop body
LE: loop exit
PB: predicated region body
PF: predicated region fallthrough
CT: control target
= control target key end

     0   :  { %vm22_vm0 = vcmask 130048   ;;  %vm52_vm1 = vcmask 392192   ;;  %s105_s1 = inlined_call_operand.vmem [shape: f32[16,48], index: 1, kind: input, shape index: {}]   ;;  %s106_s0 = inlined_call_operand.vmem [shape: f32[16,16], index: 0, kind: input, shape index: {}]   ;;  %s107_s2 = inlined_call_operand.vmem [shape: f32[1,48], index: 2, kind: input, shape index: {}]   ;;  %s108_s3 = inlined_call_operand.vmem [shape: f32[16,48], index: 3, kind: output, shape index: {}]  }
   0x1   :  { %v17_v0 = vld [vmem:[%s105_s1 + $0x8] sm:$0xff]  ;;  %v16_v1 = vld [vmem:[%s105_s1] sm:$0xff] }
   0x2   :  { %43 = vmatpush.msra.mxu0 %v17_v0  ;;  %61 = vmatpush.msra.mxu1 %v17_v0  ;;  %v14_v2 = vld [vmem:[%s106_s0] sm:$0xff]  ;;  %v15_v3 = vld [vmem:[%s106_s0 + $0x8] sm:$0xff] }
   0x3   :  { %v63_v4 = vld [vmem:[%s107_s2] ss:$0 sm:$0xff] }
   0x4   :  { %44 = vmatpush.msra.mxu0 %v16_v1  ;;  %62 = vmatpush.msra.mxu1 %v16_v1 }
   0x5   :  { %59 = vmatmul.msk.f32.vlgmr.msra.gmra.mxu0 %vm22_vm0, %v14_v2  ;;  %60 = vmatmul.msk.f32.vlgmr.msra.gmra.mxu1 %vm22_vm0, %v15_v3 }
  0x82   :  { %v46_v5 = vpop.f32.mrf.mxu0  ;;  %v49_v6 = vpop.f32.mrf.mxu1 }
  0x83   :  { %v47_v7 = vadd.f32 %v63_v4, %v46_v5  ;;  %v50_v8 = vadd.f32 %v63_v4, %v49_v6 }
  0x85   :  { %53 = vst.msk [vmem:[%s108_s3] sm:$0xff] %vm52_vm1, %v47_v7 }
  0x86   :  { %54 = vst.msk [vmem:[%s108_s3 + $0x8] sm:$0xff] %vm52_vm1, %v50_v8 }

// kernel: matformer_conv_equi.5
= control target key start
LH: loop header
LB: loop body
LE: loop exit
PB: predicated region body
PF: predicated region fallthrough
CT: control target
= control target key end

     0   :  { %vm577_vm0 = vcmask 23552   ;;  %vm43_vm1 = vcmask 130048   ;;  %s1266_s10 = smov 127   ;;  %s1267_s11 = smov 2   ;;  %s2130_s1 = inlined_call_operand.vmem [shape: f32[40,3], index: 1, kind: input, shape index: {}]   ;;  %s2131_s3 = inlined_call_operand.vmem [shape: f32[16,16], index: 3, kind: input, shape index: {}]   ;;  %s2132_s2 = inlined_call_operand.vmem [shape: f32[40,16], index: 2, kind: input, shape index: {}]   ;;  %s2133_s4 = inlined_call_operand.vmem [shape: f32[1,16], index: 4, kind: input, shape index: {}]   ;;  %s2134_s5 = inlined_call_operand.vmem [shape: f32[16,384], index: 5, kind: input, shape index: {}]   ;;  %s2135_s7 = inlined_call_operand.vmem [shape: f32[16,384], index: 7, kind: input, shape index: {}]   ;;  %s2136_s0 = inlined_call_operand.vmem [shape: f32[40,16], index: 0, kind: input, shape index: {}]   ;;  %s2137_s8 = inlined_call_operand.vmem [shape: f32[384,48], index: 8, kind: input, shape index: {}]   ;;  %s2138_s6 = inlined_call_operand.vmem [shape: f32[1,384], index: 6, kind: input, shape index: {}]   ;;  %s2139_s9 = inlined_call_operand.vmem [shape: f32[40,48], index: 9, kind: output, shape index: {}]  }
   0x1   :  { %v1330_v0 = vld [vmem:[%s2130_s1 + $0x20] sm:$0xff]  ;;  %v1335_v1 = vld [vmem:[%s2130_s1 + $0x10] sm:$0xff]  ;;  %v1351_v6 = vld [vmem:[%s2130_s1 + $0x18] sm:$0xff]  ;;  %s1268_s12 = smov 16   ;;  %s1269_s13 = smov 19  }
   0x2   :  { %v1340_v2 = vld [vmem:[%s2130_s1] sm:$0xff]  ;;  %v576_v3 = vmul.f32 %v1330_v0, %v1330_v0  ;;  %v574_v4 = vmul.f32 %v1335_v1, %v1335_v1  ;;  %v1359_v10 = vld [vmem:[%s2130_s1 + $0x8] sm:$0xff]  ;;  %v575_v11 = vmul.f32 %v1351_v6, %v1351_v6  ;;  %v34_v59 = vld [vmem:[%s2132_s2 + $0x10] sm:$0xff]  ;;  %s1270_s14 = smov 22   ;;  %s1271_s15 = smov 25  }
   0x3   :  { %v572_v5 = vmul.f32 %v1340_v2, %v1340_v2  ;;  %v573_v12 = vmul.f32 %v1359_v10, %v1359_v10  ;;  %v38_v18 = vld [vmem:[%s2131_s3 + $0x8] sm:$0xff]  ;;  %v37_v19 = vld [vmem:[%s2131_s3] sm:$0xff]  ;;  %v35_v60 = vld [vmem:[%s2132_s2 + $0x18] sm:$0xff]  ;;  %s1275_s17 = smov 38   ;;  %s1276_s18 = smov 43  }
   0x4   :  { %v590_v7 = vsel %vm577_vm0, %v576_v3, 0.0  ;;  %v584_v8 = vsel %vm577_vm0, %v574_v4, 0.0  ;;  %v587_v13 = vsel %vm577_vm0, %v575_v11, 0.0  ;;  %73 = vmatpush.msra.mxu0 %v38_v18  ;;  %v32_v20 = vld [vmem:[%s2132_s2] sm:$0xff]  ;;  %1208 = vmatpush.msra.mxu2 %v38_v18  ;;  %v33_v34 = vld [vmem:[%s2132_s2 + $0x8] sm:$0xff] }
   0x5   :  { %v578_v9 = vsel %vm577_vm0, %v572_v5, 0.0  ;;  %591 = vadd.xlane.f32.xlu2 %v590_v7  ;;  %585 = vadd.xlane.f32.xlu1 %v584_v8  ;;  %v581_v14 = vsel %vm577_vm0, %v573_v12, 0.0 }
   0x6   :  { %579 = vadd.xlane.f32.xlu0 %v578_v9  ;;  %74 = vmatpush.msra.mxu0 %v37_v19 }
   0x7   :  { %1209 = vmatpush.msra.mxu2 %v37_v19  ;;  %1173 = vmatmul.msk.f32.vlgmr.msra.gmra.mxu0 %vm43_vm1, %v32_v20  ;;  %v36_v19 = vld [vmem:[%s2132_s2 + $0x20] sm:$0xff]  ;;  %s1265_s2 = smov 126  }
   0x8   :  { %1176 = vmatmul.msk.f32.vlgmr.msra.gmra.mxu2 %vm43_vm1, %v35_v60 }
   0xd   :  { %588 = vadd.xlane.f32.xlu1 %v587_v13 }
   0xe   :  { %582 = vadd.xlane.f32.xlu0 %v581_v14 }
   0xf   :  { %1174 = vmatmul.msk.f32.gmra.mxu0 %vm43_vm1, %v33_v34 }
  0x10   :  { %1177 = vmatmul.msk.f32.gmra.mxu2 %vm43_vm1, %v36_v19 }
  0x17   :  { %1175 = vmatmul.msk.f32.gmra.mxu0 %vm43_vm1, %v34_v59 }
  0x78   :  { %v592_v15 = vpop.xlane.xlu2 %591  ;;  %v1367_v16 = vpop.xlane.xlu1 %585 }
  0x79   :  { %1225 = vrsqrt.f32 %v592_v15  ;;  %v1369_v17 = vpop.xlane.xlu0 %579  ;;  %vm648_vm2 = vcmp.eq.f32.partialorder %v592_v15, inf  ;;  %vm650_vm3 = vcmp.eq.f32.partialorder %v592_v15, 0.0  ;;  %v651_v43 = vand.u32 2147483648, %v592_v15 }
  0x7a   :  { %1227 = vrsqrt.f32 %v1367_v16  ;;  %vm624_vm4 = vcmp.eq.f32.partialorder %v1367_v16, inf  ;;  %vm626_vm5 = vcmp.eq.f32.partialorder %v1367_v16, 0.0  ;;  %v627_v50 = vand.u32 2147483648, %v1367_v16 }
  0x7b   :  { %1229 = vrsqrt.f32 %v1369_v17  ;;  %vm600_vm6 = vcmp.eq.f32.partialorder %v1369_v17, inf  ;;  %v603_v57 = vand.u32 2147483648, %v1369_v17  ;;  %vm602_vm7 = vcmp.eq.f32.partialorder %v1369_v17, 0.0 }
  0x7f   :  { %v1226_v21 = vpop.eup %1225 }
  0x80   :  { %v1228_v22 = vpop.eup %1227  ;;  %v642_v23 = vmul.f32 %v1226_v21, %v592_v15  ;;  %v1383_v24 = vpop.xlane.xlu1 %588 }
  0x81   :  { %v1230_v25 = vpop.eup %1229  ;;  %v618_v26 = vmul.f32 %v1228_v22, %v1367_v16  ;;  %1231 = vrsqrt.f32 %v1383_v24  ;;  %v1387_v27 = vpop.xlane.xlu0 %582  ;;  %vm636_vm8 = vcmp.eq.f32.partialorder %v1383_v24, inf  ;;  %v639_v13 = vand.u32 2147483648, %v1383_v24 }
  0x82   :  { %v643_v28 = vmul.f32 %v1226_v21, %v642_v23  ;;  %v594_v29 = vmul.f32 %v1230_v25, %v1369_v17  ;;  %1233 = vrsqrt.f32 %v1387_v27  ;;  %vm638_vm9 = vcmp.eq.f32.partialorder %v1383_v24, 0.0 }
  0x83   :  { %v619_v30 = vmul.f32 %v1228_v22, %v618_v26  ;;  %vm612_vm10 = vcmp.eq.f32.partialorder %v1387_v27, inf  ;;  %vm614_vm11 = vcmp.eq.f32.partialorder %v1387_v27, 0.0 }
  0x84   :  { %v644_v31 = vmul.f32 0.5, %v643_v28  ;;  %v595_v32 = vmul.f32 %v1230_v25, %v594_v29 }
  0x85   :  { %v620_v33 = vmul.f32 0.5, %v619_v30 }
  0x86   :  { %v645_v35 = vsub.f32 1.5, %v644_v31  ;;  %v596_v36 = vmul.f32 0.5, %v595_v32 }
  0x87   :  { %v1232_v37 = vpop.eup %1231  ;;  %v621_v38 = vsub.f32 1.5, %v620_v33 }
  0x88   :  { %v1234_v39 = vpop.eup %1233  ;;  %v646_v40 = vmul.f32 %v1226_v21, %v645_v35  ;;  %v597_v41 = vsub.f32 1.5, %v596_v36  ;;  %v630_v42 = vmul.f32 %v1232_v37, %v1383_v24 }
  0x89   :  { %v622_v44 = vmul.f32 %v1228_v22, %v621_v38  ;;  %v606_v45 = vmul.f32 %v1234_v39, %v1387_v27 }
  0x8a   :  { %v647_v46 = vmul.f32 %v646_v40, %v592_v15  ;;  %v598_v47 = vmul.f32 %v1230_v25, %v597_v41  ;;  %v631_v48 = vmul.f32 %v1232_v37, %v630_v42 }
  0x8b   :  { %v623_v49 = vmul.f32 %v622_v44, %v1367_v16  ;;  %v607_v51 = vmul.f32 %v1234_v39, %v606_v45 }
  0x8c   :  { %v649_v52 = vsel %vm648_vm2, %v592_v15, %v647_v46  ;;  %v599_v53 = vmul.f32 %v598_v47, %v1369_v17  ;;  %v632_v54 = vmul.f32 0.5, %v631_v48 }
  0x8d   :  { %v652_v55 = vsel %vm650_vm3, %v651_v43, %v649_v52  ;;  %v625_v56 = vsel %vm624_vm4, %v1367_v16, %v623_v49  ;;  %v608_v58 = vmul.f32 0.5, %v607_v51  ;;  %v615_v16 = vand.u32 2147483648, %v1387_v27 }
  0x8e   :  { %v628_v61 = vsel %vm626_vm5, %v627_v50, %v625_v56  ;;  %v601_v62 = vsel %vm600_vm6, %v1369_v17, %v599_v53  ;;  %v633_v63 = vsub.f32 1.5, %v632_v54  ;;  %v1416_v3 = vmax.f32 %v652_v55, 1e-12 }
  0x8f   :  { %v655_v4 = vmax.f32 %v628_v61, 1e-12  ;;  %v604_v5 = vsel %vm602_vm7, %v603_v57, %v601_v62  ;;  %v609_v7 = vsub.f32 1.5, %v608_v58 }
  0x90   :  { %v653_v8 = vmax.f32 %v604_v5, 1e-12  ;;  %v634_v9 = vmul.f32 %v1232_v37, %v633_v63 }
  0x91   :  { %1235 = vrcp.f32 %v655_v4  ;;  %v610_v11 = vmul.f32 %v1234_v39, %v609_v7  ;;  %v697_v29 = vand.u32 2147483647, %v655_v4  ;;  %v699_v30 = vand.u32 2147483648, %v655_v4 }
  0x92   :  { %1237 = vrcp.f32 %v653_v8  ;;  %v635_v12 = vmul.f32 %v634_v9, %v1383_v24  ;;  %v667_v32 = vand.u32 2147483647, %v653_v8  ;;  %v669_v34 = vand.u32 2147483648, %v653_v8 }
  0x93   :  { %1239 = vrcp.f32 %v1416_v3  ;;  %v611_v14 = vmul.f32 %v610_v11, %v1387_v27  ;;  %vm693_vm14 = vweird.f32 %v655_v4  ;;  %vm698_vm15 = vcmp.eq.f32.partialorder %v697_v29, 8.507059e+37 }
  0x94   :  { %v637_v15 = vsel %vm636_vm8, %v1383_v24, %v635_v12  ;;  %vm663_vm2 = vweird.f32 %v653_v8  ;;  %v700_v40 = vor.u32 1.1754944e-38, %v699_v30  ;;  %vm668_vm4 = vcmp.eq.f32.partialorder %v667_v32, 8.507059e+37 }
  0x95   :  { %v640_v17 = vsel %vm638_vm9, %v639_v13, %v637_v15  ;;  %v613_v18 = vsel %vm612_vm10, %v1387_v27, %v611_v14  ;;  %v670_v44 = vor.u32 1.1754944e-38, %v669_v34  ;;  %v729_v11 = vand.u32 2147483648, %v1416_v3 }
  0x96   :  { %v1432_v20 = vmax.f32 %v640_v17, 1e-12  ;;  %v616_v21 = vsel %vm614_vm11, %v615_v16, %v613_v18  ;;  %v727_v13 = vand.u32 2147483647, %v1416_v3 }
  0x97   :  { %v1236_v22 = vpop.eup %1235  ;;  %v1435_v23 = vmax.f32 %v616_v21, 1e-12  ;;  %v730_v14 = vor.u32 1.1754944e-38, %v729_v11 }
  0x98   :  { %v1238_v24 = vpop.eup %1237  ;;  %1241 = vrcp.f32 %v1432_v20  ;;  %v689_v25 = vmul.f32 %v1236_v22, %v655_v4  ;;  %vm694_vm12 = vweird.f32 %v1236_v22  ;;  %v712_v50 = vand.u32 2147483647, %v1432_v20 }
  0x99   :  { %v1438_v26 = vpop.eup %1239  ;;  %1243 = vrcp.f32 %v1435_v23  ;;  %v659_v27 = vmul.f32 %v1238_v24, %v653_v8  ;;  %vm664_vm13 = vweird.f32 %v1238_v24  ;;  %vm695_vm3 = vmor %vm693_vm14, %vm694_vm12  ;;  %v714_v53 = vand.u32 2147483648, %v1432_v20 }
  0x9a   :  { %v690_v28 = vsub.f32 1.0, %v689_v25  ;;  %v719_v35 = vmul.f32 %v1438_v26, %v1416_v3  ;;  %vm665_vm5 = vmor %vm663_vm2, %vm664_vm13  ;;  %v684_v57 = vand.u32 2147483648, %v1435_v23  ;;  %vm708_vm8 = vweird.f32 %v1432_v20 }
  0x9b   :  { %v660_v31 = vsub.f32 1.0, %v659_v27  ;;  %vm678_vm10 = vweird.f32 %v1435_v23  ;;  %vm713_vm11 = vcmp.eq.f32.partialorder %v712_v50, 8.507059e+37  ;;  %vm724_vm13 = vweird.f32 %v1438_v26  ;;  %v1224_v27 = vld [vmem:[%s2133_s4] ss:$0 sm:$0xff]  ;;  %s1272_s4 = smov 1  }
  0x9c   :  { %v691_v33 = vmul.f32 %v1236_v22, %v690_v28  ;;  %v720_v46 = vsub.f32 1.0, %v719_v35  ;;  %v685_v63 = vor.u32 1.1754944e-38, %v684_v57  ;;  %v76_v28 = vpop.f32.mrf.mxu0 }
  0x9d   :  { %v661_v36 = vmul.f32 %v1238_v24, %v660_v31  ;;  %v77_v29 = vadd.f32 %v1224_v27, %v76_v28 }
  0x9e   :  { %v1242_v37 = vpop.eup %1241  ;;  %v692_v38 = vadd.f32 %v1236_v22, %v691_v33  ;;  %v721_v59 = vmul.f32 %v1438_v26, %v720_v46 }
  0x9f   :  { %v1244_v39 = vpop.eup %1243  ;;  %v662_v41 = vadd.f32 %v1238_v24, %v661_v36  ;;  %v704_v42 = vmul.f32 %v1242_v37, %v1432_v20  ;;  %vm709_vm6 = vweird.f32 %v1242_v37  ;;  %v96_v31 = vmin.f32 %v77_v29, 20.0 }
  0xa0   :  { %v696_v43 = vsel %vm695_vm3, %v1236_v22, %v692_v38  ;;  %v674_v45 = vmul.f32 %v1244_v39, %v1435_v23  ;;  %vm679_vm7 = vweird.f32 %v1244_v39  ;;  %vm710_vm9 = vmor %vm708_vm8, %vm709_vm6  ;;  %v722_v7 = vadd.f32 %v1438_v26, %v721_v59 }
  0xa1   :  { %v701_v47 = vsel %vm698_vm15, %v700_v40, %v696_v43  ;;  %v666_v48 = vsel %vm665_vm5, %v1238_v24, %v662_v41  ;;  %v705_v49 = vsub.f32 1.0, %v704_v42  ;;  %vm680_vm12 = vmor %vm678_vm10, %vm679_vm7  ;;  %vm723_vm15 = vweird.f32 %v1416_v3 }
  0xa2   :  { %v1447_v51 = vmul.f32 %v701_v47, %v1335_v1  ;;  %v671_v52 = vsel %vm668_vm4, %v670_v44, %v666_v48  ;;  %v675_v54 = vsub.f32 1.0, %v674_v45  ;;  %v682_v1 = vand.u32 2147483647, %v1435_v23  ;;  %vm725_vm2 = vmor %vm723_vm15, %vm724_vm13  ;;  %v85_v44 = vpop.f32.mrf.mxu2 }
  0xa3   :  { %v1451_v55 = vmul.f32 %v671_v52, %v1340_v2  ;;  %v706_v56 = vmul.f32 %v1242_v37, %v705_v49  ;;  %v715_v2 = vor.u32 1.1754944e-38, %v714_v53  ;;  %vm728_vm3 = vcmp.eq.f32.partialorder %v727_v13, 8.507059e+37 }
  0xa4   :  { %752 = vrot.lane.b32.xlu1 %v1447_v51, %s1265_s2  ;;  %v676_v58 = vmul.f32 %v1244_v39, %v675_v54  ;;  %vm683_vm14 = vcmp.eq.f32.partialorder %v682_v1, 8.507059e+37  ;;  %v1488_v3 = vmul.f32 %v1447_v51, %v1447_v51  ;;  %v1538_v23 = vmul.f32 1.7320508, %v1447_v51  ;;  %v79_v35 = vpop.f32.mrf.mxu0 }
  0xa5   :  { %748 = vrot.lane.b32.xlu2 %v1451_v55, %s1265_s2  ;;  %v707_v60 = vadd.f32 %v1242_v37, %v706_v56  ;;  %v733_v19 = vmul.f32 1.7320508, %v1451_v55  ;;  %v738_v24 = vmul.f32 3.8729835, %v1451_v55  ;;  %v101_v34 = vmul.f32 1.442695, %v96_v31 }
  0xa6   :  { %v677_v61 = vadd.f32 %v1244_v39, %v676_v58  ;;  %v1559_v36 = vadd.f32 %v1224_v27, %v79_v35  ;;  %v1568_v46 = vadd.f32 %v1224_v27, %v85_v44  ;;  %v1571_v47 = vmul.f32 3.8729835, %v1447_v51 }
  0xa7   :  { %v711_v62 = vsel %vm710_vm9, %v1242_v37, %v707_v60  ;;  %1245 = vpow2.f32 %v101_v34  ;;  %vm91_vm4 = vcmp.gt.f32.partialorder %v77_v29, 20.0  ;;  %vm1117_vm15 = vcmask 179200  }
  0xa8   :  { %v716_v4 = vsel %vm713_vm11, %v715_v2, %v711_v62  ;;  %v681_v5 = vsel %vm680_vm12, %v1244_v39, %v677_v61  ;;  %v97_v37 = vmin.f32 %v1559_v36, 20.0  ;;  %v99_v50 = vmin.f32 %v1568_v46, 20.0  ;;  %v165_v2 = vld [vmem:[%s2134_s5 + $0x20] sm:$0xff]  ;;  %v162_v61 = vld [vmem:[%s2134_s5 + $0x8] sm:$0xff] }
  0xa9   :  { %v1465_v8 = vmul.f32 %v716_v4, %v1351_v6  ;;  %v686_v9 = vsel %vm683_vm14, %v685_v63, %v681_v5  ;;  %v726_v6 = vsel %vm725_vm2, %v1438_v26, %v722_v7  ;;  %236 = vmatpush.msrb.mxu2 %v165_v2  ;;  %vm92_vm6 = vcmp.gt.f32.partialorder %v1559_v36, 20.0 }
  0xaa   :  { %v1469_v12 = vmul.f32 %v686_v9, %v1359_v10  ;;  %v731_v10 = vsel %vm728_vm3, %v730_v14, %v726_v6  ;;  %v103_v39 = vmul.f32 1.442695, %v97_v37  ;;  %v107_v60 = vmul.f32 1.442695, %v99_v50  ;;  %v88_v4 = vpop.f32.mrf.mxu2 }
  0xab   :  { %v1480_v15 = vmul.f32 %v731_v10, %v1330_v0  ;;  %v1496_v0 = vmul.f32 %v1451_v55, %v1451_v55  ;;  %v1510_v17 = vmul.f32 %v1465_v8, %v1465_v8  ;;  %v1528_v20 = vmul.f32 1.7320508, %v1465_v8  ;;  %237 = vmatpush.msrb.mxu2 %v162_v61 }
  0xac   :  { %770 = vrot.lane.b32.xlu1 %v1469_v12, %s1266_s10  ;;  %750 = vrot.lane.b32.xlu0 %v1469_v12, %s1265_s2  ;;  %v1500_v16 = vmul.f32 %v1469_v12, %v1469_v12  ;;  %v734_v21 = vmul.f32 1.7320508, %v1469_v12  ;;  %v741_v30 = vmul.f32 3.8729835, %v1465_v8  ;;  %1247 = vpow2.f32 %v103_v39  ;;  %v82_v43 = vpop.f32.mrf.mxu0 }
  0xad   :  { %754 = vrot.lane.b32.xlu2 %v1465_v8, %s1265_s2  ;;  %v1514_v18 = vmul.f32 %v1480_v15, %v1480_v15  ;;  %v1535_v22 = vmul.f32 1.7320508, %v1480_v15  ;;  %v1246_v40 = vpop.eup %1245  ;;  %v1566_v45 = vadd.f32 %v1224_v27, %v82_v43  ;;  %v1588_v5 = vadd.f32 %v1224_v27, %v88_v4 }
  0xae   :  { %v111_v42 = vadd.f32 1.0, %v1246_v40  ;;  %v114_v52 = vmul.f32 -0.5, %v1246_v40  ;;  %v742_v35 = vmul.f32 3.8729835, %v1480_v15  ;;  %vm94_vm10 = vcmp.gt.f32.partialorder %v1568_v46, 20.0 }
  0xaf   :  { %v98_v48 = vmin.f32 %v1566_v45, 20.0  ;;  %v100_v6 = vmin.f32 %v1588_v5, 20.0  ;;  %vm93_vm8 = vcmp.gt.f32.partialorder %v1566_v45, 20.0  ;;  %vm95_vm12 = vcmp.gt.f32.partialorder %v1588_v5, 20.0 }
  0xb0   :  { %1249 = vlog2.f32 %v111_v42  ;;  %v115_v58 = vadd.f32 1.0, %v114_v52  ;;  %vm1111_vm14 = vcmask 154624   ;;  %vm1123_vm2 = vcmask 203776  }
  0xb1   :  { %v105_v56 = vmul.f32 1.442695, %v98_v48  ;;  %vm953_vm3 = vcmask 7168  }
  0xb2   :  { %v1248_v53 = vpop.eup %1247  ;;  %v116_v63 = vmul.f32 %v1246_v40, %v115_v58 }
  0xb3   :  { %1251 = vpow2.f32 %v105_v56  ;;  %v120_v59 = vadd.f32 1.0, %v1248_v53  ;;  %v123_v14 = vmul.f32 -0.5, %v1248_v53  ;;  %v126_v27 = vand.u32 2147483647, %v1248_v53 }
  0xb4   :  { %776 = vrot.lane.b32.xlu1 %v1480_v15, %s1266_s10  ;;  %756 = vrot.lane.b32.xlu0 %v1480_v15, %s1265_s2 }
  0xb5   :  { %768 = vrot.lane.b32.xlu2 %v1451_v55, %s1266_s10  ;;  %1253 = vlog2.f32 %v120_v59  ;;  %vm127_vm7 = vcmp.lt.f32.partialorder %v126_v27, 0.0004427343 }
  0xb6   :  { %v1250_v1 = vpop.eup %1249  ;;  %1255 = vpow2.f32 %v107_v60 }
  0xb7   :  { %v113_v62 = vmul.f32 0.6931472, %v1250_v1 }
  0xb9   :  { %v1252_v10 = vpop.eup %1251 }
  0xba   :  { %v129_v28 = vadd.f32 1.0, %v1252_v10  ;;  %v135_v15 = vand.u32 2147483647, %v1252_v10 }
  0xbc   :  { %802 = vrot.lane.b32.xlu1 %v1488_v3, %s1265_s2  ;;  %772 = vrot.lane.b32.xlu0 %v1447_v51, %s1266_s10  ;;  %v117_v51 = vand.u32 2147483647, %v1246_v40  ;;  %1257 = vlog2.f32 %v129_v28  ;;  %v132_v40 = vmul.f32 -0.5, %v1252_v10  ;;  %vm136_vm9 = vcmp.lt.f32.partialorder %v135_v15, 0.0004427343  ;;  %v295_v15 = vld [vmem:[%s2135_s7 + $0x20] sm:$0xff] }
  0xbd   :  { %774 = vrot.lane.b32.xlu2 %v1465_v8, %s1266_s10  ;;  %v739_v8 = vmul.f32 3.8729835, %v1469_v12  ;;  %v124_v12 = vadd.f32 1.0, %v123_v14 }
  0xbe   :  { %vm118_vm5 = vcmp.lt.f32.partialorder %v117_v51, 0.0004427343 }
  0xbf   :  { %v119_v7 = vsel %vm118_vm5, %v116_v63, %v113_v62  ;;  %v125_v31 = vmul.f32 %v1248_v53, %v124_v12  ;;  %v164_v53 = vld [vmem:[%s2134_s5 + $0x18] sm:$0xff]  ;;  %vm1141_vm5 = vcmask 310272  }
  0xc0   :  { %v1592_v9 = vsel %vm91_vm4, %v77_v29, %v119_v7  ;;  %v109_v29 = vmul.f32 1.442695, %v100_v6  ;;  %204 = vmatpush.msra.mxu1 %v164_v53  ;;  %1210 = vmatpush.msra.mxu3 %v164_v53  ;;  %vm970_vm4 = vcmask 31744  }
  0xc1   :  { %1183 = vmatmul.msk.f32.vlgmr.msrb.gmra.mxu2 %vm43_vm1, %v1592_v9 }
  0xc2   :  { %1259 = vpow2.f32 %v109_v29 }
  0xc4   :  { %798 = vrot.lane.b32.xlu0 %v1496_v0, %s1265_s2  ;;  %855 = vrot.lane.b32.xlu1 %v1500_v16, %s1267_s11 }
  0xc5   :  { %800 = vrot.lane.b32.xlu2 %v1500_v16, %s1265_s2 }
  0xcc   :  { %804 = vrot.lane.b32.xlu0 %v1510_v17, %s1265_s2  ;;  %861 = vrot.lane.b32.xlu1 %v1514_v18, %s1267_s11 }
  0xcd   :  { %806 = vrot.lane.b32.xlu2 %v1514_v18, %s1265_s2 }
  0xd4   :  { %857 = vrot.lane.b32.xlu0 %v1488_v3, %s1267_s11  ;;  %981 = vrot.lane.b32.xlu1 %v733_v19, %s1268_s12 }
  0xd5   :  { %853 = vrot.lane.b32.xlu2 %v1496_v0, %s1267_s11 }
  0xdc   :  { %987 = vrot.lane.b32.xlu1 %v1528_v20, %s1268_s12  ;;  %983 = vrot.lane.b32.xlu0 %v734_v21, %s1268_s12 }
  0xdd   :  { %859 = vrot.lane.b32.xlu2 %v1510_v17, %s1267_s11 }
  0xe4   :  { %998 = vrot.lane.b32.xlu1 %v734_v21, %s1269_s13  ;;  %989 = vrot.lane.b32.xlu0 %v1535_v22, %s1268_s12 }
  0xe5   :  { %985 = vrot.lane.b32.xlu2 %v1538_v23, %s1268_s12 }
  0xec   :  { %1004 = vrot.lane.b32.xlu1 %v1535_v22, %s1269_s13  ;;  %1000 = vrot.lane.b32.xlu0 %v1538_v23, %s1269_s13 }
  0xed   :  { %996 = vrot.lane.b32.xlu2 %v733_v19, %s1269_s13 }
  0xf4   :  { %1015 = vrot.lane.b32.xlu1 %v1538_v23, %s1270_s14  ;;  %1011 = vrot.lane.b32.xlu0 %v733_v19, %s1270_s14 }
  0xf5   :  { %1002 = vrot.lane.b32.xlu2 %v1528_v20, %s1269_s13 }
  0xfc   :  { %1026 = vrot.lane.b32.xlu1 %v733_v19, %s1271_s15  ;;  %1017 = vrot.lane.b32.xlu0 %v1528_v20, %s1270_s14 }
  0xfd   :  { %1013 = vrot.lane.b32.xlu2 %v734_v21, %s1270_s14 }
  0xff   :  { %v749_v25 = vpop.permute.xlu2 %748 }
 0x100   :  { %v1549_v26 = vmul.f32 %v749_v25, %v738_v24  ;;  %v1254_v25 = vpop.eup %1253 }
 0x104   :  { %1028 = vrot.lane.b32.xlu0 %v734_v21, %s1271_s15 }
 0x105   :  { %1019 = vrot.lane.b32.xlu2 %v1535_v22, %s1270_s14 }
 0x107   :  { %v755_v32 = vpop.permute.xlu2 %754 }
 0x108   :  { %v1557_v33 = vmul.f32 %v755_v32, %v741_v30  ;;  %v1256_v32 = vpop.eup %1255 }
 0x109   :  { %v138_v48 = vadd.f32 1.0, %v1256_v32  ;;  %v1258_v50 = vpop.eup %1257  ;;  %v141_v1 = vmul.f32 -0.5, %v1256_v32  ;;  %v144_v4 = vand.u32 2147483647, %v1256_v32 }
 0x10a   :  { %v1260_v56 = vpop.eup %1259 }
 0x10b   :  { %1261 = vlog2.f32 %v138_v48  ;;  %v142_v2 = vadd.f32 1.0, %v141_v1  ;;  %v147_v7 = vadd.f32 1.0, %v1260_v56  ;;  %vm145_vm11 = vcmp.lt.f32.partialorder %v144_v4, 0.0004427343 }
 0x10c   :  { %v150_v6 = vmul.f32 -0.5, %v1260_v56 }
 0x10d   :  { %1263 = vlog2.f32 %v147_v7 }
 0x10f   :  { %v769_v38 = vpop.permute.xlu2 %768 }
 0x110   :  { %v1562_v41 = vmul.f32 %v769_v38, %v738_v24 }
 0x111   :  { %v1262_v61 = vpop.eup %1261 }
 0x112   :  { %883 = vrot.lane.b32.xlu0 %v1562_v41, %s1272_s4 }
 0x113   :  { %v1264_v12 = vpop.eup %1263 }
 0x116   :  { %v753_v49 = vpop.permute.xlu1 %752 }
 0x117   :  { %v1576_v54 = vmul.f32 %v753_v49, %v1571_v47  ;;  %v775_v55 = vpop.permute.xlu2 %774  ;;  %v133_v49 = vadd.f32 1.0, %v132_v40  ;;  %v291_v40 = vld [vmem:[%s2135_s7] sm:$0xff] }
 0x118   :  { %v1578_v57 = vmul.f32 %v775_v55, %v741_v30  ;;  %v122_v30 = vmul.f32 0.6931472, %v1254_v25  ;;  %v161_v55 = vld [vmem:[%s2134_s5] sm:$0xff]  ;;  %v153_v25 = vand.u32 2147483647, %v1260_v56 }
 0x119   :  { %v134_v52 = vmul.f32 %v1252_v10, %v133_v49  ;;  %205 = vmatpush.msra.mxu1 %v161_v55  ;;  %1211 = vmatpush.msra.mxu3 %v161_v55  ;;  %v286_v49 = vld [vmem:[%s2136_s0] sm:$0xff] }
 0x11a   :  { %889 = vrot.lane.b32.xlu0 %v1578_v57, %s1272_s4  ;;  %v128_v34 = vsel %vm127_vm7, %v125_v31, %v122_v30  ;;  %1178 = vmatmul.msk.f32.vlgmr.msra.gmra.mxu1 %vm43_vm1, %v1592_v9  ;;  %vm154_vm13 = vcmp.lt.f32.partialorder %v153_v25, 0.0004427343  ;;  %v166_v30 = vld [vmem:[%s2134_s5 + $0x28] sm:$0xff]  ;;  %v294_v31 = vld [vmem:[%s2135_s7 + $0x18] sm:$0xff]  ;;  %vm1147_vm7 = vcmask 351232  }
 0x11b   :  { %v1608_v37 = vsel %vm92_vm6, %v1559_v36, %v128_v34  ;;  %v131_v36 = vmul.f32 0.6931472, %v1258_v50  ;;  %268 = vmatpush.msrb.mxu3 %v166_v30  ;;  %326 = vmatpush.msrb.mxu0 %v294_v31  ;;  %v293_v50 = vld [vmem:[%s2135_s7 + $0x10] sm:$0xff]  ;;  %vm1135_vm6 = vcmask 269312  }
 0x11c   :  { %1184 = vmatmul.msk.f32.gmra.mxu2 %vm43_vm1, %v1608_v37  ;;  %358 = vmatpush.msrb.mxu1 %v295_v15 }
 0x11d   :  { %v137_v58 = vsel %vm136_vm9, %v134_v52, %v131_v36  ;;  %327 = vmatpush.msrb.mxu0 %v291_v40  ;;  %v292_v36 = vld [vmem:[%s2135_s7 + $0x8] sm:$0xff] }
 0x11e   :  { %v771_v11 = vpop.permute.xlu1 %770  ;;  %v751_v13 = vpop.permute.xlu0 %750  ;;  %v1628_v51 = vsel %vm93_vm8, %v1566_v45, %v137_v58  ;;  %v140_v45 = vmul.f32 0.6931472, %v1262_v61  ;;  %1193 = vmatmul.msk.f32.vlgmr.msrb.gmra.mxu0 %vm43_vm1, %v286_v49  ;;  %359 = vmatpush.msrb.mxu1 %v292_v36  ;;  %vm1163_vm8 = vcmask 392192  }
 0x11f   :  { %v1597_v19 = vmul.f32 %v771_v11, %v739_v8  ;;  %v1599_v21 = vmul.f32 %v751_v13, %v739_v8  ;;  %v1601_v24 = vpop.permute.xlu2 %800  ;;  %v143_v8 = vmul.f32 %v1256_v32, %v142_v2 }
 0x120   :  { %v814_v13 = vadd.f32 %v1601_v24, %v1500_v16  ;;  %v149_v24 = vmul.f32 0.6931472, %v1264_v12 }
 0x121   :  { %885 = vrot.lane.b32.xlu2 %v1597_v19, %s1272_s4  ;;  %v146_v11 = vsel %vm145_vm11, %v143_v8, %v140_v45 }
 0x122   :  { %1179 = vmatmul.msk.f32.gmra.mxu1 %vm43_vm1, %v1608_v37  ;;  %v819_v27 = vmul.f32 0.5, %v814_v13 }
 0x124   :  { %1185 = vmatmul.msk.f32.gmra.mxu2 %vm43_vm1, %v1628_v51 }
 0x126   :  { %v777_v38 = vpop.permute.xlu1 %776  ;;  %v757_v39 = vpop.permute.xlu0 %756 }
 0x127   :  { %v1612_v42 = vmul.f32 %v777_v38, %v742_v35  ;;  %v1614_v43 = vmul.f32 %v757_v39, %v742_v35  ;;  %v1616_v44 = vpop.permute.xlu2 %806  ;;  %v163_v39 = vld [vmem:[%s2134_s5 + $0x10] sm:$0xff] }
 0x128   :  { %269 = vmatpush.msrb.mxu3 %v163_v39 }
 0x129   :  { %891 = vrot.lane.b32.xlu2 %v1612_v42, %s1272_s4 }
 0x12a   :  { %1180 = vmatmul.msk.f32.gmra.mxu1 %vm43_vm1, %v1628_v51 }
 0x12e   :  { %v803_v59 = vpop.permute.xlu1 %802  ;;  %v773_v60 = vpop.permute.xlu0 %772 }
 0x12f   :  { %v785_v62 = vmul.f32 %v773_v60, %v1571_v47  ;;  %v1635_v63 = vpop.permute.xlu2 %853  ;;  %v1643_v47 = vsel %vm94_vm10, %v1568_v46, %v146_v11  ;;  %v815_v32 = vadd.f32 %v803_v59, %v1488_v3 }
 0x130   :  { %1181 = vmatmul.msk.f32.vlgmr.msra.gmra.mxu3 %vm43_vm1, %v1643_v47  ;;  %1186 = vmatmul.msk.f32.gmra.mxu2 %vm43_vm1, %v1643_v47  ;;  %v868_v2 = vsub.f32 %v1496_v0, %v1635_v63  ;;  %v288_v63 = vld [vmem:[%s2136_s0 + $0x10] sm:$0xff] }
 0x131   :  { %918 = vrot.lane.b32.xlu2 %v1562_v41, %s1267_s11  ;;  %887 = vrot.lane.b32.xlu1 %v785_v62, %s1272_s4  ;;  %v151_v41 = vadd.f32 1.0, %v150_v6  ;;  %v820_v38 = vmul.f32 0.5, %v815_v32 }
 0x132   :  { %922 = vrot.lane.b32.xlu0 %v785_v62, %s1267_s11  ;;  %1198 = vmatmul.msk.f32.vlgmr.msrb.gmra.mxu1 %vm43_vm1, %v286_v49  ;;  %v873_v45 = vmul.f32 1.9364917, %v868_v2 }
 0x133   :  { %v152_v28 = vmul.f32 %v1260_v56, %v151_v41 }
 0x135   :  { %v155_v29 = vsel %vm154_vm13, %v152_v28, %v149_v24 }
 0x136   :  { %v799_v14 = vpop.permute.xlu0 %798  ;;  %v1649_v10 = vpop.permute.xlu1 %855  ;;  %v1671_v34 = vsel %vm95_vm12, %v1588_v5, %v155_v29 }
 0x137   :  { %v1655_v46 = vpop.permute.xlu2 %859  ;;  %v869_v59 = vsub.f32 %v1500_v16, %v1649_v10 }
 0x138   :  { %1182 = vmatmul.msk.f32.gmra.mxu3 %vm43_vm1, %v1671_v34  ;;  %1187 = vmatmul.msk.f32.gmra.mxu2 %vm43_vm1, %v1671_v34  ;;  %v871_v11 = vsub.f32 %v1510_v17, %v1655_v46 }
 0x139   :  { %924 = vrot.lane.b32.xlu2 %v1578_v57, %s1267_s11  ;;  %920 = vrot.lane.b32.xlu1 %v1597_v19, %s1267_s11  ;;  %v817_v57 = vadd.f32 %v1616_v44, %v1514_v18  ;;  %v296_v44 = vld [vmem:[%s2135_s7 + $0x28] sm:$0xff] }
 0x13a   :  { %830 = vrot.lane.b32.xlu0 %v819_v27, %s1272_s4  ;;  %390 = vmatpush.msra.mxu2 %v296_v44  ;;  %v876_v25 = vmul.f32 1.9364917, %v871_v11 }
 0x13b   :  { %v822_v48 = vmul.f32 0.5, %v817_v57 }
 0x13c   :  { %391 = vmatpush.msra.mxu2 %v293_v50 }
 0x13e   :  { %v805_v19 = vpop.permute.xlu0 %804  ;;  %v1677_v35 = vpop.permute.xlu1 %861 }
 0x13f   :  { %v1683_v5 = vpop.permute.xlu2 %985  ;;  %v816_v60 = vadd.f32 %v805_v19, %v1510_v17 }
 0x140   :  { %1188 = vmatmul.msk.f32.vlgmr.msrb.gmra.mxu3 %vm43_vm1, %v1592_v9  ;;  %1203 = vmatmul.msk.f32.vlgmr.msra.gmra.mxu2 %vm43_vm1, %v286_v49  ;;  %v287_v9 = vld [vmem:[%s2136_s0 + $0x8] sm:$0xff]  ;;  %v1108_v24 = vsel %vm43_vm1, 1.0, %v1683_v5 }
 0x141   :  { %832 = vrot.lane.b32.xlu2 %v820_v38, %s1272_s4  ;;  %926 = vrot.lane.b32.xlu1 %v1612_v42, %s1267_s11  ;;  %v813_v42 = vadd.f32 %v799_v14, %v1496_v0  ;;  %v821_v62 = vmul.f32 0.5, %v816_v60 }
 0x142   :  { %836 = vrot.lane.b32.xlu0 %v822_v48, %s1272_s4  ;;  %1194 = vmatmul.msk.f32.gmra.mxu0 %vm43_vm1, %v287_v9 }
 0x143   :  { %v818_v55 = vmul.f32 0.5, %v813_v42  ;;  %1199 = vmatmul.msk.f32.gmra.mxu1 %vm43_vm1, %v287_v9 }
 0x146   :  { %v858_v52 = vpop.permute.xlu0 %857  ;;  %v982_v53 = vpop.permute.xlu1 %981 }
 0x147   :  { %v1106_v56 = vsel %vm43_vm1, 1.0, %v982_v53  ;;  %v997_v58 = vpop.permute.xlu2 %996  ;;  %v870_v46 = vsub.f32 %v1488_v3, %v858_v52 }
 0x148   :  { %v1718_v1 = vsel %vm1111_vm14, %v1106_v56, %v997_v58  ;;  %1189 = vmatmul.msk.f32.gmra.mxu3 %vm43_vm1, %v1608_v37  ;;  %1204 = vmatmul.msk.f32.gmra.mxu2 %vm43_vm1, %v287_v9  ;;  %v872_v37 = vsub.f32 %v1514_v18, %v1677_v35 }
 0x149   :  { %1030 = vrot.lane.b32.xlu2 %v1538_v23, %s1271_s15  ;;  %828 = vrot.lane.b32.xlu1 %v818_v55, %s1272_s4 }
 0x14a   :  { %1034 = vrot.lane.b32.xlu0 %v1535_v22, %s1271_s15  ;;  %v874_v22 = vmul.f32 1.9364917, %v869_v59  ;;  %1195 = vmatmul.msk.f32.gmra.mxu0 %vm43_vm1, %v288_v63  ;;  %v877_v10 = vmul.f32 1.9364917, %v872_v37 }
 0x14b   :  { %1200 = vmatmul.msk.f32.gmra.mxu1 %vm43_vm1, %v288_v63 }
 0x14e   :  { %v988_v61 = vpop.permute.xlu1 %987  ;;  %v984_v23 = vpop.permute.xlu0 %983 }
 0x14f   :  { %v1109_v4 = vsel %vm43_vm1, 1.0, %v988_v61  ;;  %v1003_v7 = vpop.permute.xlu2 %1002  ;;  %v1107_v13 = vsel %vm43_vm1, 1.0, %v984_v23 }
 0x150   :  { %v1115_v8 = vsel %vm1111_vm14, %v1109_v4, %v1003_v7  ;;  %1190 = vmatmul.msk.f32.gmra.mxu3 %vm43_vm1, %v1628_v51  ;;  %1205 = vmatmul.msk.f32.gmra.mxu2 %vm43_vm1, %v288_v63  ;;  %v289_v51 = vld [vmem:[%s2136_s0 + $0x18] sm:$0xff]  ;;  %v453_v7 = vld [vmem:[%s2137_s8 + $0xf0] sm:$0xff] }
 0x151   :  { %940 = vrot.lane.b32.xlu2 %v874_v22, %s1267_s11  ;;  %834 = vrot.lane.b32.xlu1 %v821_v62, %s1272_s4  ;;  %v437_v22 = vld [vmem:[%s2137_s8 + $0x70] sm:$0xff]  ;;  %v436_v62 = vld [vmem:[%s2137_s8 + $0x68] sm:$0xff] }
 0x152   :  { %938 = vrot.lane.b32.xlu0 %v873_v45, %s1267_s11  ;;  %1196 = vmatmul.msk.f32.gmra.mxu0 %vm43_vm1, %v289_v51  ;;  %v454_v4 = vld [vmem:[%s2137_s8 + $0xf8] sm:$0xff] }
 0x153   :  { %1201 = vmatmul.msk.f32.gmra.mxu1 %vm43_vm1, %v289_v51  ;;  %503 = vmatpush.msra.mxu0 %v454_v4  ;;  %v470_v45 = vld [vmem:[%s2137_s8 + $0x178] sm:$0xff] }
 0x154   :  { %535 = vmatpush.msra.mxu1 %v470_v45  ;;  %v434_v63 = vld [vmem:[%s2137_s8 + $0x58] sm:$0xff]  ;;  %v425_v45 = vld [vmem:[%s2137_s8 + $0x10] sm:$0xff] }
 0x155   :  { %504 = vmatpush.msra.mxu0 %v453_v7 }
 0x156   :  { %v999_v6 = vpop.permute.xlu1 %998  ;;  %v990_v14 = vpop.permute.xlu0 %989 }
 0x157   :  { %v1014_v41 = vpop.permute.xlu2 %1013  ;;  %v1113_v12 = vsel %vm1111_vm14, %v1107_v13, %v999_v6  ;;  %v1110_v28 = vsel %vm43_vm1, 1.0, %v990_v14  ;;  %v433_v6 = vld [vmem:[%s2137_s8 + $0x50] sm:$0xff]  ;;  %v452_v14 = vld [vmem:[%s2137_s8 + $0xe8] sm:$0xff] }
 0x158   :  { %v1119_v27 = vsel %vm1117_vm15, %v1113_v12, %v1014_v41  ;;  %1191 = vmatmul.msk.f32.gmra.mxu3 %vm43_vm1, %v1643_v47  ;;  %1206 = vmatmul.msk.f32.gmra.mxu2 %vm43_vm1, %v289_v51  ;;  %v290_v47 = vld [vmem:[%s2136_s0 + $0x20] sm:$0xff] }
 0x159   :  { %946 = vrot.lane.b32.xlu2 %v877_v10, %s1267_s11  ;;  %1032 = vrot.lane.b32.xlu1 %v1528_v20, %s1271_s15  ;;  %v875_v20 = vmul.f32 1.9364917, %v870_v46  ;;  %v469_v10 = vld [vmem:[%s2137_s8 + $0x170] sm:$0xff]  ;;  %v451_v12 = vld [vmem:[%s2137_s8 + $0xe0] sm:$0xff] }
 0x15a   :  { %944 = vrot.lane.b32.xlu0 %v876_v25, %s1267_s11  ;;  %1197 = vmatmul.msk.f32.gmra.mxu0 %vm43_vm1, %v290_v47  ;;  %v468_v25 = vld [vmem:[%s2137_s8 + $0x168] sm:$0xff]  ;;  %v467_v46 = vld [vmem:[%s2137_s8 + $0x160] sm:$0xff] }
 0x15b   :  { %1202 = vmatmul.msk.f32.gmra.mxu1 %vm43_vm1, %v290_v47  ;;  %505 = vmatpush.msra.mxu0 %v452_v14 }
 0x15c   :  { %536 = vmatpush.msra.mxu1 %v469_v10  ;;  %v424_v10 = vld [vmem:[%s2137_s8 + $0x8] sm:$0xff] }
 0x15d   :  { %506 = vmatpush.msra.mxu0 %v451_v12 }
 0x15e   :  { %v1005_v29 = vpop.permute.xlu1 %1004  ;;  %v1001_v30 = vpop.permute.xlu0 %1000  ;;  %537 = vmatpush.msra.mxu1 %v468_v25  ;;  %v423_v25 = vld [vmem:[%s2137_s8] sm:$0xff] }
 0x15f   :  { %v1020_v31 = vpop.permute.xlu2 %1019  ;;  %v1116_v32 = vsel %vm1111_vm14, %v1110_v28, %v1005_v29  ;;  %v1114_v57 = vsel %vm1111_vm14, %v1108_v24, %v1001_v30  ;;  %v431_v24 = vld [vmem:[%s2137_s8 + $0x40] sm:$0xff]  ;;  %v449_v29 = vld [vmem:[%s2137_s8 + $0xd0] sm:$0xff]  ;;  %v466_v30 = vld [vmem:[%s2137_s8 + $0x158] sm:$0xff] }
 0x160   :  { %v1780_v19 = vsel %vm1117_vm15, %v1116_v32, %v1020_v31  ;;  %1192 = vmatmul.msk.f32.gmra.mxu3 %vm43_vm1, %v1671_v34  ;;  %1207 = vmatmul.msk.f32.gmra.mxu2 %vm43_vm1, %v290_v47  ;;  %v448_v32 = vld [vmem:[%s2137_s8 + $0xc8] sm:$0xff]  ;;  %vm959_vm1 = vcmask 15360  }
 0x161   :  { %942 = vrot.lane.b32.xlu1 %v875_v20, %s1267_s11  ;;  %538 = vmatpush.msra.mxu1 %v467_v46  ;;  %v430_v20 = vld [vmem:[%s2137_s8 + $0x38] sm:$0xff] }
 0x163   :  { %539 = vmatpush.msra.mxu1 %v466_v30 }
 0x166   :  { %v1016_v35 = vpop.permute.xlu1 %1015  ;;  %v1012_v38 = vpop.permute.xlu0 %1011 }
 0x167   :  { %v1120_v5 = vsel %vm1117_vm15, %v1114_v57, %v1016_v35  ;;  %v1118_v39 = vsel %vm1117_vm15, %v1718_v1, %v1012_v38  ;;  %v465_v57 = vld [vmem:[%s2137_s8 + $0x150] sm:$0xff] }
 0x168   :  { %v429_v38 = vld [vmem:[%s2137_s8 + $0x30] sm:$0xff]  ;;  %540 = vmatpush.msra.mxu1 %v465_v57 }
 0x16e   :  { %v1027_v40 = vpop.permute.xlu1 %1026  ;;  %v1018_v44 = vpop.permute.xlu0 %1017 }
 0x16f   :  { %v1792_v48 = vsel %vm1123_vm2, %v1118_v39, %v1027_v40  ;;  %v1795_v49 = vsel %vm1117_vm15, %v1115_v8, %v1018_v44  ;;  %v447_v39 = vld [vmem:[%s2137_s8 + $0xc0] sm:$0xff]  ;;  %v464_v40 = vld [vmem:[%s2137_s8 + $0x148] sm:$0xff] }
 0x170   :  { %v1926_v44 = vld [vmem:[%s2138_s6] sm:$0x7]  ;;  %541 = vmatpush.msra.mxu1 %v464_v40  ;;  %v456_v40 = vld [vmem:[%s2137_s8 + $0x108] sm:$0xff] }
 0x176   :  { %v1029_v34 = vpop.permute.xlu0 %1028 }
 0x177   :  { %v1798_v50 = vsel %vm1123_vm2, %v1119_v27, %v1029_v34  ;;  %v432_v27 = vld [vmem:[%s2137_s8 + $0x48] sm:$0xff] }
 0x17b   :  { %v886_v15 = vpop.permute.xlu2 %885 }
 0x17c   :  { %v1802_v36 = vsel %vm953_vm3, %v1599_v21, %v886_v15 }
 0x183   :  { %v892_v42 = vpop.permute.xlu2 %891 }
 0x184   :  { %v1806_v52 = vsel %vm953_vm3, %v1614_v43, %v892_v42  ;;  %v884_v53 = vpop.permute.xlu0 %883  ;;  %v1825_v43 = vpop.f32.mrf.mxu2  ;;  %v446_v42 = vld [vmem:[%s2137_s8 + $0xb8] sm:$0xff] }
 0x185   :  { %v1810_v55 = vsel %vm953_vm3, %v1549_v26, %v884_v53  ;;  %v438_v26 = vld [vmem:[%s2137_s8 + $0x78] sm:$0xff]  ;;  %v463_v53 = vld [vmem:[%s2137_s8 + $0x140] sm:$0xff] }
 0x186   :  { %471 = vmatpush.msra.mxu3 %v438_v26  ;;  %v462_v26 = vld [vmem:[%s2137_s8 + $0x138] sm:$0xff]  ;;  %542 = vmatpush.msra.mxu1 %v463_v53 }
 0x188   :  { %472 = vmatpush.msra.mxu3 %v437_v22  ;;  %v444_v22 = vld [vmem:[%s2137_s8 + $0xa8] sm:$0xff]  ;;  %543 = vmatpush.msra.mxu1 %v462_v26 }
 0x18a   :  { %473 = vmatpush.msra.mxu3 %v436_v62  ;;  %v461_v62 = vld [vmem:[%s2137_s8 + $0x130] sm:$0xff] }
 0x18b   :  { %v1812_v56 = vpop.permute.xlu2 %918  ;;  %544 = vmatpush.msra.mxu1 %v461_v62 }
 0x18c   :  { %v890_v58 = vpop.permute.xlu0 %889 }
 0x18d   :  { %v1816_v1 = vsel %vm953_vm3, %v1557_v33, %v890_v58  ;;  %v427_v58 = vld [vmem:[%s2137_s8 + $0x20] sm:$0xff] }
 0x193   :  { %v1818_v9 = vpop.permute.xlu2 %924 }
 0x197   :  { %v1861_v13 = vpop.f32.mrf.mxu1 }
 0x19b   :  { %v833_v21 = vpop.permute.xlu2 %832  ;;  %v329_v12 = vpop.f32.mrf.mxu0 }
 0x19c   :  { %v845_v59 = vsub.f32 %v1488_v3, %v833_v21  ;;  %v1944_v21 = vperm.slane %v1926_v44, 0 }
 0x19e   :  { %v850_v60 = vmul.f32 2.236068, %v845_v59 }
 0x19f   :  { %v1854_v8 = vpop.f32.mrf.mxu2  ;;  %v1911_v35 = vpop.f32.mrf.mxu1 }
 0x1a0   :  { %907 = vrot.lane.b32.xlu2 %v850_v60, %s1272_s4  ;;  %v445_v60 = vld [vmem:[%s2137_s8 + $0xb0] sm:$0xff] }
 0x1a3   :  { %v1031_v2 = vpop.permute.xlu2 %1030  ;;  %v888_v61 = vpop.permute.xlu1 %887 }
 0x1a4   :  { %v1828_v33 = vsel %vm1123_vm2, %v1120_v5, %v1031_v2  ;;  %v1832_v23 = vsel %vm953_vm3, %v1576_v54, %v888_v61  ;;  %v1834_v3 = vpop.permute.xlu0 %922  ;;  %v435_v54 = vld [vmem:[%s2137_s8 + $0x60] sm:$0xff]  ;;  %v426_v2 = vld [vmem:[%s2137_s8 + $0x18] sm:$0xff] }
 0x1a5   :  { %474 = vmatpush.msra.mxu3 %v435_v54 }
 0x1a7   :  { %475 = vmatpush.msra.mxu3 %v434_v63  ;;  %v1892_v28 = vpop.f32.mrf.mxu2  ;;  %v1964_v7 = vpop.f32.mrf.mxu1 }
 0x1a9   :  { %476 = vmatpush.msra.mxu3 %v433_v6  ;;  %v208_v6 = vadd.f32 %v1861_v13, %v1944_v21  ;;  %v442_v13 = vld [vmem:[%s2137_s8 + $0x98] sm:$0xff] }
 0x1ab   :  { %v1859_v37 = vpop.permute.xlu1 %920  ;;  %477 = vmatpush.msra.mxu3 %v432_v27  ;;  %v459_v27 = vld [vmem:[%s2137_s8 + $0x120] sm:$0xff]  ;;  %v408_v46 = vmul.f32 %v329_v12, %v208_v6 }
 0x1ac   :  { %v831_v11 = vpop.permute.xlu0 %830 }
 0x1ad   :  { %v844_v41 = vsub.f32 %v1500_v16, %v831_v11  ;;  %v450_v16 = vld [vmem:[%s2137_s8 + $0xd8] sm:$0xff]  ;;  %478 = vmatpush.msra.mxu3 %v431_v24  ;;  %v1974_v11 = vperm.slane %v1926_v44, 1  ;;  %v441_v24 = vld [vmem:[%s2137_s8 + $0x90] sm:$0xff] }
 0x1ae   :  { %507 = vmatpush.msra.mxu0 %v450_v16 }
 0x1af   :  { %v849_v51 = vmul.f32 2.236068, %v844_v41  ;;  %479 = vmatpush.msra.mxu3 %v430_v20  ;;  %v361_v57 = vpop.f32.mrf.mxu1 }
 0x1b0   :  { %508 = vmatpush.msra.mxu0 %v449_v29  ;;  %v458_v29 = vld [vmem:[%s2137_s8 + $0x118] sm:$0xff] }
 0x1b1   :  { %905 = vrot.lane.b32.xlu0 %v849_v51, %s1272_s4  ;;  %480 = vmatpush.msra.mxu3 %v429_v38  ;;  %v240_v51 = vadd.f32 %v1825_v43, %v1974_v11  ;;  %v440_v43 = vld [vmem:[%s2137_s8 + $0x88] sm:$0xff]  ;;  %v211_v38 = vadd.f32 %v1911_v35, %v1944_v21  ;;  %v455_v35 = vld [vmem:[%s2137_s8 + $0x100] sm:$0xff] }
 0x1b2   :  { %509 = vmatpush.msra.mxu0 %v448_v32  ;;  %v2014_v32 = vperm.slane %v1926_v44, 2 }
 0x1b3   :  { %v1903_v31 = vpop.permute.xlu1 %926  ;;  %v1931_v15 = vpop.f32.mrf.mxu3 }
 0x1b4   :  { %v837_v47 = vpop.permute.xlu0 %836  ;;  %510 = vmatpush.msra.mxu0 %v447_v39  ;;  %v1946_v59 = vpop.f32.mrf.mxu2  ;;  %v439_v39 = vld [vmem:[%s2137_s8 + $0x80] sm:$0xff] }
 0x1b5   :  { %v847_v5 = vsub.f32 %v1514_v18, %v837_v47  ;;  %v428_v18 = vld [vmem:[%s2137_s8 + $0x28] sm:$0xff]  ;;  %v457_v47 = vld [vmem:[%s2137_s8 + $0x110] sm:$0xff] }
 0x1b6   :  { %481 = vmatpush.msra.mxu3 %v428_v18  ;;  %511 = vmatpush.msra.mxu0 %v446_v42  ;;  %v243_v42 = vadd.f32 %v1854_v8, %v1974_v11 }
 0x1b7   :  { %v852_v34 = vmul.f32 2.236068, %v847_v5  ;;  %v409_v5 = vmul.f32 %v361_v57, %v240_v51 }
 0x1b8   :  { %482 = vmatpush.msra.mxu3 %v427_v58  ;;  %512 = vmatpush.msra.mxu0 %v445_v60 }
 0x1b9   :  { %911 = vrot.lane.b32.xlu0 %v852_v34, %s1272_s4 }
 0x1ba   :  { %483 = vmatpush.msra.mxu3 %v426_v2  ;;  %513 = vmatpush.msra.mxu0 %v444_v22  ;;  %v214_v22 = vadd.f32 %v1964_v7, %v1944_v21 }
 0x1bb   :  { %v829_v61 = vpop.permute.xlu1 %828  ;;  %v1987_v41 = vpop.f32.mrf.mxu3 }
 0x1bc   :  { %v843_v4 = vsub.f32 %v1496_v0, %v829_v61  ;;  %v1035_v54 = vpop.permute.xlu0 %1034  ;;  %v443_v0 = vld [vmem:[%s2137_s8 + $0xa0] sm:$0xff]  ;;  %484 = vmatpush.msra.mxu3 %v425_v45  ;;  %v2001_v16 = vpop.f32.mrf.mxu2  ;;  %v246_v45 = vadd.f32 %v1892_v28, %v1974_v11 }
 0x1bd   :  { %v1971_v63 = vsel %vm1123_vm2, %v1780_v19, %v1035_v54  ;;  %v460_v19 = vld [vmem:[%s2137_s8 + $0x128] sm:$0xff]  ;;  %514 = vmatpush.msra.mxu0 %v443_v0  ;;  %s1273_s8 = smov 28  }
 0x1be   :  { %v848_v14 = vmul.f32 2.236068, %v843_v4  ;;  %485 = vmatpush.msra.mxu3 %v424_v10  ;;  %545 = vmatpush.msra.mxu1 %v460_v19  ;;  %v217_v10 = vadd.f32 %v1931_v15, %v1944_v21 }
 0x1bf   :  { %515 = vmatpush.msra.mxu0 %v442_v13  ;;  %v332_v34 = vpop.f32.mrf.mxu0 }
 0x1c0   :  { %903 = vrot.lane.b32.xlu1 %v848_v14, %s1272_s4  ;;  %486 = vmatpush.msra.mxu3 %v423_v25  ;;  %v411_v53 = vmul.f32 %v332_v34, %v211_v38  ;;  %v364_v61 = vpop.f32.mrf.mxu1  ;;  %v249_v25 = vadd.f32 %v1946_v59, %v1974_v11 }
 0x1c1   :  { %546 = vmatpush.msra.mxu1 %v459_v27  ;;  %487 = vmatmul.f32.vlgmr.msra.gmra.mxu3 %v408_v46  ;;  %v412_v62 = vmul.f32 %v364_v61, %v243_v42 }
 0x1c2   :  { %516 = vmatpush.msra.mxu0 %v441_v24  ;;  %v220_v24 = vadd.f32 %v1987_v41, %v1944_v21 }
 0x1c3   :  { %v835_v30 = vpop.permute.xlu1 %834  ;;  %547 = vmatpush.msra.mxu1 %v458_v29  ;;  %v271_v44 = vpop.f32.mrf.mxu3 }
 0x1c4   :  { %v846_v20 = vsub.f32 %v1510_v17, %v835_v30  ;;  %517 = vmatpush.msra.mxu0 %v440_v43  ;;  %v272_v18 = vadd.f32 %v271_v44, %v2014_v32  ;;  %v393_v58 = vpop.f32.mrf.mxu2 }
 0x1c5   :  { %548 = vmatpush.msra.mxu1 %v457_v47 }
 0x1c6   :  { %v851_v17 = vmul.f32 2.236068, %v846_v20  ;;  %518 = vmatpush.msra.mxu0 %v439_v39  ;;  %v410_v60 = vmul.f32 %v393_v58, %v272_v18  ;;  %v252_v20 = vadd.f32 %v2001_v16, %v1974_v11 }
 0x1c7   :  { %549 = vmatpush.msra.mxu1 %v456_v40  ;;  %519 = vmatmul.f32.vlgmr.msra.gmra.mxu0 %v409_v5  ;;  %v335_v54 = vpop.f32.mrf.mxu0 }
 0x1c8   :  { %909 = vrot.lane.b32.xlu1 %v851_v17, %s1272_s4  ;;  %v414_v6 = vmul.f32 %v335_v54, %v214_v22  ;;  %v941_v17 = vpop.permute.xlu2 %940  ;;  %s1274_s4 = smov 33  }
 0x1c9   :  { %550 = vmatpush.msra.mxu1 %v455_v35  ;;  %490 = vmatmul.f32.gmra.mxu3 %v411_v53 }
 0x1ca   :  { %551 = vmatmul.f32.vlgmr.msra.gmra.mxu1 %v410_v60 }
 0x1cb   :  { %v1033_v26 = vpop.permute.xlu1 %1032  ;;  %v274_v4 = vpop.f32.mrf.mxu3 }
 0x1cc   :  { %v2036_v2 = vsel %vm1123_vm2, %v1795_v49, %v1033_v26  ;;  %v275_v8 = vadd.f32 %v274_v4, %v2014_v32  ;;  %v396_v0 = vpop.f32.mrf.mxu2  ;;  %v367_v49 = vpop.f32.mrf.mxu1 }
 0x1cd   :  { %v415_v19 = vmul.f32 %v367_v49, %v246_v45 }
 0x1ce   :  { %v413_v14 = vmul.f32 %v396_v0, %v275_v8 }
 0x1cf   :  { %522 = vmatmul.f32.gmra.mxu0 %v412_v62  ;;  %v338_v12 = vpop.f32.mrf.mxu0 }
 0x1d0   :  { %v417_v27 = vmul.f32 %v338_v12, %v217_v10  ;;  %v947_v44 = vpop.permute.xlu2 %946 }
 0x1d1   :  { %493 = vmatmul.f32.gmra.mxu3 %v414_v6 }
 0x1d2   :  { %554 = vmatmul.f32.gmra.mxu1 %v413_v14 }
 0x1d3   :  { %v277_v7 = vpop.f32.mrf.mxu3  ;;  %v943_v16 = vpop.permute.xlu1 %942 }
 0x1d4   :  { %v278_v13 = vadd.f32 %v277_v7, %v2014_v32  ;;  %v399_v28 = vpop.f32.mrf.mxu2  ;;  %v370_v46 = vpop.f32.mrf.mxu1 }
 0x1d5   :  { %v418_v29 = vmul.f32 %v370_v46, %v249_v25 }
 0x1d6   :  { %v416_v51 = vmul.f32 %v399_v28, %v278_v13 }
 0x1d7   :  { %525 = vmatmul.f32.gmra.mxu0 %v415_v19  ;;  %v341_v43 = vpop.f32.mrf.mxu0 }
 0x1d8   :  { %v420_v57 = vmul.f32 %v341_v43, %v220_v24 }
 0x1d9   :  { %496 = vmatmul.f32.gmra.mxu3 %v417_v27 }
 0x1da   :  { %557 = vmatmul.f32.gmra.mxu1 %v416_v51 }
 0x1db   :  { %v280_v15 = vpop.f32.mrf.mxu3 }
 0x1dc   :  { %v281_v30 = vadd.f32 %v280_v15, %v2014_v32  ;;  %v402_v59 = vpop.f32.mrf.mxu2  ;;  %v373_v38 = vpop.f32.mrf.mxu1 }
 0x1dd   :  { %v421_v5 = vmul.f32 %v373_v38, %v252_v20 }
 0x1de   :  { %v419_v47 = vmul.f32 %v402_v59, %v281_v30 }
 0x1df   :  { %528 = vmatmul.f32.gmra.mxu0 %v418_v29 }
 0x1e1   :  { %499 = vmatmul.f32.gmra.mxu3 %v420_v57 }
 0x1e2   :  { %560 = vmatmul.f32.gmra.mxu1 %v419_v47 }
 0x1e3   :  { %v283_v39 = vpop.f32.mrf.mxu3 }
 0x1e4   :  { %v284_v21 = vadd.f32 %v283_v39, %v2014_v32  ;;  %v405_v41 = vpop.f32.mrf.mxu2  ;;  %v939_v32 = vpop.permute.xlu0 %938 }
 0x1e6   :  { %v422_v40 = vmul.f32 %v405_v41, %v284_v21 }
 0x1e7   :  { %531 = vmatmul.f32.gmra.mxu0 %v421_v5 }
 0x1ea   :  { %563 = vmatmul.f32.gmra.mxu1 %v422_v40 }
 0x1ec   :  { %v945_v42 = vpop.permute.xlu0 %944 }
 0x1fa   :  { %v908_v18 = vpop.permute.xlu2 %907 }
 0x1fb   :  { %v962_v11 = vsel %vm959_vm1, %v1832_v23, %v908_v18 }
 0x1fc   :  { %v967_v34 = vsel %vm577_vm0, %v962_v11, %v1834_v3 }
 0x1fd   :  { %v973_v35 = vsel %vm970_vm4, %v967_v34, %v943_v16 }
 0x1fe   :  { %1050 = vrot.lane.b32.xlu0 %v973_v35, %s1273_s8 }
 0x223   :  { %v906_v53 = vpop.permute.xlu0 %905 }
 0x224   :  { %v961_v58 = vsel %vm959_vm1, %v1802_v36, %v906_v53 }
 0x225   :  { %v966_v60 = vsel %vm577_vm0, %v961_v58, %v1859_v37 }
 0x226   :  { %v972_v26 = vsel %vm970_vm4, %v966_v60, %v941_v17 }
 0x227   :  { %1048 = vrot.lane.b32.xlu1 %v972_v26, %s1273_s8 }
 0x22b   :  { %v912_v23 = vpop.permute.xlu0 %911 }
 0x22c   :  { %v964_v3 = vsel %vm959_vm1, %v1806_v52, %v912_v23 }
 0x22d   :  { %v969_v61 = vsel %vm577_vm0, %v964_v3, %v1903_v31 }
 0x22e   :  { %v975_v22 = vsel %vm970_vm4, %v969_v61, %v947_v44 }
 0x22f   :  { %1054 = vrot.lane.b32.xlu1 %v975_v22, %s1273_s8 }
 0x232   :  { %v904_v62 = vpop.permute.xlu1 %903 }
 0x233   :  { %v960_v36 = vsel %vm959_vm1, %v1810_v55, %v904_v62 }
 0x234   :  { %v965_v37 = vsel %vm577_vm0, %v960_v36, %v1812_v56 }
 0x235   :  { %v971_v4 = vsel %vm970_vm4, %v965_v37, %v939_v32 }
 0x236   :  { %1061 = vrot.lane.b32.xlu0 %v971_v4, %s1274_s4  ;;  %1046 = vrot.lane.b32.xlu2 %v971_v4, %s1273_s8 }
 0x237   :  { %1065 = vrot.lane.b32.xlu1 %v973_v35, %s1274_s4 }
 0x23a   :  { %v910_v52 = vpop.permute.xlu1 %909 }
 0x23b   :  { %v963_v31 = vsel %vm959_vm1, %v1816_v1, %v910_v52 }
 0x23c   :  { %v968_v8 = vsel %vm577_vm0, %v963_v31, %v1818_v9  ;;  %vm1129_vm0 = vcmask 228352  }
 0x23d   :  { %v974_v54 = vsel %vm970_vm4, %v968_v8, %v945_v42 }
 0x23e   :  { %1067 = vrot.lane.b32.xlu0 %v974_v54, %s1274_s4  ;;  %1052 = vrot.lane.b32.xlu2 %v974_v54, %s1273_s8 }
 0x23f   :  { %1076 = vrot.lane.b32.xlu1 %v971_v4, %s1275_s17 }
 0x244   :  { %v488_v56 = vpop.f32.mrf.mxu3  ;;  %v520_v1 = vpop.f32.mrf.mxu0 }
 0x245   :  { %v521_v46 = vadd.f32 %v520_v1, %v488_v56 }
 0x246   :  { %1078 = vrot.lane.b32.xlu0 %v972_v26, %s1275_s17  ;;  %1063 = vrot.lane.b32.xlu2 %v972_v26, %s1274_s4 }
 0x247   :  { %1082 = vrot.lane.b32.xlu1 %v974_v54, %s1275_s17  ;;  %v552_v45 = vpop.f32.mrf.mxu1 }
 0x248   :  { %v553_v30 = vadd.f32 %v552_v45, %v521_v46 }
 0x24a   :  { %v1153_v38 = vmul.f32 0.25, %v553_v30 }
 0x24c   :  { %v491_v0 = vpop.f32.mrf.mxu3  ;;  %v523_v14 = vpop.f32.mrf.mxu0 }
 0x24d   :  { %v524_v41 = vadd.f32 %v523_v14, %v491_v0 }
 0x24e   :  { %1084 = vrot.lane.b32.xlu0 %v975_v22, %s1275_s17  ;;  %1069 = vrot.lane.b32.xlu2 %v975_v22, %s1274_s4 }
 0x24f   :  { %1093 = vrot.lane.b32.xlu1 %v972_v26, %s1276_s18  ;;  %v555_v7 = vpop.f32.mrf.mxu1 }
 0x254   :  { %v494_v27 = vpop.f32.mrf.mxu3  ;;  %v526_v28 = vpop.f32.mrf.mxu0 }
 0x255   :  { %v527_v53 = vadd.f32 %v526_v28, %v494_v27 }
 0x256   :  { %1095 = vrot.lane.b32.xlu0 %v973_v35, %s1276_s18  ;;  %1080 = vrot.lane.b32.xlu2 %v973_v35, %s1275_s17 }
 0x257   :  { %1099 = vrot.lane.b32.xlu1 %v975_v22, %s1276_s18  ;;  %v558_v51 = vpop.f32.mrf.mxu1 }
 0x258   :  { %v559_v31 = vadd.f32 %v558_v51, %v527_v53 }
 0x25a   :  { %v1155_v1 = vmul.f32 0.25, %v559_v31 }
 0x25c   :  { %v497_v43 = vpop.f32.mrf.mxu3  ;;  %v529_v20 = vpop.f32.mrf.mxu0 }
 0x25d   :  { %v530_v5 = vadd.f32 %v529_v20, %v497_v43 }
 0x25e   :  { %1091 = vrot.lane.b32.xlu2 %v971_v4, %s1276_s18 }
 0x25f   :  { %v561_v59 = vpop.f32.mrf.mxu1 }
 0x260   :  { %v562_v11 = vadd.f32 %v561_v59, %v530_v5 }
 0x262   :  { %v1156_v58 = vmul.f32 0.25, %v562_v11 }
 0x264   :  { %v500_v16 = vpop.f32.mrf.mxu3  ;;  %v532_v34 = vpop.f32.mrf.mxu0 }
 0x265   :  { %v533_v22 = vadd.f32 %v532_v34, %v500_v16 }
 0x266   :  { %1097 = vrot.lane.b32.xlu2 %v974_v54, %s1276_s18 }
 0x267   :  { %v564_v37 = vpop.f32.mrf.mxu1 }
 0x268   :  { %v565_v8 = vadd.f32 %v564_v37, %v533_v22 }
 0x26a   :  { %v1157_v0 = vmul.f32 0.25, %v565_v8 }
 0x270   :  { %v2079_v49 = vpop.permute.xlu0 %1050 }
 0x271   :  { %v1132_v54 = vsel %vm1129_vm0, %v1828_v33, %v2079_v49 }
 0x290   :  { %v1047_v55 = vpop.permute.xlu2 %1046 }
 0x291   :  { %v1130_v57 = vsel %vm1129_vm0, %v1792_v48, %v1047_v55  ;;  %v556_v48 = vadd.f32 %v555_v7, %v524_v41 }
 0x293   :  { %v1154_v61 = vmul.f32 0.25, %v556_v48 }
 0x298   :  { %v1053_v9 = vpop.permute.xlu2 %1052 }
 0x299   :  { %v1049_v6 = vpop.permute.xlu1 %1048  ;;  %v1133_v35 = vsel %vm1129_vm0, %v2036_v2, %v1053_v9 }
 0x29a   :  { %v1131_v32 = vsel %vm1129_vm0, %v1798_v50, %v1049_v6 }
 0x2a0   :  { %v1064_v10 = vpop.permute.xlu2 %1063 }
 0x2a1   :  { %v1055_v19 = vpop.permute.xlu1 %1054  ;;  %v1137_v60 = vsel %vm1135_vm6, %v1131_v32, %v1064_v10 }
 0x2a2   :  { %v1134_v55 = vsel %vm1129_vm0, %v1971_v63, %v1055_v19 }
 0x2a8   :  { %v2081_v13 = vpop.permute.xlu2 %1069  ;;  %v1062_v12 = vpop.permute.xlu0 %1061 }
 0x2a9   :  { %v1066_v25 = vpop.permute.xlu1 %1065  ;;  %v1136_v47 = vsel %vm1135_vm6, %v1130_v57, %v1062_v12  ;;  %v1140_v9 = vsel %vm1135_vm6, %v1134_v55, %v2081_v13 }
 0x2aa   :  { %v1138_v56 = vsel %vm1135_vm6, %v1132_v54, %v1066_v25 }
 0x2b0   :  { %v1081_v24 = vpop.permute.xlu2 %1080  ;;  %v1068_v29 = vpop.permute.xlu0 %1067 }
 0x2b1   :  { %v1077_v15 = vpop.permute.xlu1 %1076  ;;  %v1139_v42 = vsel %vm1135_vm6, %v1133_v35, %v1068_v29  ;;  %v1144_v45 = vsel %vm1141_vm5, %v1138_v56, %v1081_v24 }
 0x2b2   :  { %v1142_v39 = vsel %vm1141_vm5, %v1136_v47, %v1077_v15 }
 0x2b8   :  { %v1092_v17 = vpop.permute.xlu2 %1091  ;;  %v1079_v21 = vpop.permute.xlu0 %1078 }
 0x2b9   :  { %v1148_v40 = vsel %vm1147_vm7, %v1142_v39, %v1092_v17  ;;  %v1083_v44 = vpop.permute.xlu1 %1082  ;;  %v1143_v62 = vsel %vm1141_vm5, %v1137_v60, %v1079_v21 }
 0x2ba   :  { %v1158_v18 = vmul.f32 %v1153_v38, %v1148_v40  ;;  %v1145_v26 = vsel %vm1141_vm5, %v1139_v42, %v1083_v44 }
 0x2bc   :  { %1164 = vst.msk [vmem:[%s2139_s9] sm:$0xff] %vm1163_vm8, %v1158_v18 }
 0x2c0   :  { %v1098_v23 = vpop.permute.xlu2 %1097  ;;  %v1085_v3 = vpop.permute.xlu0 %1084 }
 0x2c1   :  { %v1151_v36 = vsel %vm1147_vm7, %v1145_v26, %v1098_v23  ;;  %v1094_v2 = vpop.permute.xlu1 %1093  ;;  %v1146_v14 = vsel %vm1141_vm5, %v1140_v9, %v1085_v3 }
 0x2c2   :  { %v1161_v4 = vmul.f32 %v1156_v58, %v1151_v36  ;;  %v1149_v50 = vsel %vm1147_vm7, %v1143_v62, %v1094_v2 }
 0x2c3   :  { %v1159_v52 = vmul.f32 %v1154_v61, %v1149_v50 }
 0x2c4   :  { %1167 = vst.msk [vmem:[%s2139_s9 + $0x18] sm:$0xff] %vm1163_vm8, %v1161_v4 }
 0x2c5   :  { %1165 = vst.msk [vmem:[%s2139_s9 + $0x8] sm:$0xff] %vm1163_vm8, %v1159_v52 }
 0x2c8   :  { %v1096_v6 = vpop.permute.xlu0 %1095 }
 0x2c9   :  { %v1100_v10 = vpop.permute.xlu1 %1099  ;;  %v1150_v7 = vsel %vm1147_vm7, %v1144_v45, %v1096_v6 }
 0x2ca   :  { %v1152_v33 = vsel %vm1147_vm7, %v1146_v14, %v1100_v10  ;;  %v1160_v49 = vmul.f32 %v1155_v1, %v1150_v7 }
 0x2cb   :  { %v1162_v12 = vmul.f32 %v1157_v0, %v1152_v33 }
 0x2cc   :  { %1166 = vst.msk [vmem:[%s2139_s9 + $0x10] sm:$0xff] %vm1163_vm8, %v1160_v49 }
 0x2cd   :  { %1168 = vst.msk [vmem:[%s2139_s9 + $0x20] sm:$0xff] %vm1163_vm8, %v1162_v12 }

// kernel: matformer_conv_equi.7
= control target key start
LH: loop header
LB: loop body
LE: loop exit
PB: predicated region body
PF: predicated region fallthrough
CT: control target
= control target key end

     0   :  { %s311_s0 = inlined_call_operand.vmem [shape: f32[16,16], index: 0, kind: input, shape index: {}]   ;;  %s312_s1 = inlined_call_operand.vmem [shape: f32[1,16], index: 1, kind: input, shape index: {}]   ;;  %s313_s2 = inlined_call_operand.vmem [shape: f32[1,16], index: 2, kind: input, shape index: {}]   ;;  %s314_s3 = inlined_call_operand.vmem [shape: f32[1,16], index: 3, kind: input, shape index: {}]   ;;  %s315_s4 = inlined_call_operand.vmem [shape: f32[1,16], index: 4, kind: input, shape index: {}]   ;;  %s316_s5 = inlined_call_operand.vmem [shape: f32[16,32], index: 5, kind: input, shape index: {}]   ;;  %s317_s6 = inlined_call_operand.vmem [shape: f32[1,32], index: 6, kind: input, shape index: {}]   ;;  %s318_s7 = inlined_call_operand.vmem [shape: f32[16,32], index: 7, kind: input, shape index: {}]   ;;  %s319_s8 = inlined_call_operand.hbm [shape: f32[16,32], index: 8, kind: output, shape index: {}]  }
   0x1   :  { %v85_v0 = vld [vmem:[%s316_s5 + $0x8] sm:$0xff]  ;;  %v84_v1 = vld [vmem:[%s316_s5] sm:$0xff] }
   0x2   :  { %v30_v2 = vld [vmem:[%s311_s0] sm:$0xff]  ;;  %111 = vmatpush.msra.mxu0 %v85_v0  ;;  %175 = vmatpush.msra.mxu1 %v85_v0  ;;  %v31_v7 = vld [vmem:[%s311_s0 + $0x8] sm:$0xff] }
   0x3   :  { %v180_v3 = vld [vmem:[%s312_s1] ss:$0 sm:$0xff] }
   0x4   :  { %v181_v4 = vld [vmem:[%s313_s2] ss:$0 sm:$0xff]  ;;  %112 = vmatpush.msra.mxu0 %v84_v1  ;;  %176 = vmatpush.msra.mxu1 %v84_v1  ;;  %v36_v5 = vsub.f32 %v30_v2, %v180_v3  ;;  %v37_v8 = vsub.f32 %v31_v7, %v180_v3 }
   0x5   :  { %v182_v6 = vld [vmem:[%s314_s3] ss:$0 sm:$0xff] }
   0x6   :  { %13 = vsyncpa [#allocation3], 0  ;;  %v42_v9 = vmul.f32 %v181_v4, %v36_v5  ;;  %v183_v10 = vld [vmem:[%s315_s4] ss:$0 sm:$0xff]  ;;  %v43_v11 = vmul.f32 %v181_v4, %v37_v8  ;;  %vm90_vm3 = vcmask 130048   ;;  %s227_s3 = smov [#allocation2]  }
   0x7   :  { %v184_v40 = vld [vmem:[%s317_s6] ss:$0 sm:$0xff]  ;;  %s159_s4 = sshll.u32 %s227_s3, 4  ;;  %s161_s22 = sshll.u32 %s319_s8, 4  ;;  %v149_v3 = vld [vmem:[%s318_s7 + $0x8] sm:$0xff]  ;;  %vm152_vm8 = vcmask 261120   ;;  %s160_s4 = int_to_ptr.vmem [resolvable:$true] %s159_s4  ;;  %s162_s22 = int_to_ptr.hbm [resolvable:$true] %s161_s22 }
   0x8   :  { %v48_v12 = vmul.f32 %v182_v6, %v42_v9  ;;  %v49_v13 = vmul.f32 %v182_v6, %v43_v11  ;;  %v148_v63 = vld [vmem:[%s318_s7] sm:$0xff]  ;;  %s228_s25 = smov 128   ;;  %s229_s8 = smov 8  }
   0xa   :  { %v54_v14 = vadd.f32 %v183_v10, %v48_v12  ;;  %v55_v15 = vadd.f32 %v183_v10, %v49_v13 }
   0xc   :  { %v58_v16 = vmin.f32 %v54_v14, 20.0  ;;  %v59_v17 = vmin.f32 %v55_v15, 20.0  ;;  %vm56_vm1 = vcmp.gt.f32.partialorder %v54_v14, 20.0  ;;  %vm57_vm4 = vcmp.gt.f32.partialorder %v55_v15, 20.0 }
   0xe   :  { %v60_v18 = vmul.f32 1.442695, %v58_v16  ;;  %v62_v19 = vmul.f32 1.442695, %v59_v17 }
  0x10   :  { %185 = vpow2.f32 %v60_v18 }
  0x11   :  { %187 = vpow2.f32 %v62_v19 }
  0x16   :  { %v186_v20 = vpop.eup %185 }
  0x17   :  { %v188_v21 = vpop.eup %187  ;;  %v64_v22 = vadd.f32 1.0, %v186_v20  ;;  %v67_v23 = vmul.f32 -0.5, %v186_v20  ;;  %v70_v27 = vand.u32 2147483647, %v186_v20 }
  0x18   :  { %v73_v24 = vadd.f32 1.0, %v188_v21  ;;  %v76_v25 = vmul.f32 -0.5, %v188_v21  ;;  %v79_v29 = vand.u32 2147483647, %v188_v21 }
  0x19   :  { %189 = vlog2.f32 %v64_v22  ;;  %v68_v26 = vadd.f32 1.0, %v67_v23  ;;  %vm71_vm0 = vcmp.lt.f32.partialorder %v70_v27, 0.0004427343 }
  0x1a   :  { %191 = vlog2.f32 %v73_v24  ;;  %v77_v28 = vadd.f32 1.0, %v76_v25  ;;  %vm80_vm2 = vcmp.lt.f32.partialorder %v79_v29, 0.0004427343 }
  0x1b   :  { %v69_v30 = vmul.f32 %v186_v20, %v68_v26 }
  0x1c   :  { %v78_v32 = vmul.f32 %v188_v21, %v77_v28 }
  0x1f   :  { %v190_v31 = vpop.eup %189 }
  0x20   :  { %v192_v33 = vpop.eup %191  ;;  %v66_v34 = vmul.f32 0.6931472, %v190_v31 }
  0x21   :  { %v75_v35 = vmul.f32 0.6931472, %v192_v33 }
  0x22   :  { %v72_v36 = vsel %vm71_vm0, %v69_v30, %v66_v34 }
  0x23   :  { %v82_v37 = vsel %vm56_vm1, %v54_v14, %v72_v36  ;;  %v81_v38 = vsel %vm80_vm2, %v78_v32, %v75_v35 }
  0x24   :  { %173 = vmatmul.msk.f32.vlgmr.msra.gmra.mxu0 %vm90_vm3, %v82_v37  ;;  %v83_v39 = vsel %vm57_vm4, %v55_v15, %v81_v38 }
  0x25   :  { %174 = vmatmul.msk.f32.vlgmr.msra.gmra.mxu1 %vm90_vm3, %v83_v39 }
  0xa1   :  { %v114_v41 = vpop.f32.mrf.mxu0 }
  0xa2   :  { %v115_v42 = vadd.f32 %v184_v40, %v114_v41  ;;  %v117_v43 = vpop.f32.mrf.mxu1 }
  0xa3   :  { %v118_v44 = vadd.f32 %v184_v40, %v117_v43 }
  0xa4   :  { %v122_v45 = vmin.f32 %v115_v42, 20.0  ;;  %vm120_vm6 = vcmp.gt.f32.partialorder %v115_v42, 20.0 }
  0xa5   :  { %v123_v46 = vmin.f32 %v118_v44, 20.0  ;;  %vm121_vm9 = vcmp.gt.f32.partialorder %v118_v44, 20.0 }
  0xa6   :  { %v124_v47 = vmul.f32 1.442695, %v122_v45 }
  0xa7   :  { %v126_v48 = vmul.f32 1.442695, %v123_v46 }
  0xa8   :  { %193 = vpow2.f32 %v124_v47 }
  0xa9   :  { %195 = vpow2.f32 %v126_v48 }
  0xae   :  { %v194_v49 = vpop.eup %193 }
  0xaf   :  { %v196_v50 = vpop.eup %195  ;;  %v128_v51 = vadd.f32 1.0, %v194_v49  ;;  %v131_v52 = vmul.f32 -0.5, %v194_v49  ;;  %v134_v56 = vand.u32 2147483647, %v194_v49 }
  0xb0   :  { %v137_v53 = vadd.f32 1.0, %v196_v50  ;;  %v140_v54 = vmul.f32 -0.5, %v196_v50  ;;  %v143_v58 = vand.u32 2147483647, %v196_v50 }
  0xb1   :  { %197 = vlog2.f32 %v128_v51  ;;  %v132_v55 = vadd.f32 1.0, %v131_v52  ;;  %vm135_vm5 = vcmp.lt.f32.partialorder %v134_v56, 0.0004427343 }
  0xb2   :  { %199 = vlog2.f32 %v137_v53  ;;  %v141_v57 = vadd.f32 1.0, %v140_v54  ;;  %vm144_vm7 = vcmp.lt.f32.partialorder %v143_v58, 0.0004427343 }
  0xb3   :  { %v133_v62 = vmul.f32 %v194_v49, %v132_v55 }
  0xb4   :  { %v142_v1 = vmul.f32 %v196_v50, %v141_v57 }
  0xb7   :  { %v198_v59 = vpop.eup %197 }
  0xb8   :  { %v200_v60 = vpop.eup %199  ;;  %v130_v61 = vmul.f32 0.6931472, %v198_v59 }
  0xb9   :  { %v139_v0 = vmul.f32 0.6931472, %v200_v60 }
  0xba   :  { %v136_v2 = vsel %vm135_vm5, %v133_v62, %v130_v61 }
  0xbb   :  { %v146_v4 = vsel %vm120_vm6, %v115_v42, %v136_v2  ;;  %v145_v5 = vsel %vm144_vm7, %v142_v1, %v139_v0 }
  0xbc   :  { %v150_v6 = vadd.f32 %v148_v63, %v146_v4  ;;  %v147_v7 = vsel %vm121_vm9, %v118_v44, %v145_v5 }
  0xbd   :  { %v151_v8 = vadd.f32 %v149_v3, %v147_v7 }
  0xbe   :  { %153 = vst.msk [vmem:[#allocation2] sm:$0xff] %vm152_vm8, %v150_v6 }
  0xbf   :  { %154 = vst.msk [vmem:[#allocation2 + $0x8] sm:$0xff] %vm152_vm8, %v151_v8 }
  0xc0   :  { %167 = dma.vmem_to_hbm [thread:$0]  %s160_s4, 256, %s162_s22, [#allocation3], %s228_s25, %s228_s25, %s229_s8  }
  0xc1   :  { %225 = dma.done.wait [#allocation3], 256  }
  0xc2   :  { %226 = vsyncadd [#allocation3], 4294967040 }
  0xc3   :  { %172 = vsyncpa [#allocation3], 1 }

// kernel: matformer_conv_equi.6
= control target key start
LH: loop header
LB: loop body
LE: loop exit
PB: predicated region body
PF: predicated region fallthrough
CT: control target
= control target key end

     0   :  { %vm296_vm0 = vcmask 23552   ;;  %s1273_s19 = smov 127   ;;  %s1274_s20 = smov 22   ;;  %s2075_s1 = inlined_call_operand.vmem [shape: f32[40,3], index: 1, kind: input, shape index: {}]   ;;  %s2076_s3 = inlined_call_operand.vmem [shape: f32[16,16], index: 3, kind: input, shape index: {}]   ;;  %s2077_s2 = inlined_call_operand.vmem [shape: f32[40,16], index: 2, kind: input, shape index: {}]   ;;  %s2078_s4 = inlined_call_operand.vmem [shape: f32[1,16], index: 4, kind: input, shape index: {}]   ;;  %s2079_s5 = inlined_call_operand.vmem [shape: f32[16,384], index: 5, kind: input, shape index: {}]   ;;  %s2080_s7 = inlined_call_operand.vmem [shape: f32[48,384], index: 7, kind: input, shape index: {}]   ;;  %s2081_s0 = inlined_call_operand.vmem [shape: f32[40,48], index: 0, kind: input, shape index: {}]   ;;  %s2082_s8 = inlined_call_operand.vmem [shape: f32[384,16], index: 8, kind: input, shape index: {}]   ;;  %s2083_s6 = inlined_call_operand.vmem [shape: f32[1,384], index: 6, kind: input, shape index: {}]   ;;  %s2084_s9 = inlined_call_operand.vmem [shape: f32[40,16], index: 9, kind: output, shape index: {}]  }
   0x1   :  { %v1337_v0 = vld [vmem:[%s2075_s1 + $0x20] sm:$0xff]  ;;  %v1342_v1 = vld [vmem:[%s2075_s1 + $0x10] sm:$0xff]  ;;  %v1358_v6 = vld [vmem:[%s2075_s1 + $0x18] sm:$0xff]  ;;  %s1275_s21 = smov 2   ;;  %s1276_s22 = smov 16  }
   0x2   :  { %v1347_v2 = vld [vmem:[%s2075_s1] sm:$0xff]  ;;  %v295_v3 = vmul.f32 %v1337_v0, %v1337_v0  ;;  %v293_v4 = vmul.f32 %v1342_v1, %v1342_v1  ;;  %v1366_v10 = vld [vmem:[%s2075_s1 + $0x8] sm:$0xff]  ;;  %v294_v11 = vmul.f32 %v1358_v6, %v1358_v6  ;;  %s1272_s1 = smov 126   ;;  %s1277_s23 = smov 25  }
   0x3   :  { %v291_v5 = vmul.f32 %v1347_v2, %v1347_v2  ;;  %v292_v12 = vmul.f32 %v1366_v10, %v1366_v10  ;;  %s1278_s24 = smov 19   ;;  %s1279_s25 = smov 1  }
   0x4   :  { %v309_v7 = vsel %vm296_vm0, %v295_v3, 0.0  ;;  %v303_v8 = vsel %vm296_vm0, %v293_v4, 0.0  ;;  %v306_v13 = vsel %vm296_vm0, %v294_v11, 0.0 }
   0x5   :  { %v297_v9 = vsel %vm296_vm0, %v291_v5, 0.0  ;;  %310 = vadd.xlane.f32.xlu2 %v309_v7  ;;  %304 = vadd.xlane.f32.xlu1 %v303_v8  ;;  %v300_v14 = vsel %vm296_vm0, %v292_v12, 0.0 }
   0x6   :  { %298 = vadd.xlane.f32.xlu0 %v297_v9 }
   0xd   :  { %307 = vadd.xlane.f32.xlu1 %v306_v13 }
   0xe   :  { %301 = vadd.xlane.f32.xlu0 %v300_v14 }
  0x78   :  { %v311_v15 = vpop.xlane.xlu2 %310  ;;  %v305_v16 = vpop.xlane.xlu1 %304 }
  0x79   :  { %1232 = vrsqrt.f32 %v311_v15  ;;  %v299_v17 = vpop.xlane.xlu0 %298  ;;  %vm367_vm1 = vcmp.eq.f32.partialorder %v311_v15, inf  ;;  %vm369_vm2 = vcmp.eq.f32.partialorder %v311_v15, 0.0  ;;  %v370_v39 = vand.u32 2147483648, %v311_v15 }
  0x7a   :  { %1234 = vrsqrt.f32 %v305_v16  ;;  %vm343_vm3 = vcmp.eq.f32.partialorder %v305_v16, inf  ;;  %vm345_vm4 = vcmp.eq.f32.partialorder %v305_v16, 0.0  ;;  %v346_v46 = vand.u32 2147483648, %v305_v16 }
  0x7b   :  { %1236 = vrsqrt.f32 %v299_v17  ;;  %vm319_vm5 = vcmp.eq.f32.partialorder %v299_v17, inf  ;;  %v322_v53 = vand.u32 2147483648, %v299_v17  ;;  %vm321_vm6 = vcmp.eq.f32.partialorder %v299_v17, 0.0 }
  0x7f   :  { %v1233_v18 = vpop.eup %1232 }
  0x80   :  { %v1235_v19 = vpop.eup %1234  ;;  %v361_v20 = vmul.f32 %v1233_v18, %v311_v15  ;;  %v1374_v21 = vpop.xlane.xlu1 %307 }
  0x81   :  { %v1237_v22 = vpop.eup %1236  ;;  %v337_v23 = vmul.f32 %v1235_v19, %v305_v16  ;;  %1238 = vrsqrt.f32 %v1374_v21  ;;  %v1377_v24 = vpop.xlane.xlu0 %301  ;;  %vm355_vm7 = vcmp.eq.f32.partialorder %v1374_v21, inf  ;;  %vm357_vm8 = vcmp.eq.f32.partialorder %v1374_v21, 0.0 }
  0x82   :  { %v362_v25 = vmul.f32 %v1233_v18, %v361_v20  ;;  %v313_v26 = vmul.f32 %v1237_v22, %v299_v17  ;;  %1240 = vrsqrt.f32 %v1377_v24  ;;  %v358_v5 = vand.u32 2147483648, %v1374_v21 }
  0x83   :  { %v338_v27 = vmul.f32 %v1235_v19, %v337_v23  ;;  %vm331_vm9 = vcmp.eq.f32.partialorder %v1377_v24, inf  ;;  %v334_v9 = vand.u32 2147483648, %v1377_v24  ;;  %vm333_vm10 = vcmp.eq.f32.partialorder %v1377_v24, 0.0 }
  0x84   :  { %v363_v28 = vmul.f32 0.5, %v362_v25  ;;  %v314_v29 = vmul.f32 %v1237_v22, %v313_v26 }
  0x85   :  { %v339_v30 = vmul.f32 0.5, %v338_v27 }
  0x86   :  { %v364_v31 = vsub.f32 1.5, %v363_v28  ;;  %v315_v32 = vmul.f32 0.5, %v314_v29 }
  0x87   :  { %v1239_v33 = vpop.eup %1238  ;;  %v340_v34 = vsub.f32 1.5, %v339_v30 }
  0x88   :  { %v1241_v35 = vpop.eup %1240  ;;  %v365_v36 = vmul.f32 %v1233_v18, %v364_v31  ;;  %v316_v37 = vsub.f32 1.5, %v315_v32  ;;  %v349_v38 = vmul.f32 %v1239_v33, %v1374_v21 }
  0x89   :  { %v341_v40 = vmul.f32 %v1235_v19, %v340_v34  ;;  %v325_v41 = vmul.f32 %v1241_v35, %v1377_v24 }
  0x8a   :  { %v366_v42 = vmul.f32 %v365_v36, %v311_v15  ;;  %v317_v43 = vmul.f32 %v1237_v22, %v316_v37  ;;  %v350_v44 = vmul.f32 %v1239_v33, %v349_v38 }
  0x8b   :  { %v342_v45 = vmul.f32 %v341_v40, %v305_v16  ;;  %v326_v47 = vmul.f32 %v1241_v35, %v325_v41 }
  0x8c   :  { %v368_v48 = vsel %vm367_vm1, %v311_v15, %v366_v42  ;;  %v318_v49 = vmul.f32 %v317_v43, %v299_v17  ;;  %v351_v50 = vmul.f32 0.5, %v350_v44 }
  0x8d   :  { %v371_v51 = vsel %vm369_vm2, %v370_v39, %v368_v48  ;;  %v344_v52 = vsel %vm343_vm3, %v305_v16, %v342_v45  ;;  %v327_v54 = vmul.f32 0.5, %v326_v47 }
  0x8e   :  { %v347_v55 = vsel %vm345_vm4, %v346_v46, %v344_v52  ;;  %v320_v56 = vsel %vm319_vm5, %v299_v17, %v318_v49  ;;  %v352_v57 = vsub.f32 1.5, %v351_v50  ;;  %v1383_v58 = vmax.f32 %v371_v51, 1e-12 }
  0x8f   :  { %v323_v59 = vsel %vm321_vm6, %v322_v53, %v320_v56  ;;  %v328_v60 = vsub.f32 1.5, %v327_v54  ;;  %v1385_v61 = vmax.f32 %v347_v55, 1e-12 }
  0x90   :  { %v372_v62 = vmax.f32 %v323_v59, 1e-12  ;;  %v353_v63 = vmul.f32 %v1239_v33, %v352_v57  ;;  %vm442_vm14 = vweird.f32 %v1383_v58  ;;  %v448_v52 = vand.u32 2147483648, %v1383_v58 }
  0x91   :  { %v329_v3 = vmul.f32 %v1241_v35, %v328_v60 }
  0x92   :  { %1242 = vrcp.f32 %v372_v62  ;;  %v354_v4 = vmul.f32 %v353_v63, %v1374_v21  ;;  %v386_v25 = vand.u32 2147483647, %v372_v62  ;;  %vm382_vm12 = vweird.f32 %v372_v62 }
  0x93   :  { %1244 = vrcp.f32 %v1383_v58  ;;  %v330_v7 = vmul.f32 %v329_v3, %v1377_v24  ;;  %v418_v63 = vand.u32 2147483648, %v1385_v61  ;;  %v449_v3 = vor.u32 1.1754944e-38, %v448_v52 }
  0x94   :  { %1246 = vrcp.f32 %v1385_v61  ;;  %v356_v8 = vsel %vm355_vm7, %v1374_v21, %v354_v4  ;;  %v388_v21 = vand.u32 2147483648, %v372_v62  ;;  %vm387_vm15 = vcmp.eq.f32.partialorder %v386_v25, 8.507059e+37 }
  0x95   :  { %v359_v11 = vsel %vm357_vm8, %v358_v5, %v356_v8  ;;  %v332_v12 = vsel %vm331_vm9, %v1377_v24, %v330_v7  ;;  %v419_v4 = vor.u32 1.1754944e-38, %v418_v63 }
  0x96   :  { %v375_v13 = vmax.f32 %v359_v11, 1e-12  ;;  %v335_v14 = vsel %vm333_vm10, %v334_v9, %v332_v12  ;;  %v389_v30 = vor.u32 1.1754944e-38, %v388_v21 }
  0x97   :  { %v373_v15 = vmax.f32 %v335_v14, 1e-12 }
  0x98   :  { %v1243_v16 = vpop.eup %1242  ;;  %1248 = vrcp.f32 %v375_v13  ;;  %v431_v37 = vand.u32 2147483647, %v375_v13  ;;  %v433_v38 = vand.u32 2147483648, %v375_v13  ;;  %vm427_vm3 = vweird.f32 %v375_v13 }
  0x99   :  { %v1399_v17 = vpop.eup %1244  ;;  %1250 = vrcp.f32 %v373_v15  ;;  %v378_v18 = vmul.f32 %v1243_v16, %v372_v62  ;;  %vm383_vm11 = vweird.f32 %v1243_v16  ;;  %v403_v42 = vand.u32 2147483648, %v373_v15 }
  0x9a   :  { %v1401_v19 = vpop.eup %1246  ;;  %v438_v22 = vmul.f32 %v1399_v17, %v1383_v58  ;;  %vm384_vm13 = vmor %vm382_vm12, %vm383_vm11  ;;  %v401_v44 = vand.u32 2147483647, %v373_v15  ;;  %v434_v48 = vor.u32 1.1754944e-38, %v433_v38  ;;  %vm397_vm5 = vweird.f32 %v373_v15 }
  0x9b   :  { %v379_v20 = vsub.f32 1.0, %v378_v18  ;;  %v408_v24 = vmul.f32 %v1401_v19, %v1385_v61  ;;  %vm443_vm6 = vweird.f32 %v1399_v17  ;;  %vm432_vm7 = vcmp.eq.f32.partialorder %v431_v37, 8.507059e+37 }
  0x9c   :  { %v439_v32 = vsub.f32 1.0, %v438_v22  ;;  %v404_v51 = vor.u32 1.1754944e-38, %v403_v42  ;;  %vm402_vm9 = vcmp.eq.f32.partialorder %v401_v44, 8.507059e+37  ;;  %vm1427_vm10 = vmor %vm442_vm14, %vm443_vm6  ;;  %vm413_vm11 = vweird.f32 %v1401_v19 }
  0x9d   :  { %v380_v23 = vmul.f32 %v1243_v16, %v379_v20  ;;  %v409_v35 = vsub.f32 1.0, %v408_v24  ;;  %vm412_vm12 = vweird.f32 %v1385_v61  ;;  %vm678_vm6 = vcmask 15360  }
  0x9e   :  { %v1249_v26 = vpop.eup %1248  ;;  %v440_v45 = vmul.f32 %v1399_v17, %v439_v32  ;;  %vm414_vm14 = vmor %vm412_vm12, %vm413_vm11 }
  0x9f   :  { %v1251_v27 = vpop.eup %1250  ;;  %v381_v28 = vadd.f32 %v1243_v16, %v380_v23  ;;  %v423_v29 = vmul.f32 %v1249_v26, %v375_v13  ;;  %vm428_vm1 = vweird.f32 %v1249_v26  ;;  %v410_v47 = vmul.f32 %v1401_v19, %v409_v35 }
  0xa0   :  { %v393_v31 = vmul.f32 %v1251_v27, %v373_v15  ;;  %vm398_vm2 = vweird.f32 %v1251_v27  ;;  %vm429_vm4 = vmor %vm427_vm3, %vm428_vm1  ;;  %v441_v55 = vadd.f32 %v1399_v17, %v440_v45  ;;  %vm43_vm1 = vcmask 130048  }
  0xa1   :  { %v385_v33 = vsel %vm384_vm13, %v1243_v16, %v381_v28  ;;  %v424_v34 = vsub.f32 1.0, %v423_v29  ;;  %vm399_vm8 = vmor %vm397_vm5, %vm398_vm2  ;;  %v411_v60 = vadd.f32 %v1401_v19, %v410_v47  ;;  %vm830_vm2 = vcmask 154624  }
  0xa2   :  { %v390_v36 = vsel %vm387_vm15, %v389_v30, %v385_v33  ;;  %v394_v39 = vsub.f32 1.0, %v393_v31  ;;  %vm836_vm3 = vcmask 179200   ;;  %vm672_vm5 = vcmask 7168  }
  0xa3   :  { %v1409_v40 = vmul.f32 %v390_v36, %v1347_v2  ;;  %v425_v41 = vmul.f32 %v1249_v26, %v424_v34  ;;  %v446_v2 = vand.u32 2147483647, %v1383_v58  ;;  %v445_v58 = vsel %vm1427_vm10, %v1399_v17, %v441_v55 }
  0xa4   :  { %v395_v43 = vmul.f32 %v1251_v27, %v394_v39 }
  0xa5   :  { %467 = vrot.lane.b32.xlu2 %v1409_v40, %s1272_s1  ;;  %487 = vrot.lane.b32.xlu1 %v1409_v40, %s1273_s19  ;;  %v426_v46 = vadd.f32 %v1249_v26, %v425_v41  ;;  %vm447_vm13 = vcmp.eq.f32.partialorder %v446_v2, 8.507059e+37  ;;  %v1454_v8 = vmul.f32 %v1409_v40, %v1409_v40  ;;  %v452_v12 = vmul.f32 1.7320508, %v1409_v40 }
  0xa6   :  { %v396_v49 = vadd.f32 %v1251_v27, %v395_v43  ;;  %v450_v5 = vsel %vm447_vm13, %v449_v3, %v445_v58  ;;  %v457_v17 = vmul.f32 3.8729835, %v1409_v40 }
  0xa7   :  { %v430_v50 = vsel %vm429_vm4, %v1249_v26, %v426_v46  ;;  %v1450_v7 = vmul.f32 %v450_v5, %v1337_v0  ;;  %vm842_vm4 = vcmask 203776  }
  0xa8   :  { %v435_v53 = vsel %vm432_vm7, %v434_v48, %v430_v50  ;;  %v400_v54 = vsel %vm399_vm8, %v1251_v27, %v396_v49  ;;  %vm689_vm7 = vcmask 31744  }
  0xa9   :  { %v1423_v56 = vmul.f32 %v435_v53, %v1358_v6  ;;  %v405_v57 = vsel %vm402_vm9, %v404_v51, %v400_v54  ;;  %v416_v6 = vand.u32 2147483647, %v1385_v61  ;;  %v461_v30 = vmul.f32 3.8729835, %v1450_v7 }
  0xaa   :  { %v1434_v62 = vmul.f32 %v405_v57, %v1366_v10  ;;  %v415_v10 = vsel %vm414_vm14, %v1401_v19, %v411_v60 }
  0xab   :  { %vm417_vm15 = vcmp.eq.f32.partialorder %v416_v6, 8.507059e+37  ;;  %v1468_v0 = vmul.f32 %v1423_v56, %v1423_v56  ;;  %v1511_v16 = vmul.f32 1.7320508, %v1423_v56  ;;  %v460_v20 = vmul.f32 3.8729835, %v1423_v56 }
  0xac   :  { %469 = vrot.lane.b32.xlu0 %v1434_v62, %s1272_s1  ;;  %v420_v61 = vsel %vm417_vm15, %v419_v4, %v415_v10  ;;  %v1464_v11 = vmul.f32 %v1434_v62, %v1434_v62  ;;  %v453_v13 = vmul.f32 1.7320508, %v1434_v62  ;;  %v458_v24 = vmul.f32 3.8729835, %v1434_v62 }
  0xad   :  { %473 = vrot.lane.b32.xlu2 %v1423_v56, %s1272_s1  ;;  %489 = vrot.lane.b32.xlu1 %v1434_v62, %s1273_s19  ;;  %v421_v9 = vmul.f32 %v420_v61, %v1342_v1  ;;  %v1478_v1 = vmul.f32 %v1450_v7, %v1450_v7 }
  0xaf   :  { %v1491_v14 = vmul.f32 %v421_v9, %v421_v9  ;;  %v454_v15 = vmul.f32 1.7320508, %v421_v9  ;;  %v459_v32 = vmul.f32 3.8729835, %v421_v9 }
  0xb4   :  { %475 = vrot.lane.b32.xlu0 %v1450_v7, %s1272_s1 }
  0xb5   :  { %517 = vrot.lane.b32.xlu2 %v1454_v8, %s1272_s1  ;;  %491 = vrot.lane.b32.xlu1 %v421_v9, %s1273_s19 }
  0xbc   :  { %519 = vrot.lane.b32.xlu0 %v1464_v11, %s1272_s1 }
  0xbd   :  { %523 = vrot.lane.b32.xlu2 %v1468_v0, %s1272_s1  ;;  %493 = vrot.lane.b32.xlu1 %v1423_v56, %s1273_s19 }
  0xc4   :  { %525 = vrot.lane.b32.xlu0 %v1478_v1, %s1272_s1 }
  0xc5   :  { %730 = vrot.lane.b32.xlu2 %v452_v12, %s1274_s20  ;;  %495 = vrot.lane.b32.xlu1 %v1450_v7, %s1273_s19  ;;  %s1282_s19 = smov 38  }
  0xcc   :  { %572 = vrot.lane.b32.xlu0 %v1454_v8, %s1275_s21 }
  0xcd   :  { %471 = vrot.lane.b32.xlu1 %v421_v9, %s1272_s1  ;;  %702 = vrot.lane.b32.xlu2 %v453_v13, %s1276_s22 }
  0xd4   :  { %574 = vrot.lane.b32.xlu0 %v1464_v11, %s1275_s21 }
  0xd5   :  { %521 = vrot.lane.b32.xlu1 %v1491_v14, %s1272_s1  ;;  %747 = vrot.lane.b32.xlu2 %v453_v13, %s1277_s23  ;;  %s1281_s1 = smov 28  }
  0xdc   :  { %576 = vrot.lane.b32.xlu0 %v1491_v14, %s1275_s21 }
  0xdd   :  { %700 = vrot.lane.b32.xlu1 %v452_v12, %s1276_s22  ;;  %719 = vrot.lane.b32.xlu2 %v454_v15, %s1278_s24 }
  0xe4   :  { %578 = vrot.lane.b32.xlu0 %v1468_v0, %s1275_s21 }
  0xe5   :  { %745 = vrot.lane.b32.xlu1 %v452_v12, %s1277_s23 }
  0xec   :  { %580 = vrot.lane.b32.xlu0 %v1478_v1, %s1275_s21 }
  0xed   :  { %717 = vrot.lane.b32.xlu1 %v453_v13, %s1278_s24 }
  0xf4   :  { %715 = vrot.lane.b32.xlu0 %v452_v12, %s1278_s24 }
  0xf5   :  { %734 = vrot.lane.b32.xlu1 %v454_v15, %s1274_s20 }
  0xfc   :  { %732 = vrot.lane.b32.xlu0 %v453_v13, %s1274_s20 }
  0xfd   :  { %706 = vrot.lane.b32.xlu1 %v1511_v16, %s1276_s22 }
  0xff   :  { %v468_v18 = vpop.permute.xlu2 %467 }
 0x100   :  { %v1517_v19 = vmul.f32 %v468_v18, %v457_v17 }
 0x104   :  { %704 = vrot.lane.b32.xlu0 %v454_v15, %s1276_s22 }
 0x107   :  { %v474_v21 = vpop.permute.xlu2 %473 }
 0x108   :  { %v1521_v22 = vmul.f32 %v474_v21, %v460_v20 }
 0x10c   :  { %749 = vrot.lane.b32.xlu0 %v454_v15, %s1277_s23 }
 0x10f   :  { %v518_v42 = vpop.permute.xlu2 %517 }
 0x110   :  { %v532_v43 = vadd.f32 %v518_v42, %v1454_v8 }
 0x112   :  { %v537_v2 = vmul.f32 0.5, %v532_v43 }
 0x117   :  { %v488_v23 = vpop.permute.xlu1 %487  ;;  %v524_v49 = vpop.permute.xlu2 %523 }
 0x118   :  { %v502_v25 = vmul.f32 %v488_v23, %v457_v17  ;;  %v535_v63 = vadd.f32 %v524_v49, %v1468_v0  ;;  %v35_v49 = vld [vmem:[%s2077_s2 + $0x18] sm:$0xff] }
 0x11a   :  { %602 = vrot.lane.b32.xlu1 %v502_v25, %s1279_s25  ;;  %637 = vrot.lane.b32.xlu2 %v502_v25, %s1275_s21  ;;  %v540_v10 = vmul.f32 0.5, %v535_v63 }
 0x11e   :  { %v470_v26 = vpop.permute.xlu0 %469 }
 0x11f   :  { %v1527_v27 = vmul.f32 %v470_v26, %v458_v24  ;;  %v490_v28 = vpop.permute.xlu1 %489  ;;  %v731_v55 = vpop.permute.xlu2 %730 }
 0x120   :  { %v503_v29 = vmul.f32 %v490_v28, %v458_v24 }
 0x122   :  { %639 = vrot.lane.b32.xlu0 %v503_v29, %s1275_s21  ;;  %604 = vrot.lane.b32.xlu2 %v503_v29, %s1279_s25 }
 0x126   :  { %v476_v31 = vpop.permute.xlu0 %475 }
 0x127   :  { %v1532_v33 = vmul.f32 %v476_v31, %v461_v30  ;;  %v492_v34 = vpop.permute.xlu1 %491  ;;  %v703_v4 = vpop.permute.xlu2 %702 }
 0x128   :  { %v504_v35 = vmul.f32 %v492_v34, %v459_v32  ;;  %v826_v12 = vsel %vm43_vm1, 1.0, %v703_v4 }
 0x12a   :  { %606 = vrot.lane.b32.xlu0 %v504_v35, %s1279_s25  ;;  %641 = vrot.lane.b32.xlu1 %v504_v35, %s1275_s21 }
 0x12e   :  { %v520_v36 = vpop.permute.xlu0 %519 }
 0x12f   :  { %v494_v37 = vpop.permute.xlu1 %493  ;;  %v533_v50 = vadd.f32 %v520_v36, %v1464_v11  ;;  %v748_v18 = vpop.permute.xlu2 %747 }
 0x130   :  { %v505_v38 = vmul.f32 %v494_v37, %v460_v20 }
 0x131   :  { %v538_v53 = vmul.f32 0.5, %v533_v50 }
 0x132   :  { %608 = vrot.lane.b32.xlu1 %v505_v38, %s1279_s25  ;;  %643 = vrot.lane.b32.xlu2 %v505_v38, %s1275_s21 }
 0x136   :  { %v526_v39 = vpop.permute.xlu0 %525 }
 0x137   :  { %v496_v40 = vpop.permute.xlu1 %495  ;;  %v536_v61 = vadd.f32 %v526_v39, %v1478_v1  ;;  %v720_v29 = vpop.permute.xlu2 %719 }
 0x138   :  { %v506_v41 = vmul.f32 %v496_v40, %v461_v30 }
 0x139   :  { %v541_v15 = vmul.f32 0.5, %v536_v61 }
 0x13a   :  { %645 = vrot.lane.b32.xlu0 %v506_v41, %s1275_s21  ;;  %610 = vrot.lane.b32.xlu2 %v506_v41, %s1279_s25 }
 0x13e   :  { %v573_v44 = vpop.permute.xlu0 %572 }
 0x13f   :  { %v472_v45 = vpop.permute.xlu1 %471  ;;  %v587_v46 = vsub.f32 %v1454_v8, %v573_v44 }
 0x140   :  { %v1542_v47 = vmul.f32 %v472_v45, %v459_v32 }
 0x141   :  { %v592_v48 = vmul.f32 1.9364917, %v587_v46  ;;  %v38_v46 = vld [vmem:[%s2076_s3 + $0x8] sm:$0xff] }
 0x142   :  { %547 = vrot.lane.b32.xlu2 %v537_v2, %s1279_s25  ;;  %v37_v2 = vld [vmem:[%s2076_s3] sm:$0xff]  ;;  %1215 = vmatpush.msra.mxu2 %v38_v46 }
 0x143   :  { %657 = vrot.lane.b32.xlu1 %v592_v48, %s1275_s21  ;;  %73 = vmatpush.msra.mxu0 %v38_v46  ;;  %v34_v48 = vld [vmem:[%s2077_s2 + $0x10] sm:$0xff] }
 0x144   :  { %1216 = vmatpush.msra.mxu2 %v37_v2 }
 0x145   :  { %74 = vmatpush.msra.mxu0 %v37_v2  ;;  %1182 = vmatmul.msk.f32.vlgmr.msra.gmra.mxu2 %vm43_vm1, %v34_v48 }
 0x146   :  { %v575_v51 = vpop.permute.xlu0 %574 }
 0x147   :  { %v522_v52 = vpop.permute.xlu1 %521  ;;  %v588_v20 = vsub.f32 %v1464_v11, %v575_v51 }
 0x148   :  { %v534_v54 = vadd.f32 %v522_v52, %v1491_v14  ;;  %v36_v52 = vld [vmem:[%s2077_s2 + $0x20] sm:$0xff] }
 0x149   :  { %v593_v24 = vmul.f32 1.9364917, %v588_v20  ;;  %v1658_v20 = vld [vmem:[%s2078_s4] ss:$0 sm:$0xff]  ;;  %s1280_s4 = smov 33  }
 0x14a   :  { %549 = vrot.lane.b32.xlu2 %v538_v53, %s1279_s25  ;;  %v539_v60 = vmul.f32 0.5, %v534_v54 }
 0x14d   :  { %1183 = vmatmul.msk.f32.gmra.mxu2 %vm43_vm1, %v35_v49 }
 0x14e   :  { %v577_v56 = vpop.permute.xlu0 %576 }
 0x14f   :  { %v701_v57 = vpop.permute.xlu1 %700  ;;  %v589_v59 = vsub.f32 %v1491_v14, %v577_v56 }
 0x150   :  { %v825_v21 = vsel %vm43_vm1, 1.0, %v701_v57  ;;  %v32_v57 = vld [vmem:[%s2077_s2] sm:$0xff] }
 0x151   :  { %v594_v62 = vmul.f32 1.9364917, %v589_v59  ;;  %1180 = vmatmul.msk.f32.vlgmr.msra.gmra.mxu0 %vm43_vm1, %v32_v57 }
 0x152   :  { %551 = vrot.lane.b32.xlu2 %v539_v60, %s1279_s25 }
 0x153   :  { %661 = vrot.lane.b32.xlu0 %v594_v62, %s1275_s21 }
 0x155   :  { %1184 = vmatmul.msk.f32.gmra.mxu2 %vm43_vm1, %v36_v52 }
 0x156   :  { %v579_v3 = vpop.permute.xlu0 %578 }
 0x157   :  { %v746_v6 = vpop.permute.xlu1 %745  ;;  %v590_v58 = vsub.f32 %v1468_v0, %v579_v3 }
 0x159   :  { %v595_v5 = vmul.f32 1.9364917, %v590_v58 }
 0x15a   :  { %553 = vrot.lane.b32.xlu2 %v540_v10, %s1279_s25 }
 0x15b   :  { %663 = vrot.lane.b32.xlu1 %v595_v5, %s1275_s21 }
 0x15e   :  { %v581_v9 = vpop.permute.xlu0 %580 }
 0x15f   :  { %v718_v13 = vpop.permute.xlu1 %717  ;;  %v591_v30 = vsub.f32 %v1478_v1, %v581_v9 }
 0x160   :  { %v832_v17 = vsel %vm830_vm2, %v826_v12, %v718_v13 }
 0x161   :  { %v596_v34 = vmul.f32 1.9364917, %v591_v30 }
 0x162   :  { %555 = vrot.lane.b32.xlu2 %v541_v15, %s1279_s25 }
 0x163   :  { %751 = vrot.lane.b32.xlu1 %v1511_v16, %s1277_s23 }
 0x166   :  { %v716_v23 = vpop.permute.xlu0 %715 }
 0x167   :  { %v831_v25 = vsel %vm830_vm2, %v825_v21, %v716_v23  ;;  %v735_v39 = vpop.permute.xlu1 %734 }
 0x168   :  { %v837_v26 = vsel %vm836_vm3, %v831_v25, %v731_v55 }
 0x169   :  { %v1567_v28 = vsel %vm842_vm4, %v837_v26, %v746_v6 }
 0x16a   :  { %659 = vrot.lane.b32.xlu2 %v593_v24, %s1275_s21 }
 0x16e   :  { %v733_v31 = vpop.permute.xlu0 %732 }
 0x16f   :  { %v838_v32 = vsel %vm836_vm3, %v832_v17, %v733_v31  ;;  %v707_v10 = vpop.permute.xlu1 %706 }
 0x170   :  { %v1573_v35 = vsel %vm842_vm4, %v838_v32, %v748_v18 }
 0x172   :  { %665 = vrot.lane.b32.xlu2 %v596_v34, %s1275_s21 }
 0x174   :  { %v1576_v36 = vpop.permute.xlu2 %637 }
 0x176   :  { %v705_v37 = vpop.permute.xlu0 %704 }
 0x177   :  { %v827_v38 = vsel %vm43_vm1, 1.0, %v705_v37 }
 0x178   :  { %v833_v40 = vsel %vm830_vm2, %v827_v38, %v720_v29 }
 0x179   :  { %v839_v41 = vsel %vm836_vm3, %v833_v40, %v735_v39 }
 0x17a   :  { %736 = vrot.lane.b32.xlu2 %v1511_v16, %s1274_s20 }
 0x17c   :  { %v605_v42 = vpop.permute.xlu2 %604 }
 0x17d   :  { %v1585_v43 = vsel %vm672_vm5, %v1527_v27, %v605_v42 }
 0x17e   :  { %v750_v44 = vpop.permute.xlu0 %749 }
 0x17f   :  { %v1588_v45 = vsel %vm842_vm4, %v839_v41, %v750_v44  ;;  %v828_v41 = vsel %vm43_vm1, 1.0, %v707_v10 }
 0x18c   :  { %v1599_v27 = vpop.permute.xlu2 %643  ;;  %v603_v4 = vpop.permute.xlu1 %602 }
 0x18d   :  { %v673_v26 = vsel %vm672_vm5, %v1517_v19, %v603_v4 }
 0x194   :  { %v611_v50 = vpop.permute.xlu2 %610  ;;  %v640_v61 = vpop.permute.xlu0 %639 }
 0x195   :  { %v1608_v51 = vsel %vm672_vm5, %v1532_v33, %v611_v50 }
 0x19c   :  { %v548_v53 = vpop.permute.xlu2 %547  ;;  %v1643_v5 = vpop.permute.xlu1 %641 }
 0x19d   :  { %v562_v54 = vsub.f32 %v1454_v8, %v548_v53  ;;  %v33_v8 = vld [vmem:[%s2077_s2 + $0x8] sm:$0xff]  ;;  %v607_v12 = vpop.permute.xlu0 %606 }
 0x19e   :  { %1181 = vmatmul.msk.f32.gmra.mxu0 %vm43_vm1, %v33_v8  ;;  %v675_v52 = vsel %vm672_vm5, %v1542_v47, %v607_v12  ;;  %v164_v47 = vld [vmem:[%s2079_s5 + $0x18] sm:$0xff] }
 0x19f   :  { %v567_v55 = vmul.f32 2.236068, %v562_v54  ;;  %1217 = vmatpush.msra.mxu3 %v164_v47  ;;  %204 = vmatpush.msra.mxu1 %v164_v47 }
 0x1a1   :  { %622 = vrot.lane.b32.xlu0 %v567_v55, %s1279_s25 }
 0x1a4   :  { %v550_v56 = vpop.permute.xlu2 %549  ;;  %v1645_v9 = vpop.permute.xlu1 %608 }
 0x1a5   :  { %v563_v33 = vsub.f32 %v1464_v11, %v550_v56  ;;  %v1630_v11 = vmul.f32 1.7320508, %v1450_v7 }
 0x1a7   :  { %v568_v59 = vmul.f32 2.236068, %v563_v33 }
 0x1a9   :  { %721 = vrot.lane.b32.xlu0 %v1511_v16, %s1278_s24  ;;  %624 = vrot.lane.b32.xlu1 %v568_v59, %s1279_s25  ;;  %v161_v59 = vld [vmem:[%s2079_s5] sm:$0xff] }
 0x1aa   :  { %1218 = vmatpush.msra.mxu3 %v161_v59  ;;  %205 = vmatpush.msra.mxu1 %v161_v59 }
 0x1ac   :  { %v552_v60 = vpop.permute.xlu2 %551  ;;  %v1647_v15 = vpop.permute.xlu0 %645 }
 0x1ad   :  { %v564_v62 = vsub.f32 %v1491_v14, %v552_v60 }
 0x1af   :  { %v569_v63 = vmul.f32 2.236068, %v564_v62 }
 0x1b1   :  { %738 = vrot.lane.b32.xlu0 %v1630_v11, %s1274_s20  ;;  %723 = vrot.lane.b32.xlu1 %v1630_v11, %s1278_s24  ;;  %s1283_s20 = smov 43  }
 0x1b2   :  { %626 = vrot.lane.b32.xlu2 %v569_v63, %s1279_s25 }
 0x1b4   :  { %v554_v16 = vpop.permute.xlu2 %553 }
 0x1b5   :  { %v565_v3 = vsub.f32 %v1468_v0, %v554_v16  ;;  %v658_v13 = vpop.permute.xlu1 %657 }
 0x1b7   :  { %v570_v6 = vmul.f32 2.236068, %v565_v3 }
 0x1b9   :  { %628 = vrot.lane.b32.xlu0 %v570_v6, %s1279_s25 }
 0x1ba   :  { %708 = vrot.lane.b32.xlu2 %v1630_v11, %s1276_s22 }
 0x1bc   :  { %v556_v14 = vpop.permute.xlu2 %555 }
 0x1bd   :  { %v566_v7 = vsub.f32 %v1478_v1, %v556_v14 }
 0x1bf   :  { %v571_v58 = vmul.f32 2.236068, %v566_v7 }
 0x1c1   :  { %630 = vrot.lane.b32.xlu1 %v571_v58, %s1279_s25 }
 0x1c4   :  { %v660_v0 = vpop.permute.xlu2 %659 }
 0x1c5   :  { %v1653_v1 = vpop.permute.xlu0 %661 }
 0x1c8   :  { %v82_v23 = vpop.f32.mrf.mxu2 }
 0x1c9   :  { %v1661_v25 = vadd.f32 %v1658_v20, %v82_v23 }
 0x1cb   :  { %v98_v24 = vmin.f32 %v1661_v25, 20.0  ;;  %vm93_vm8 = vcmp.gt.f32.partialorder %v1661_v25, 20.0 }
 0x1cc   :  { %v1649_v17 = vpop.permute.xlu2 %665 }
 0x1cd   :  { %v1651_v18 = vpop.permute.xlu1 %663  ;;  %v105_v31 = vmul.f32 1.442695, %v98_v24 }
 0x1ce   :  { %v76_v62 = vpop.f32.mrf.mxu0 }
 0x1cf   :  { %1252 = vpow2.f32 %v105_v31  ;;  %v1707_v7 = vadd.f32 %v1658_v20, %v76_v62 }
 0x1d0   :  { %v85_v39 = vpop.f32.mrf.mxu2 }
 0x1d1   :  { %v1673_v19 = vadd.f32 %v1658_v20, %v85_v39  ;;  %v96_v4 = vmin.f32 %v1707_v7, 20.0  ;;  %vm91_vm15 = vcmp.gt.f32.partialorder %v1707_v7, 20.0 }
 0x1d3   :  { %v101_v23 = vmul.f32 1.442695, %v96_v4  ;;  %vm94_vm11 = vcmp.gt.f32.partialorder %v1673_v19, 20.0 }
 0x1d4   :  { %v737_v21 = vpop.permute.xlu2 %736 }
 0x1d5   :  { %v752_v29 = vpop.permute.xlu1 %751  ;;  %v1253_v40 = vpop.eup %1252 }
 0x1d6   :  { %v129_v55 = vadd.f32 1.0, %v1253_v40  ;;  %v132_v58 = vmul.f32 -0.5, %v1253_v40  ;;  %v135_v12 = vand.u32 2147483647, %v1253_v40 }
 0x1d8   :  { %v88_v54 = vpop.f32.mrf.mxu2  ;;  %vm136_vm9 = vcmp.lt.f32.partialorder %v135_v12, 0.0004427343 }
 0x20c   :  { %v627_v37 = vpop.permute.xlu2 %626 }
 0x20d   :  { %v681_v57 = vsel %vm678_vm6, %v675_v52, %v627_v37 }
 0x20e   :  { %v686_v8 = vsel %vm296_vm0, %v681_v57, %v1643_v5 }
 0x213   :  { %v623_v30 = vpop.permute.xlu0 %622 }
 0x214   :  { %v679_v32 = vsel %vm678_vm6, %v673_v26, %v623_v30  ;;  %v709_v33 = vpop.permute.xlu2 %708 }
 0x215   :  { %v684_v34 = vsel %vm296_vm0, %v679_v32, %v1576_v36  ;;  %v99_v36 = vmin.f32 %v1673_v19, 20.0  ;;  %v829_v16 = vsel %vm43_vm1, 1.0, %v709_v33  ;;  %v162_v32 = vld [vmem:[%s2079_s5 + $0x8] sm:$0xff] }
 0x216   :  { %v690_v38 = vsel %vm689_vm7, %v684_v34, %v658_v13  ;;  %v163_v34 = vld [vmem:[%s2079_s5 + $0x10] sm:$0xff] }
 0x217   :  { %780 = vrot.lane.b32.xlu2 %v690_v38, %s1280_s4  ;;  %765 = vrot.lane.b32.xlu0 %v690_v38, %s1281_s1  ;;  %v107_v46 = vmul.f32 1.442695, %v99_v36 }
 0x218   :  { %795 = vrot.lane.b32.xlu1 %v690_v38, %s1282_s19 }
 0x219   :  { %1254 = vpow2.f32 %v107_v46 }
 0x21a   :  { %1256 = vlog2.f32 %v129_v55 }
 0x21b   :  { %v722_v42 = vpop.permute.xlu0 %721  ;;  %v625_v44 = vpop.permute.xlu1 %624 }
 0x21c   :  { %v834_v2 = vsel %vm830_vm2, %v828_v41, %v722_v42  ;;  %v680_v48 = vsel %vm678_vm6, %v1585_v43, %v625_v44  ;;  %v1693_v43 = vadd.f32 %v1658_v20, %v88_v54 }
 0x21d   :  { %v840_v49 = vsel %vm836_vm3, %v834_v2, %v737_v21  ;;  %v685_v50 = vsel %vm296_vm0, %v680_v48, %v640_v61  ;;  %v133_v61 = vadd.f32 1.0, %v132_v58 }
 0x21e   :  { %v691_v53 = vsel %vm689_vm7, %v685_v50, %v660_v0  ;;  %v1687_v56 = vsel %vm842_vm4, %v840_v49, %v752_v29  ;;  %v100_v60 = vmin.f32 %v1693_v43, 20.0  ;;  %v692_v0 = vsel %vm689_vm7, %v686_v8, %v1653_v1  ;;  %v165_v1 = vld [vmem:[%s2079_s5 + $0x20] sm:$0xff]  ;;  %v166_v29 = vld [vmem:[%s2079_s5 + $0x28] sm:$0xff] }
 0x21f   :  { %810 = vrot.lane.b32.xlu0 %v690_v38, %s1283_s20  ;;  %797 = vrot.lane.b32.xlu2 %v691_v53, %s1282_s19  ;;  %v1255_v63 = vpop.eup %1254  ;;  %v134_v26 = vmul.f32 %v1253_v40, %v133_v61  ;;  %v79_v38 = vpop.f32.mrf.mxu0  ;;  %v676_v49 = vsel %vm672_vm5, %v1521_v22, %v1645_v9  ;;  %vm95_vm13 = vcmp.gt.f32.partialorder %v1693_v43, 20.0  ;;  %vm854_vm5 = vcmask 269312  }
 0x220   :  { %767 = vrot.lane.b32.xlu1 %v691_v53, %s1281_s1  ;;  %v109_v14 = vmul.f32 1.442695, %v100_v60  ;;  %v1257_v5 = vpop.eup %1256  ;;  %v138_v13 = vadd.f32 1.0, %v1255_v63  ;;  %v141_v31 = vmul.f32 -0.5, %v1255_v63  ;;  %236 = vmatpush.msrb.mxu2 %v165_v1  ;;  %v144_v39 = vand.u32 2147483647, %v1255_v63 }
 0x221   :  { %v131_v24 = vmul.f32 0.6931472, %v1257_v5  ;;  %268 = vmatpush.msrb.mxu3 %v166_v29  ;;  %v1738_v40 = vadd.f32 %v1658_v20, %v79_v38  ;;  %v893_v29 = vld [vmem:[%s2080_s7 + $0x58] sm:$0xff]  ;;  %v891_v38 = vld [vmem:[%s2080_s7 + $0x48] sm:$0xff] }
 0x222   :  { %1258 = vpow2.f32 %v109_v14  ;;  %v142_v41 = vadd.f32 1.0, %v141_v31  ;;  %237 = vmatpush.msrb.mxu2 %v162_v32  ;;  %vm1744_vm10 = vcmp.lt.f32.partialorder %v144_v39, 0.0004427343  ;;  %v898_v31 = vld [vmem:[%s2080_s7 + $0x80] sm:$0xff]  ;;  %v892_v39 = vld [vmem:[%s2080_s7 + $0x50] sm:$0xff] }
 0x223   :  { %v739_v3 = vpop.permute.xlu0 %738  ;;  %v724_v6 = vpop.permute.xlu1 %723  ;;  %1260 = vlog2.f32 %v138_v13  ;;  %v137_v30 = vsel %vm136_vm9, %v134_v26, %v131_v24  ;;  %269 = vmatpush.msrb.mxu3 %v163_v34  ;;  %v97_v2 = vmin.f32 %v1738_v40, 20.0  ;;  %v894_v32 = vld [vmem:[%s2080_s7 + $0x60] sm:$0xff]  ;;  %958 = vmatpush.msrb.mxu1 %v898_v31  ;;  %v895_v34 = vld [vmem:[%s2080_s7 + $0x68] sm:$0xff] }
 0x224   :  { %v835_v10 = vsel %vm830_vm2, %v829_v16, %v724_v6  ;;  %1262 = vpow2.f32 %v101_v23  ;;  %v1733_v37 = vsel %vm93_vm8, %v1661_v25, %v137_v30  ;;  %v143_v48 = vmul.f32 %v1255_v63, %v142_v41  ;;  %v897_v30 = vld [vmem:[%s2080_s7 + $0x78] sm:$0xff]  ;;  %v1040_v31 = vld [vmem:[%s2082_s8 + $0x68] sm:$0xff] }
 0x225   :  { %v1714_v21 = vsel %vm836_vm3, %v835_v10, %v739_v3  ;;  %1187 = vmatmul.msk.f32.vlgmr.msra.gmra.mxu3 %vm43_vm1, %v1733_v37  ;;  %v103_v52 = vmul.f32 1.442695, %v97_v2  ;;  %vm92_vm2 = vcmp.gt.f32.partialorder %v1738_v40, 20.0  ;;  %926 = vmatpush.msrb.mxu0 %v897_v30  ;;  %v885_v41 = vld [vmem:[%s2080_s7 + $0x18] sm:$0xff]  ;;  %v883_v2 = vld [vmem:[%s2080_s7 + $0x8] sm:$0xff]  ;;  %vm848_vm3 = vcmask 228352  }
 0x226   :  { %959 = vmatpush.msrb.mxu1 %v895_v34  ;;  %vm900_vm8 = vcmask 392192  }
 0x227   :  { %782 = vrot.lane.b32.xlu0 %v691_v53, %s1280_s4  ;;  %769 = vrot.lane.b32.xlu2 %v692_v0, %s1281_s1 }
 0x228   :  { %812 = vrot.lane.b32.xlu1 %v691_v53, %s1283_s20  ;;  %v1259_v36 = vpop.eup %1258  ;;  %927 = vmatpush.msrb.mxu0 %v894_v32  ;;  %v1056_v32 = vld [vmem:[%s2082_s8 + $0xe8] sm:$0xff] }
 0x229   :  { %v147_v42 = vadd.f32 1.0, %v1259_v36  ;;  %v150_v44 = vmul.f32 -0.5, %v1259_v36  ;;  %v1261_v25 = vpop.eup %1260  ;;  %v153_v22 = vand.u32 2147483647, %v1259_v36  ;;  %960 = vmatpush.msrb.mxu1 %v892_v39 }
 0x22a   :  { %v1263_v20 = vpop.eup %1262  ;;  %v140_v53 = vmul.f32 0.6931472, %v1261_v25  ;;  %928 = vmatpush.msrb.mxu0 %v891_v38 }
 0x22b   :  { %v629_v46 = vpop.permute.xlu0 %628  ;;  %1264 = vlog2.f32 %v147_v42  ;;  %v151_v54 = vadd.f32 1.0, %v150_v44  ;;  %v111_v9 = vadd.f32 1.0, %v1263_v20  ;;  %v114_v57 = vmul.f32 -0.5, %v1263_v20  ;;  %v886_v42 = vld [vmem:[%s2080_s7 + $0x20] sm:$0xff]  ;;  %v887_v44 = vld [vmem:[%s2080_s7 + $0x28] sm:$0xff] }
 0x22c   :  { %v682_v55 = vsel %vm678_vm6, %v676_v49, %v629_v46  ;;  %1266 = vpow2.f32 %v103_v52  ;;  %v146_v33 = vsel %vm1744_vm10, %v143_v48, %v140_v53  ;;  %vm154_vm12 = vcmp.lt.f32.partialorder %v153_v22, 0.0004427343  ;;  %v882_v46 = vld [vmem:[%s2080_s7] sm:$0xff]  ;;  %v884_v48 = vld [vmem:[%s2080_s7 + $0x10] sm:$0xff] }
 0x22d   :  { %v159_v47 = vsel %vm94_vm11, %v1673_v19, %v146_v33  ;;  %1268 = vlog2.f32 %v111_v9  ;;  %v687_v59 = vsel %vm296_vm0, %v682_v55, %v1599_v27  ;;  %v152_v60 = vmul.f32 %v1259_v36, %v151_v54  ;;  %v888_v36 = vld [vmem:[%s2080_s7 + $0x30] sm:$0xff]  ;;  %v872_v54 = vld [vmem:[%s2081_s0] sm:$0xff] }
 0x22e   :  { %1188 = vmatmul.msk.f32.gmra.mxu3 %vm43_vm1, %v159_v47  ;;  %v115_v8 = vadd.f32 1.0, %v114_v57  ;;  %v117_v63 = vand.u32 2147483647, %v1263_v20  ;;  %v693_v6 = vsel %vm689_vm7, %v687_v59, %v1651_v18  ;;  %929 = vmatpush.msrb.mxu0 %v888_v36 }
 0x22f   :  { %799 = vrot.lane.b32.xlu0 %v692_v0, %s1282_s19  ;;  %814 = vrot.lane.b32.xlu2 %v692_v0, %s1283_s20 }
 0x230   :  { %784 = vrot.lane.b32.xlu1 %v692_v0, %s1280_s4  ;;  %v116_v19 = vmul.f32 %v1263_v20, %v115_v8  ;;  %vm118_vm14 = vcmp.lt.f32.partialorder %v117_v63, 0.0004427343  ;;  %930 = vmatpush.msrb.mxu0 %v885_v41  ;;  %v1039_v41 = vld [vmem:[%s2082_s8 + $0x60] sm:$0xff] }
 0x231   :  { %v1265_v62 = vpop.eup %1264 }
 0x232   :  { %v149_v16 = vmul.f32 0.6931472, %v1265_v62  ;;  %v1267_v14 = vpop.eup %1266  ;;  %931 = vmatpush.msrb.mxu0 %v882_v46  ;;  %v873_v62 = vld [vmem:[%s2081_s0 + $0x8] sm:$0xff]  ;;  %v1038_v46 = vld [vmem:[%s2082_s8 + $0x58] sm:$0xff] }
 0x233   :  { %v631_v3 = vpop.permute.xlu1 %630  ;;  %v1269_v58 = vpop.eup %1268  ;;  %v120_v4 = vadd.f32 1.0, %v1267_v14  ;;  %v123_v61 = vmul.f32 -0.5, %v1267_v14 }
 0x234   :  { %v155_v27 = vsel %vm154_vm12, %v152_v60, %v149_v16  ;;  %v683_v5 = vsel %vm678_vm6, %v1608_v51, %v631_v3  ;;  %v113_v18 = vmul.f32 0.6931472, %v1269_v58  ;;  %vm860_vm6 = vcmask 310272   ;;  %v874_v58 = vld [vmem:[%s2081_s0 + $0x10] sm:$0xff] }
 0x235   :  { %v160_v10 = vsel %vm95_vm13, %v1693_v43, %v155_v27  ;;  %1270 = vlog2.f32 %v120_v4  ;;  %v124_v12 = vadd.f32 1.0, %v123_v61  ;;  %v688_v13 = vsel %vm296_vm0, %v683_v5, %v1647_v15 }
 0x236   :  { %1189 = vmatmul.msk.f32.gmra.mxu3 %vm43_vm1, %v160_v10  ;;  %v119_v0 = vsel %vm118_vm14, %v116_v19, %v113_v18  ;;  %v126_v43 = vand.u32 2147483647, %v1267_v14  ;;  %v694_v51 = vsel %vm689_vm7, %v688_v13, %v1649_v17  ;;  %v896_v17 = vld [vmem:[%s2080_s7 + $0x70] sm:$0xff]  ;;  %vm866_vm7 = vcmask 351232  }
 0x237   :  { %771 = vrot.lane.b32.xlu0 %v693_v6, %s1281_s1  ;;  %786 = vrot.lane.b32.xlu2 %v693_v6, %s1280_s4  ;;  %v156_v23 = vsel %vm91_vm15, %v1707_v7, %v119_v0  ;;  %v125_v24 = vmul.f32 %v1267_v14, %v124_v12 }
 0x238   :  { %801 = vrot.lane.b32.xlu1 %v693_v6, %s1282_s19  ;;  %1190 = vmatmul.msk.f32.vlgmr.msrb.gmra.mxu2 %vm43_vm1, %v156_v23  ;;  %vm127_vm0 = vcmp.lt.f32.partialorder %v126_v43, 0.0004427343 }
 0x239   :  { %1185 = vmatmul.msk.f32.vlgmr.msra.gmra.mxu1 %vm43_vm1, %v156_v23 }
 0x23b   :  { %v1271_v26 = vpop.eup %1270 }
 0x23c   :  { %v122_v15 = vmul.f32 0.6931472, %v1271_v26 }
 0x23e   :  { %1195 = vmatmul.msk.f32.vlgmr.msrb.gmra.mxu3 %vm43_vm1, %v156_v23  ;;  %v128_v7 = vsel %vm127_vm0, %v125_v24, %v122_v15  ;;  %v875_v23 = vld [vmem:[%s2081_s0 + $0x18] sm:$0xff] }
 0x23f   :  { %816 = vrot.lane.b32.xlu0 %v693_v6, %s1283_s20  ;;  %753 = vrot.lane.b32.xlu2 %v1630_v11, %s1277_s23  ;;  %v157_v1 = vsel %vm92_vm2, %v1738_v40, %v128_v7  ;;  %v899_v11 = vld [vmem:[%s2080_s7 + $0x88] sm:$0xff]  ;;  %v889_v40 = vld [vmem:[%s2080_s7 + $0x38] sm:$0xff] }
 0x240   :  { %773 = vrot.lane.b32.xlu1 %v694_v51, %s1281_s1  ;;  %1191 = vmatmul.msk.f32.gmra.mxu2 %vm43_vm1, %v157_v1  ;;  %v1058_v7 = vld [vmem:[%s2082_s8 + $0xf8] sm:$0xff] }
 0x241   :  { %1186 = vmatmul.msk.f32.gmra.mxu1 %vm43_vm1, %v157_v1  ;;  %990 = vmatpush.msra.mxu2 %v899_v11 }
 0x242   :  { %961 = vmatpush.msrb.mxu1 %v889_v40  ;;  %1107 = vmatpush.msra.mxu0 %v1058_v7  ;;  %v167_v7 = vld [vmem:[%s2083_s6] sm:$0x7] }
 0x243   :  { %991 = vmatpush.msra.mxu2 %v896_v17  ;;  %v1057_v17 = vld [vmem:[%s2082_s8 + $0xf0] sm:$0xff] }
 0x244   :  { %962 = vmatpush.msrb.mxu1 %v886_v42  ;;  %1108 = vmatpush.msra.mxu0 %v1057_v17  ;;  %v1055_v42 = vld [vmem:[%s2082_s8 + $0xe0] sm:$0xff]  ;;  %v169_v17 = vperm.slane %v167_v7, 0 }
 0x245   :  { %992 = vmatpush.msra.mxu2 %v893_v29 }
 0x246   :  { %1196 = vmatmul.msk.f32.gmra.mxu3 %vm43_vm1, %v157_v1  ;;  %963 = vmatpush.msrb.mxu1 %v883_v2  ;;  %v1041_v1 = vld [vmem:[%s2082_s8 + $0x70] sm:$0xff]  ;;  %v1054_v2 = vld [vmem:[%s2082_s8 + $0xd8] sm:$0xff] }
 0x247   :  { %788 = vrot.lane.b32.xlu0 %v694_v51, %s1280_s4  ;;  %803 = vrot.lane.b32.xlu2 %v694_v51, %s1282_s19 }
 0x248   :  { %818 = vrot.lane.b32.xlu1 %v694_v51, %s1283_s20  ;;  %1192 = vmatmul.msk.f32.gmra.mxu2 %vm43_vm1, %v1733_v37 }
 0x249   :  { %1109 = vmatpush.msra.mxu0 %v1056_v32 }
 0x24b   :  { %1110 = vmatpush.msra.mxu0 %v1055_v42 }
 0x24d   :  { %1111 = vmatpush.msra.mxu0 %v1054_v2 }
 0x24e   :  { %1197 = vmatmul.msk.f32.gmra.mxu3 %vm43_vm1, %v1733_v37  ;;  %v890_v37 = vld [vmem:[%s2080_s7 + $0x40] sm:$0xff] }
 0x24f   :  { %993 = vmatpush.msra.mxu2 %v890_v37  ;;  %v876_v37 = vld [vmem:[%s2081_s0 + $0x20] sm:$0xff] }
 0x250   :  { %1193 = vmatmul.msk.f32.gmra.mxu2 %vm43_vm1, %v159_v47 }
 0x251   :  { %994 = vmatpush.msra.mxu2 %v887_v44  ;;  %v1074_v44 = vld [vmem:[%s2082_s8 + $0x178] sm:$0xff] }
 0x252   :  { %1139 = vmatpush.msra.mxu1 %v1074_v44 }
 0x253   :  { %995 = vmatpush.msra.mxu2 %v884_v48  ;;  %v1073_v48 = vld [vmem:[%s2082_s8 + $0x170] sm:$0xff] }
 0x254   :  { %1140 = vmatpush.msra.mxu1 %v1073_v48 }
 0x256   :  { %1198 = vmatmul.msk.f32.gmra.mxu3 %vm43_vm1, %v159_v47 }
 0x258   :  { %1194 = vmatmul.msk.f32.gmra.mxu2 %vm43_vm1, %v160_v10 }
 0x25e   :  { %1199 = vmatmul.msk.f32.gmra.mxu3 %vm43_vm1, %v160_v10 }
 0x271   :  { %v781_v25 = vpop.permute.xlu2 %780 }
 0x279   :  { %v798_v49 = vpop.permute.xlu2 %797 }
 0x281   :  { %v770_v9 = vpop.permute.xlu2 %769 }
 0x282   :  { %v851_v14 = vsel %vm848_vm3, %v1588_v45, %v770_v9  ;;  %v1034_v9 = vld [vmem:[%s2082_s8 + $0x38] sm:$0xff] }
 0x289   :  { %v766_v50 = vpop.permute.xlu0 %765  ;;  %v815_v16 = vpop.permute.xlu2 %814 }
 0x28a   :  { %v796_v20 = vpop.permute.xlu1 %795  ;;  %v849_v52 = vsel %vm848_vm3, %v1567_v28, %v766_v50  ;;  %v1072_v50 = vld [vmem:[%s2082_s8 + $0x168] sm:$0xff] }
 0x28b   :  { %v855_v53 = vsel %vm854_vm5, %v849_v52, %v781_v25  ;;  %v1037_v25 = vld [vmem:[%s2082_s8 + $0x50] sm:$0xff]  ;;  %v1052_v52 = vld [vmem:[%s2082_s8 + $0xc8] sm:$0xff]  ;;  %1141 = vmatpush.msra.mxu1 %v1072_v50 }
 0x28c   :  { %v861_v55 = vsel %vm860_vm6, %v855_v53, %v796_v20  ;;  %v1036_v20 = vld [vmem:[%s2082_s8 + $0x48] sm:$0xff]  ;;  %v1071_v53 = vld [vmem:[%s2082_s8 + $0x160] sm:$0xff] }
 0x28d   :  { %1142 = vmatpush.msra.mxu1 %v1071_v53 }
 0x291   :  { %v811_v22 = vpop.permute.xlu0 %810  ;;  %v787_v61 = vpop.permute.xlu2 %786 }
 0x292   :  { %v867_v57 = vsel %vm866_vm7, %v861_v55, %v811_v22  ;;  %v768_v33 = vpop.permute.xlu1 %767  ;;  %v1051_v55 = vld [vmem:[%s2082_s8 + $0xc0] sm:$0xff]  ;;  %v1070_v22 = vld [vmem:[%s2082_s8 + $0x158] sm:$0xff] }
 0x293   :  { %v877_v47 = vmul.f32 %v872_v54, %v867_v57  ;;  %v850_v28 = vsel %vm848_vm3, %v1573_v35, %v768_v33  ;;  %v1035_v54 = vld [vmem:[%s2082_s8 + $0x40] sm:$0xff]  ;;  %v1050_v57 = vld [vmem:[%s2082_s8 + $0xb8] sm:$0xff]  ;;  %v1069_v33 = vld [vmem:[%s2082_s8 + $0x150] sm:$0xff]  ;;  %1143 = vmatpush.msra.mxu1 %v1070_v22 }
 0x295   :  { %1200 = vmatmul.msk.f32.vlgmr.msrb.gmra.mxu0 %vm900_vm8, %v877_v47  ;;  %1205 = vmatmul.msk.f32.vlgmr.msrb.gmra.mxu1 %vm900_vm8, %v877_v47 }
 0x296   :  { %1210 = vmatmul.msk.f32.vlgmr.msra.gmra.mxu2 %vm900_vm8, %v877_v47  ;;  %v1033_v47 = vld [vmem:[%s2082_s8 + $0x30] sm:$0xff]  ;;  %1144 = vmatpush.msra.mxu1 %v1069_v33 }
 0x299   :  { %v783_v59 = vpop.permute.xlu0 %782  ;;  %v754_v13 = vpop.permute.xlu2 %753 }
 0x29a   :  { %v856_v60 = vsel %vm854_vm5, %v850_v28, %v783_v59  ;;  %v813_v8 = vpop.permute.xlu1 %812  ;;  %v847_v11 = vsel %vm842_vm4, %v1714_v21, %v754_v13  ;;  %v1049_v28 = vld [vmem:[%s2082_s8 + $0xb0] sm:$0xff]  ;;  %v1068_v59 = vld [vmem:[%s2082_s8 + $0x148] sm:$0xff] }
 0x29b   :  { %v862_v63 = vsel %vm860_vm6, %v856_v60, %v798_v49  ;;  %v1053_v49 = vld [vmem:[%s2082_s8 + $0xd0] sm:$0xff]  ;;  %v1032_v60 = vld [vmem:[%s2082_s8 + $0x28] sm:$0xff]  ;;  %1145 = vmatpush.msra.mxu1 %v1068_v59 }
 0x29c   :  { %v868_v3 = vsel %vm866_vm7, %v862_v63, %v813_v8  ;;  %1112 = vmatpush.msra.mxu0 %v1053_v49  ;;  %v1048_v8 = vld [vmem:[%s2082_s8 + $0xa8] sm:$0xff]  ;;  %v1031_v63 = vld [vmem:[%s2082_s8 + $0x20] sm:$0xff] }
 0x29d   :  { %v878_v6 = vmul.f32 %v873_v62, %v868_v3  ;;  %v1067_v62 = vld [vmem:[%s2082_s8 + $0x140] sm:$0xff]  ;;  %v1066_v3 = vld [vmem:[%s2082_s8 + $0x138] sm:$0xff] }
 0x29e   :  { %1113 = vmatpush.msra.mxu0 %v1052_v52  ;;  %1146 = vmatpush.msra.mxu1 %v1067_v62 }
 0x29f   :  { %1201 = vmatmul.msk.f32.gmra.mxu0 %vm900_vm8, %v878_v6  ;;  %1206 = vmatmul.msk.f32.gmra.mxu1 %vm900_vm8, %v878_v6 }
 0x2a0   :  { %1211 = vmatmul.msk.f32.gmra.mxu2 %vm900_vm8, %v878_v6  ;;  %1114 = vmatpush.msra.mxu0 %v1051_v55  ;;  %v1030_v6 = vld [vmem:[%s2082_s8 + $0x18] sm:$0xff] }
 0x2a1   :  { %v800_v35 = vpop.permute.xlu0 %799  ;;  %v804_v34 = vpop.permute.xlu2 %803  ;;  %1147 = vmatpush.msra.mxu1 %v1066_v3 }
 0x2a2   :  { %v785_v27 = vpop.permute.xlu1 %784  ;;  %1115 = vmatpush.msra.mxu0 %v1050_v57 }
 0x2a3   :  { %v857_v19 = vsel %vm854_vm5, %v851_v14, %v785_v27  ;;  %v1065_v14 = vld [vmem:[%s2082_s8 + $0x130] sm:$0xff] }
 0x2a4   :  { %v863_v10 = vsel %vm860_vm6, %v857_v19, %v800_v35  ;;  %1116 = vmatpush.msra.mxu0 %v1049_v28  ;;  %v1046_v35 = vld [vmem:[%s2082_s8 + $0x98] sm:$0xff]  ;;  %v1029_v27 = vld [vmem:[%s2082_s8 + $0x10] sm:$0xff]  ;;  %1148 = vmatpush.msra.mxu1 %v1065_v14 }
 0x2a5   :  { %v869_v4 = vsel %vm866_vm7, %v863_v10, %v815_v16  ;;  %v1047_v16 = vld [vmem:[%s2082_s8 + $0xa0] sm:$0xff]  ;;  %v1045_v19 = vld [vmem:[%s2082_s8 + $0x90] sm:$0xff] }
 0x2a6   :  { %v879_v5 = vmul.f32 %v874_v58, %v869_v4  ;;  %1117 = vmatpush.msra.mxu0 %v1048_v8  ;;  %v1064_v58 = vld [vmem:[%s2082_s8 + $0x128] sm:$0xff] }
 0x2a7   :  { %1149 = vmatpush.msra.mxu1 %v1064_v58 }
 0x2a8   :  { %1202 = vmatmul.msk.f32.gmra.mxu0 %vm900_vm8, %v879_v5  ;;  %1207 = vmatmul.msk.f32.gmra.mxu1 %vm900_vm8, %v879_v5  ;;  %v213_v13 = vpop.f32.mrf.mxu3 }
 0x2a9   :  { %1212 = vmatmul.msk.f32.gmra.mxu2 %vm900_vm8, %v879_v5  ;;  %v772_v45 = vpop.permute.xlu0 %771  ;;  %1118 = vmatpush.msra.mxu0 %v1047_v16  ;;  %v1044_v5 = vld [vmem:[%s2082_s8 + $0x88] sm:$0xff]  ;;  %v214_v53 = vadd.f32 %v213_v13, %v169_v17 }
 0x2aa   :  { %v802_v18 = vpop.permute.xlu1 %801  ;;  %v852_v0 = vsel %vm848_vm3, %v1687_v56, %v772_v45  ;;  %v1042_v56 = vld [vmem:[%s2082_s8 + $0x78] sm:$0xff]  ;;  %v1063_v45 = vld [vmem:[%s2082_s8 + $0x120] sm:$0xff] }
 0x2ab   :  { %v858_v12 = vsel %vm854_vm5, %v852_v0, %v787_v61  ;;  %1075 = vmatpush.msra.mxu3 %v1042_v56  ;;  %1119 = vmatpush.msra.mxu0 %v1046_v35  ;;  %v1028_v61 = vld [vmem:[%s2082_s8 + $0x8] sm:$0xff]  ;;  %v1043_v0 = vld [vmem:[%s2082_s8 + $0x80] sm:$0xff] }
 0x2ac   :  { %v864_v43 = vsel %vm860_vm6, %v858_v12, %v802_v18  ;;  %v1027_v18 = vld [vmem:[%s2082_s8] sm:$0xff]  ;;  %v1062_v12 = vld [vmem:[%s2082_s8 + $0x118] sm:$0xff]  ;;  %1150 = vmatpush.msra.mxu1 %v1063_v45 }
 0x2ad   :  { %1076 = vmatpush.msra.mxu3 %v1041_v1  ;;  %1120 = vmatpush.msra.mxu0 %v1045_v19 }
 0x2ae   :  { %1151 = vmatpush.msra.mxu1 %v1062_v12 }
 0x2af   :  { %1077 = vmatpush.msra.mxu3 %v1040_v31  ;;  %1121 = vmatpush.msra.mxu0 %v1044_v5 }
 0x2b1   :  { %v817_v51 = vpop.permute.xlu0 %816  ;;  %1078 = vmatpush.msra.mxu3 %v1039_v41  ;;  %1122 = vmatpush.msra.mxu0 %v1043_v0 }
 0x2b2   :  { %v870_v24 = vsel %vm866_vm7, %v864_v43, %v817_v51  ;;  %v774_v26 = vpop.permute.xlu1 %773  ;;  %v1060_v43 = vld [vmem:[%s2082_s8 + $0x108] sm:$0xff]  ;;  %v1059_v51 = vld [vmem:[%s2082_s8 + $0x100] sm:$0xff] }
 0x2b3   :  { %v880_v15 = vmul.f32 %v875_v23, %v870_v24  ;;  %v853_v29 = vsel %vm848_vm3, %v847_v11, %v774_v26  ;;  %1079 = vmatpush.msra.mxu3 %v1038_v46  ;;  %v1061_v23 = vld [vmem:[%s2082_s8 + $0x110] sm:$0xff]  ;;  %v216_v26 = vpop.f32.mrf.mxu3 }
 0x2b4   :  { %1152 = vmatpush.msra.mxu1 %v1061_v23  ;;  %v217_v8 = vadd.f32 %v216_v26, %v169_v17 }
 0x2b5   :  { %1203 = vmatmul.msk.f32.gmra.mxu0 %vm900_vm8, %v880_v15  ;;  %1208 = vmatmul.msk.f32.gmra.mxu1 %vm900_vm8, %v880_v15 }
 0x2b6   :  { %1213 = vmatmul.msk.f32.gmra.mxu2 %vm900_vm8, %v880_v15  ;;  %1080 = vmatpush.msra.mxu3 %v1037_v25  ;;  %v207_v15 = vpop.f32.mrf.mxu1 }
 0x2b7   :  { %1153 = vmatpush.msra.mxu1 %v1060_v43 }
 0x2b8   :  { %1081 = vmatpush.msra.mxu3 %v1036_v20 }
 0x2b9   :  { %v789_v30 = vpop.permute.xlu0 %788  ;;  %1154 = vmatpush.msra.mxu1 %v1059_v51 }
 0x2ba   :  { %v859_v21 = vsel %vm854_vm5, %v853_v29, %v789_v30  ;;  %v819_v38 = vpop.permute.xlu1 %818  ;;  %1082 = vmatpush.msra.mxu3 %v1035_v54  ;;  %v170_v29 = vperm.slane %v167_v7, 1  ;;  %v208_v30 = vadd.f32 %v207_v15, %v169_v17 }
 0x2bb   :  { %v865_v39 = vsel %vm860_vm6, %v859_v21, %v804_v34  ;;  %v239_v10 = vpop.f32.mrf.mxu2  ;;  %v219_v1 = vpop.f32.mrf.mxu3 }
 0x2bc   :  { %v871_v36 = vsel %vm866_vm7, %v865_v39, %v819_v38  ;;  %1083 = vmatpush.msra.mxu3 %v1034_v9  ;;  %v240_v31 = vadd.f32 %v239_v10, %v170_v29  ;;  %v171_v39 = vperm.slane %v167_v7, 2  ;;  %v220_v58 = vadd.f32 %v219_v1, %v169_v17 }
 0x2bd   :  { %v881_v40 = vmul.f32 %v876_v37, %v871_v36 }
 0x2be   :  { %1084 = vmatpush.msra.mxu3 %v1033_v47  ;;  %v210_v11 = vpop.f32.mrf.mxu1 }
 0x2bf   :  { %1204 = vmatmul.msk.f32.gmra.mxu0 %vm900_vm8, %v881_v40  ;;  %1209 = vmatmul.msk.f32.gmra.mxu1 %vm900_vm8, %v881_v40  ;;  %v211_v44 = vadd.f32 %v210_v11, %v169_v17 }
 0x2c0   :  { %1214 = vmatmul.msk.f32.gmra.mxu2 %vm900_vm8, %v881_v40  ;;  %1085 = vmatpush.msra.mxu3 %v1032_v60 }
 0x2c2   :  { %1086 = vmatpush.msra.mxu3 %v1031_v63 }
 0x2c3   :  { %v242_v4 = vpop.f32.mrf.mxu2  ;;  %v271_v36 = vpop.f32.mrf.mxu3 }
 0x2c4   :  { %1087 = vmatpush.msra.mxu3 %v1030_v6  ;;  %v272_v40 = vadd.f32 %v271_v36, %v171_v39  ;;  %v243_v46 = vadd.f32 %v242_v4, %v170_v29 }
 0x2c6   :  { %1088 = vmatpush.msra.mxu3 %v1029_v27 }
 0x2c8   :  { %1089 = vmatpush.msra.mxu3 %v1028_v61 }
 0x2ca   :  { %1090 = vmatpush.msra.mxu3 %v1027_v18 }
 0x2cb   :  { %v245_v24 = vpop.f32.mrf.mxu2  ;;  %v274_v50 = vpop.f32.mrf.mxu3 }
 0x2cc   :  { %v275_v20 = vadd.f32 %v274_v50, %v171_v39  ;;  %v246_v54 = vadd.f32 %v245_v24, %v170_v29 }
 0x2d3   :  { %v248_v56 = vpop.f32.mrf.mxu2  ;;  %v277_v47 = vpop.f32.mrf.mxu3 }
 0x2d4   :  { %v278_v28 = vadd.f32 %v277_v47, %v171_v39  ;;  %v249_v62 = vadd.f32 %v248_v56, %v170_v29 }
 0x2db   :  { %v251_v32 = vpop.f32.mrf.mxu2  ;;  %v280_v35 = vpop.f32.mrf.mxu3 }
 0x2dc   :  { %v281_v14 = vadd.f32 %v280_v35, %v171_v39  ;;  %v252_v10 = vadd.f32 %v251_v32, %v170_v29 }
 0x2e3   :  { %v283_v18 = vpop.f32.mrf.mxu3 }
 0x2e4   :  { %v284_v0 = vadd.f32 %v283_v18, %v171_v39 }
 0x312   :  { %v933_v34 = vpop.f32.mrf.mxu0  ;;  %v965_v21 = vpop.f32.mrf.mxu1 }
 0x313   :  { %v1012_v37 = vmul.f32 %v933_v34, %v208_v30  ;;  %v1013_v38 = vmul.f32 %v965_v21, %v240_v31 }
 0x315   :  { %1091 = vmatmul.f32.vlgmr.msra.gmra.mxu3 %v1012_v37  ;;  %1123 = vmatmul.f32.vlgmr.msra.gmra.mxu0 %v1013_v38 }
 0x319   :  { %v997_v41 = vpop.f32.mrf.mxu2 }
 0x31a   :  { %v1014_v42 = vmul.f32 %v997_v41, %v272_v40 }
 0x31c   :  { %1155 = vmatmul.f32.vlgmr.msra.gmra.mxu1 %v1014_v42  ;;  %v936_v2 = vpop.f32.mrf.mxu0  ;;  %v968_v48 = vpop.f32.mrf.mxu1 }
 0x31d   :  { %v1015_v25 = vmul.f32 %v936_v2, %v211_v44  ;;  %v1016_v49 = vmul.f32 %v968_v48, %v243_v46 }
 0x31f   :  { %1094 = vmatmul.f32.gmra.mxu3 %v1015_v25  ;;  %1126 = vmatmul.f32.gmra.mxu0 %v1016_v49 }
 0x323   :  { %v1000_v52 = vpop.f32.mrf.mxu2 }
 0x324   :  { %v1017_v55 = vmul.f32 %v1000_v52, %v275_v20 }
 0x325   :  { %v939_v22 = vpop.f32.mrf.mxu0  ;;  %v971_v9 = vpop.f32.mrf.mxu1 }
 0x326   :  { %v1018_v57 = vmul.f32 %v939_v22, %v214_v53  ;;  %v1019_v33 = vmul.f32 %v971_v9, %v246_v54  ;;  %1158 = vmatmul.f32.gmra.mxu1 %v1017_v55 }
 0x328   :  { %1097 = vmatmul.f32.gmra.mxu3 %v1018_v57  ;;  %1129 = vmatmul.f32.gmra.mxu0 %v1019_v33 }
 0x32c   :  { %v1003_v59 = vpop.f32.mrf.mxu2 }
 0x32d   :  { %v1020_v60 = vmul.f32 %v1003_v59, %v278_v28 }
 0x32f   :  { %1161 = vmatmul.f32.gmra.mxu1 %v1020_v60 }
 0x332   :  { %v942_v63 = vpop.f32.mrf.mxu0  ;;  %v974_v16 = vpop.f32.mrf.mxu1 }
 0x333   :  { %v1021_v3 = vmul.f32 %v942_v63, %v217_v8  ;;  %v1022_v6 = vmul.f32 %v974_v16, %v249_v62 }
 0x335   :  { %1100 = vmatmul.f32.gmra.mxu3 %v1021_v3  ;;  %1132 = vmatmul.f32.gmra.mxu0 %v1022_v6 }
 0x339   :  { %v1006_v27 = vpop.f32.mrf.mxu2 }
 0x33a   :  { %v1023_v19 = vmul.f32 %v1006_v27, %v281_v14 }
 0x33c   :  { %1164 = vmatmul.f32.gmra.mxu1 %v1023_v19  ;;  %v945_v4 = vpop.f32.mrf.mxu0  ;;  %v977_v61 = vpop.f32.mrf.mxu1 }
 0x33d   :  { %v1024_v5 = vmul.f32 %v945_v4, %v220_v58  ;;  %v1025_v45 = vmul.f32 %v977_v61, %v252_v10 }
 0x33f   :  { %1103 = vmatmul.f32.gmra.mxu3 %v1024_v5  ;;  %1135 = vmatmul.f32.gmra.mxu0 %v1025_v45 }
 0x343   :  { %v1009_v12 = vpop.f32.mrf.mxu2 }
 0x344   :  { %v1026_v13 = vmul.f32 %v1009_v12, %v284_v0 }
 0x346   :  { %1167 = vmatmul.f32.gmra.mxu1 %v1026_v13 }
 0x392   :  { %v1124_v23 = vpop.f32.mrf.mxu0 }
 0x398   :  { %v1092_v43 = vpop.f32.mrf.mxu3 }
 0x399   :  { %v1125_v51 = vadd.f32 %v1124_v23, %v1092_v43  ;;  %v1156_v24 = vpop.f32.mrf.mxu1 }
 0x39b   :  { %v1157_v26 = vadd.f32 %v1156_v24, %v1125_v51 }
 0x39c   :  { %v1127_v15 = vpop.f32.mrf.mxu0 }
 0x39d   :  { %1171 = vst.msk [vmem:[%s2084_s9] sm:$0xff] %vm43_vm1, %v1157_v26 }
 0x3a2   :  { %v1095_v56 = vpop.f32.mrf.mxu3 }
 0x3a3   :  { %v1128_v7 = vadd.f32 %v1127_v15, %v1095_v56  ;;  %v1159_v1 = vpop.f32.mrf.mxu1 }
 0x3a5   :  { %v1160_v11 = vadd.f32 %v1159_v1, %v1128_v7  ;;  %v1130_v17 = vpop.f32.mrf.mxu0 }
 0x3a7   :  { %1172 = vst.msk [vmem:[%s2084_s9 + $0x8] sm:$0xff] %vm43_vm1, %v1160_v11 }
 0x3ab   :  { %v1098_v29 = vpop.f32.mrf.mxu3 }
 0x3ac   :  { %v1131_v30 = vadd.f32 %v1130_v17, %v1098_v29  ;;  %v1162_v31 = vpop.f32.mrf.mxu1 }
 0x3ae   :  { %v1163_v32 = vadd.f32 %v1162_v31, %v1131_v30 }
 0x3b0   :  { %1173 = vst.msk [vmem:[%s2084_s9 + $0x10] sm:$0xff] %vm43_vm1, %v1163_v32 }
 0x3b2   :  { %v1133_v34 = vpop.f32.mrf.mxu0 }
 0x3b8   :  { %v1101_v21 = vpop.f32.mrf.mxu3 }
 0x3b9   :  { %v1134_v37 = vadd.f32 %v1133_v34, %v1101_v21  ;;  %v1165_v38 = vpop.f32.mrf.mxu1 }
 0x3bb   :  { %v1166_v39 = vadd.f32 %v1165_v38, %v1134_v37 }
 0x3bc   :  { %v1136_v36 = vpop.f32.mrf.mxu0 }
 0x3bd   :  { %1174 = vst.msk [vmem:[%s2084_s9 + $0x18] sm:$0xff] %vm43_vm1, %v1166_v39 }
 0x3c2   :  { %v1104_v40 = vpop.f32.mrf.mxu3 }
 0x3c3   :  { %v1137_v41 = vadd.f32 %v1136_v36, %v1104_v40  ;;  %v1168_v42 = vpop.f32.mrf.mxu1 }
 0x3c5   :  { %v1169_v44 = vadd.f32 %v1168_v42, %v1137_v41 }
 0x3c7   :  { %1175 = vst.msk [vmem:[%s2084_s9 + $0x20] sm:$0xff] %vm43_vm1, %v1169_v44 }

</bundles_post_ra>
